<compile_context>
chip_gen: v7x
topology: tpu7x:2x2x1
jax: 0.10.0
libtpu: 0.0.40
codegen_flags: <defaults>
</compile_context>

<pallas_src>
import functools
import math

import jax
import jax.numpy as jnp
from jax.experimental import pallas as pl
from jax.experimental.pallas import tpu as pltpu


# ----------------------------------------------------------------------------
# Pallas kernel: fused bidirectional GRU over one time tile per grid step.
# ----------------------------------------------------------------------------
def _bigru_kernel(len_ref, xf_ref, xb_ref, wi_ref, wh_ref, bx_ref, bhn_ref,
                  of_ref, ob_ref, hf_ref, hb_ref, *, tile_t, t_total):
    """Grid axis 0 = time tile (sequential / 'arbitrary').

    Refs per grid step s:
      len_ref : [B, 1]      int32  sequence lengths
      xf_ref  : [B, TT, D]         input, forward time window  s
      xb_ref  : [B, TT, D]         input, backward time window nT-1-s
      wi_ref  : [2, D, 3H]         fused input->hidden weights (r,z,n), per dir
      wh_ref  : [2, H, 3H]         fused hidden->hidden weights, per dir
      bx_ref  : [2, 1, 3H]         folded bias [b_ir+b_hr, b_iz+b_hz, b_in]
      bhn_ref : [2, 1, H]          hidden bias of the n gate (scaled by r)
      of_ref  : [B, TT, H]         forward outputs of window  s
      ob_ref  : [B, TT, H]         backward outputs of window nT-1-s
      hf_ref, hb_ref: [B, H] f32   carried hidden states (persist across grid)
    """
    s = pl.program_id(0)

    @pl.when(s == 0)
    def _init():
        hf_ref[...] = jnp.zeros_like(hf_ref)
        hb_ref[...] = jnp.zeros_like(hb_ref)

    B, H = hf_ref.shape
    D = xf_ref.shape[-1]
    lengths = len_ref[...]                                   # [B, 1] int32

    wi_f, wi_b = wi_ref[0], wi_ref[1]                        # [D, 3H]
    wh_f, wh_b = wh_ref[0], wh_ref[1]                        # [H, 3H]
    bhn_f, bhn_b = bhn_ref[0], bhn_ref[1]                    # [1, H]

    # Batched input-side gate projection for the whole time tile (both dirs):
    # one matmul with M = B*TILE_T instead of TILE_T tiny per-step matmuls.
    xf = xf_ref[...].reshape(B * tile_t, D)
    xb = xb_ref[...].reshape(B * tile_t, D)
    gi_f = (jnp.dot(xf, wi_f, preferred_element_type=jnp.float32)
            + bx_ref[0]).reshape(B, tile_t, 3 * H)
    gi_b = (jnp.dot(xb, wi_b, preferred_element_type=jnp.float32)
            + bx_ref[1]).reshape(B, tile_t, 3 * H)

    def gru_cell(gi, h_prev, wh, bhn):
        # gi already contains b_ih (and b_hh for r,z folded in).
        gh = jnp.dot(h_prev, wh, preferred_element_type=jnp.float32)   # [B, 3H]
        r = jax.nn.sigmoid(gi[:, :H] + gh[:, :H])
        z = jax.nn.sigmoid(gi[:, H:2 * H] + gh[:, H:2 * H])
        n = jnp.tanh(gi[:, 2 * H:] + r * (gh[:, 2 * H:] + bhn))
        return (1.0 - z) * n + z * h_prev

    h_f = hf_ref[...]
    h_b = hb_ref[...]
    base = s * tile_t

    # Statically unrolled serial recurrence over the tile (equivalent to
    # lax.fori_loop(..., unroll=True), but with static indices for Mosaic).
    for j in range(tile_t):
        # ---- forward direction: global time t = base + j --------------------
        t_f = base + j
        valid_f = t_f < lengths                              # [B, 1] bool
        h_new = gru_cell(gi_f[:, j, :], h_f, wh_f, bhn_f)
        h_f = jnp.where(valid_f, h_new, h_f)                 # freeze past seq end
        of_ref[:, j, :] = jnp.where(valid_f, h_f, 0.0).astype(of_ref.dtype)

        # ---- backward direction: global time t = t_total-1 - (base + j) -----
        jj = tile_t - 1 - j
        t_b = (t_total - 1) - (base + j)
        valid_b = t_b < lengths
        h_new = gru_cell(gi_b[:, jj, :], h_b, wh_b, bhn_b)
        h_b = jnp.where(valid_b, h_new, h_b)
        ob_ref[:, jj, :] = jnp.where(valid_b, h_b, 0.0).astype(ob_ref.dtype)

    hf_ref[...] = h_f
    hb_ref[...] = h_b


# ----------------------------------------------------------------------------
# Wrapper
# ----------------------------------------------------------------------------
def _round_up(x, m):
    return ((x + m - 1) // m) * m


def bigru_forward(gru_params, x, x_len, *, max_tile_t=32):
    """Bidirectional GRU with pack/pad semantics.

    x:     [B, T, D] float32 (batch_first)
    x_len: [B]       int     valid lengths
    returns [B, T, 2H] float32, rows t >= x_len[b] are exactly zero.
    """
    B, T, D = x.shape
    H = gru_params["wh"].shape[-2]
    x = x.astype(jnp.float32)

    tile_t = min(max_tile_t, _round_up(T, 8))     # multiple of 8
    t_pad = _round_up(T, tile_t)
    if t_pad != T:
        x = jnp.pad(x, ((0, 0), (0, t_pad - T), (0, 0)))
    n_t = t_pad // tile_t

    lengths = x_len.astype(jnp.int32).reshape(B, 1)

    kernel = functools.partial(_bigru_kernel, tile_t=tile_t, t_total=t_pad)

    grid_spec = pltpu.PrefetchScalarGridSpec(
        num_scalar_prefetch=0,
        grid=(n_t,),
        in_specs=[
            pl.BlockSpec((B, 1), lambda s: (0, 0)),                       # lengths
            pl.BlockSpec((B, tile_t, D), lambda s: (0, s, 0)),            # x fwd win
            pl.BlockSpec((B, tile_t, D), lambda s: (0, n_t - 1 - s, 0)),  # x bwd win
            pl.BlockSpec((2, D, 3 * H), lambda s: (0, 0, 0)),             # Wi (both dirs)
            pl.BlockSpec((2, H, 3 * H), lambda s: (0, 0, 0)),             # Wh
            pl.BlockSpec((2, 1, 3 * H), lambda s: (0, 0, 0)),             # folded x bias
            pl.BlockSpec((2, 1, H), lambda s: (0, 0, 0)),                 # b_hn
        ],
        out_specs=[
            pl.BlockSpec((B, tile_t, H), lambda s: (0, s, 0)),            # fwd half
            pl.BlockSpec((B, tile_t, H), lambda s: (0, n_t - 1 - s, 0)),  # bwd half
        ],
        scratch_shapes=[pltpu.VMEM((B, H), jnp.float32),
                        pltpu.VMEM((B, H), jnp.float32)],
    )

    out_f, out_b = pl.pallas_call(
        kernel,
        grid_spec=grid_spec,
        out_shape=(jax.ShapeDtypeStruct((B, t_pad, H), jnp.float32),
                   jax.ShapeDtypeStruct((B, t_pad, H), jnp.float32)),
        compiler_params=pltpu.CompilerParams(
            dimension_semantics=("arbitrary",)),
    )(lengths, x, x, gru_params["wi"], gru_params["wh"],
      gru_params["b_x"], gru_params["b_hn"])

    out = jnp.concatenate([out_f, out_b], axis=-1)            # [B, t_pad, 2H]
    return out[:, :T, :]
    # TODO(synk): n_to_1=True branch (last_item_from_packed) would be a simple
    # per-batch gather out[b, x_len[b]-1] in JAX glue; not exercised here.


def model_forward(params, x, x_len):
    """Equivalent of Model.forward encoder path: inp Linear -> bidirectional GRU.

    (nn.GRU dropout is a no-op for num_layers=1, so nothing to emulate.)
    """
    h = jnp.dot(x, params["w_in"])        # nn.Linear(d_in, model_dim, bias=False)
    enc = bigru_forward(params["gru"], h, x_len)
    # TODO(synk): OutLayer (d_rnn_out -> d_fc_out -> n_targets) and
    # ACTIVATION_FUNCTIONS[params.task] are not defined in the provided spec.
    return enc


# ----------------------------------------------------------------------------
# Parameter init / packing (PyTorch-style raw params -> fused kernel params)
# ----------------------------------------------------------------------------
def init_gru_params(key, d_in, d_out):
    """Raw per-gate params matching nn.GRU init (bi=True, 1 layer), gate order r,z,n."""
    H = d_out
    k = 1.0 / math.sqrt(H)
    keys = jax.random.split(key, 8)

    def u(kk, shape):
        return jax.random.uniform(kk, shape, jnp.float32, minval=-k, maxval=k)

    raw = {}
    for i, tag in enumerate(("f", "b")):           # forward / backward direction
        raw[f"w_ih_{tag}"] = u(keys[4 * i + 0], (3, d_in, H))   # for x @ W
        raw[f"w_hh_{tag}"] = u(keys[4 * i + 1], (3, H, H))      # for h @ W
        raw[f"b_ih_{tag}"] = u(keys[4 * i + 2], (3, H))
        raw[f"b_hh_{tag}"] = u(keys[4 * i + 3], (3, H))
    return raw


def pack_gru_params(raw, weight_dtype=jnp.float32):
    """Fuse gates along lanes and fold r/z hidden biases into the input bias.

    weight_dtype=jnp.bfloat16 halves weight DMA/VMEM on v6e/v7x (accumulation
    stays f32 via preferred_element_type); f32 here to match the f32 reference.
    """
    def pack_dir(tag):
        wi = jnp.concatenate([raw[f"w_ih_{tag}"][g] for g in range(3)], -1)  # [D,3H]
        wh = jnp.concatenate([raw[f"w_hh_{tag}"][g] for g in range(3)], -1)  # [H,3H]
        b_ih, b_hh = raw[f"b_ih_{tag}"], raw[f"b_hh_{tag}"]
        b_x = jnp.concatenate([b_ih[0] + b_hh[0], b_ih[1] + b_hh[1], b_ih[2]], -1)
        return wi, wh, b_x, b_hh[2]

    wif, whf, bxf, bhnf = pack_dir("f")
    wib, whb, bxb, bhnb = pack_dir("b")
    return {
        "wi": jnp.stack([wif, wib]).astype(weight_dtype),              # [2, D, 3H]
        "wh": jnp.stack([whf, whb]).astype(weight_dtype),              # [2, H, 3H]
        "b_x": jnp.stack([bxf, bxb])[:, None, :].astype(jnp.float32),  # [2, 1, 3H]
        "b_hn": jnp.stack([bhnf, bhnb])[:, None, :].astype(jnp.float32),  # [2, 1, H]
    }


# ----------------------------------------------------------------------------
# Pure-JAX reference (same math, plain XLA) for correctness checking
# ----------------------------------------------------------------------------
def gru_reference(gru_params, x, x_len):
    B, T, _ = x.shape
    H = gru_params["wh"].shape[-2]
    wi, wh = gru_params["wi"], gru_params["wh"]
    bx, bhn = gru_params["b_x"], gru_params["b_hn"]
    halves = []
    for d, reverse in ((0, False), (1, True)):
        h = jnp.zeros((B, H), jnp.float32)
        out_d = [None] * T
        order = range(T - 1, -1, -1) if reverse else range(T)
        for t in order:
            gi = x[:, t, :] @ wi[d].astype(jnp.float32) + bx[d]
            gh = h @ wh[d].astype(jnp.float32)
            r = jax.nn.sigmoid(gi[:, :H] + gh[:, :H])
            z = jax.nn.sigmoid(gi[:, H:2 * H] + gh[:, H:2 * H])
            n = jnp.tanh(gi[:, 2 * H:] + r * (gh[:, 2 * H:] + bhn[d]))
            h_new = (1.0 - z) * n + z * h
            valid = (t < x_len)[:, None]
            h = jnp.where(valid, h_new, h)
            out_d[t] = jnp.where(valid, h, 0.0)
        halves.append(jnp.stack(out_d, axis=1))              # [B, T, H]
    return jnp.concatenate(halves, axis=-1)                  # [B, T, 2H]


# ----------------------------------------------------------------------------
if __name__ == "__main__":
    B, T, D_IN, D_MODEL, H = 2, 8, 12, 16, 32

    key = jax.random.PRNGKey(0)
    k_x, k_w, k_p = jax.random.split(key, 3)
    x = jax.random.normal(k_x, (B, T, D_IN), dtype=jnp.float32)
    x_len = jnp.array([T, 5], dtype=jnp.int32)

    w_in = 0.1 * jax.random.normal(k_w, (D_IN, D_MODEL), dtype=jnp.float32)
    gru_params = pack_gru_params(init_gru_params(k_p, D_MODEL, H))
    params = {"w_in": w_in, "gru": gru_params}

    out = model_forward(params, x, x_len)
    out = jax.block_until_ready(out)

    assert out.shape == (B, T, 2 * H), out.shape
    assert bool(jnp.all(jnp.isfinite(out)))
    # padded rows (t >= x_len[b]) must be exactly zero, like pad_packed_sequence
    assert bool(jnp.all(out[1, 5:, :] == 0.0))

    # cross-check the Pallas kernel against a pure-JAX reference of the same GRU
    ref = gru_reference(gru_params, jnp.dot(x, w_in), x_len)
    max_err = float(jnp.max(jnp.abs(out - ref)))
    assert jnp.allclose(out, ref, atol=1e-2, rtol=1e-2), max_err

    print("KERNEL_OK")
</pallas_src>

<mosaic_0001>
module attributes {stable_mosaic.version = 11 : i64} {
  func.func @_bigru_kernel(%arg0: i32, %arg1: memref<2x1xi32, #tpu.memory_space<vmem>>, %arg2: memref<2x8x16xf32, #tpu.memory_space<vmem>>, %arg3: memref<2x8x16xf32, #tpu.memory_space<vmem>>, %arg4: memref<2x16x96xf32, #tpu.memory_space<vmem>>, %arg5: memref<2x32x96xf32, #tpu.memory_space<vmem>>, %arg6: memref<2x1x96xf32, #tpu.memory_space<vmem>>, %arg7: memref<2x1x32xf32, #tpu.memory_space<vmem>>, %arg8: memref<2x8x32xf32, #tpu.memory_space<vmem>>, %arg9: memref<2x8x32xf32, #tpu.memory_space<vmem>>, %arg10: memref<2x32xf32, #tpu.memory_space<vmem>>, %arg11: memref<2x32xf32, #tpu.memory_space<vmem>>) attributes {dimension_semantics = [#tpu.dimension_semantics<arbitrary>], iteration_bounds = array<i64: 1>, scalar_prefetch = 0 : i64, scratch_operands = 2 : i64, tpu.core_type = #tpu.core_type<tc>, window_params = [{pipeline_mode = #tpu.pipeline_mode<synchronous>, transform_indices = @transform_0, window_bounds = array<i64: 2, 1>}, {transform_indices = @transform_1, window_bounds = array<i64: 2, 8, 16>}, {transform_indices = @transform_2, window_bounds = array<i64: 2, 8, 16>}, {pipeline_mode = #tpu.pipeline_mode<synchronous>, transform_indices = @transform_3, window_bounds = array<i64: 2, 16, 96>}, {pipeline_mode = #tpu.pipeline_mode<synchronous>, transform_indices = @transform_4, window_bounds = array<i64: 2, 32, 96>}, {pipeline_mode = #tpu.pipeline_mode<synchronous>, transform_indices = @transform_5, window_bounds = array<i64: 2, 1, 96>}, {pipeline_mode = #tpu.pipeline_mode<synchronous>, transform_indices = @transform_6, window_bounds = array<i64: 2, 1, 32>}, {transform_indices = @transform_7, window_bounds = array<i64: 2, 8, 32>}, {transform_indices = @transform_8, window_bounds = array<i64: 2, 8, 32>}]} {
    %c0_i32 = arith.constant 0 : i32
    %0 = arith.cmpi eq, %arg0, %c0_i32 : i32
    %1 = arith.extui %0 : i1 to i32
    %c0_i32_0 = arith.constant 0 : i32
    %2 = arith.cmpi ne, %1, %c0_i32_0 : i32
    scf.if %2 {
      %cst_179 = arith.constant 0.000000e+00 : f32
      %749 = vector.broadcast %cst_179 : f32 to vector<2x32xf32>
      %c0_180 = arith.constant 0 : index
      %c0_181 = arith.constant 0 : index
      %750 = vector.load %arg10[%c0_180, %c0_181] : memref<2x32xf32, #tpu.memory_space<vmem>>, vector<2x32xf32>
      tpu.vector_store %arg10[%c0_180, %c0_181], %749 {strides = array<i32>} : memref<2x32xf32, #tpu.memory_space<vmem>>, vector<2x32xf32>,
      %cst_182 = arith.constant 0.000000e+00 : f32
      %751 = vector.broadcast %cst_182 : f32 to vector<2x32xf32>
      %c0_183 = arith.constant 0 : index
      %c0_184 = arith.constant 0 : index
      %752 = vector.load %arg11[%c0_183, %c0_184] : memref<2x32xf32, #tpu.memory_space<vmem>>, vector<2x32xf32>
      tpu.vector_store %arg11[%c0_183, %c0_184], %751 {strides = array<i32>} : memref<2x32xf32, #tpu.memory_space<vmem>>, vector<2x32xf32>,
    } else {
    }
    %c0 = arith.constant 0 : index
    %c0_1 = arith.constant 0 : index
    %3 = vector.load %arg1[%c0, %c0_1] : memref<2x1xi32, #tpu.memory_space<vmem>>, vector<2x1xi32>
    %c0_2 = arith.constant 0 : index
    %c0_3 = arith.constant 0 : index
    %c0_4 = arith.constant 0 : index
    %4 = vector.load %arg4[%c0_2, %c0_3, %c0_4] : memref<2x16x96xf32, #tpu.memory_space<vmem>>, vector<1x16x96xf32>
    %5 = vector.shape_cast %4 : vector<1x16x96xf32> to vector<16x96xf32>
    %c1 = arith.constant 1 : index
    %c0_5 = arith.constant 0 : index
    %c0_6 = arith.constant 0 : index
    %6 = vector.load %arg4[%c1, %c0_5, %c0_6] : memref<2x16x96xf32, #tpu.memory_space<vmem>>, vector<1x16x96xf32>
    %7 = vector.shape_cast %6 : vector<1x16x96xf32> to vector<16x96xf32>
    %c0_7 = arith.constant 0 : index
    %c0_8 = arith.constant 0 : index
    %c0_9 = arith.constant 0 : index
    %8 = vector.load %arg5[%c0_7, %c0_8, %c0_9] : memref<2x32x96xf32, #tpu.memory_space<vmem>>, vector<1x32x96xf32>
    %9 = vector.shape_cast %8 : vector<1x32x96xf32> to vector<32x96xf32>
    %c1_10 = arith.constant 1 : index
    %c0_11 = arith.constant 0 : index
    %c0_12 = arith.constant 0 : index
    %10 = vector.load %arg5[%c1_10, %c0_11, %c0_12] : memref<2x32x96xf32, #tpu.memory_space<vmem>>, vector<1x32x96xf32>
    %11 = vector.shape_cast %10 : vector<1x32x96xf32> to vector<32x96xf32>
    %c0_13 = arith.constant 0 : index
    %c0_14 = arith.constant 0 : index
    %c0_15 = arith.constant 0 : index
    %12 = vector.load %arg7[%c0_13, %c0_14, %c0_15] : memref<2x1x32xf32, #tpu.memory_space<vmem>>, vector<1x1x32xf32>
    %13 = vector.shape_cast %12 : vector<1x1x32xf32> to vector<1x32xf32>
    %c1_16 = arith.constant 1 : index
    %c0_17 = arith.constant 0 : index
    %c0_18 = arith.constant 0 : index
    %14 = vector.load %arg7[%c1_16, %c0_17, %c0_18] : memref<2x1x32xf32, #tpu.memory_space<vmem>>, vector<1x1x32xf32>
    %15 = vector.shape_cast %14 : vector<1x1x32xf32> to vector<1x32xf32>
    %c0_19 = arith.constant 0 : index
    %c0_20 = arith.constant 0 : index
    %c0_21 = arith.constant 0 : index
    %16 = vector.load %arg2[%c0_19, %c0_20, %c0_21] : memref<2x8x16xf32, #tpu.memory_space<vmem>>, vector<2x8x16xf32>
    %17 = vector.shape_cast %16 : vector<2x8x16xf32> to vector<16x16xf32>
    %c0_22 = arith.constant 0 : index
    %c0_23 = arith.constant 0 : index
    %c0_24 = arith.constant 0 : index
    %18 = vector.load %arg3[%c0_22, %c0_23, %c0_24] : memref<2x8x16xf32, #tpu.memory_space<vmem>>, vector<2x8x16xf32>
    %19 = vector.shape_cast %18 : vector<2x8x16xf32> to vector<16x16xf32>
    %cst = arith.constant dense<0.000000e+00> : vector<16x96xf32>
    %20 = tpu.matmul %17, %5, %cst {dimension_numbers = #tpu.dot_dimension_numbers<[1], [0], [0], [1], [0, 0, 1, 1], [], []>} : vector<16x16xf32>, vector<16x96xf32>, vector<16x96xf32> -> vector<16x96xf32>
    %c0_25 = arith.constant 0 : index
    %c0_26 = arith.constant 0 : index
    %c0_27 = arith.constant 0 : index
    %21 = vector.load %arg6[%c0_25, %c0_26, %c0_27] : memref<2x1x96xf32, #tpu.memory_space<vmem>>, vector<1x1x96xf32>
    %22 = vector.shape_cast %21 : vector<1x1x96xf32> to vector<1x96xf32>
    %23 = vector.broadcast %22 : vector<1x96xf32> to vector<16x96xf32>
    %24 = arith.addf %20, %23 : vector<16x96xf32>
    %25 = vector.shape_cast %24 : vector<16x96xf32> to vector<2x8x96xf32>
    %cst_28 = arith.constant dense<0.000000e+00> : vector<16x96xf32>
    %26 = tpu.matmul %19, %7, %cst_28 {dimension_numbers = #tpu.dot_dimension_numbers<[1], [0], [0], [1], [0, 0, 1, 1], [], []>} : vector<16x16xf32>, vector<16x96xf32>, vector<16x96xf32> -> vector<16x96xf32>
    %c1_29 = arith.constant 1 : index
    %c0_30 = arith.constant 0 : index
    %c0_31 = arith.constant 0 : index
    %27 = vector.load %arg6[%c1_29, %c0_30, %c0_31] : memref<2x1x96xf32, #tpu.memory_space<vmem>>, vector<1x1x96xf32>
    %28 = vector.shape_cast %27 : vector<1x1x96xf32> to vector<1x96xf32>
    %29 = vector.broadcast %28 : vector<1x96xf32> to vector<16x96xf32>
    %30 = arith.addf %26, %29 : vector<16x96xf32>
    %31 = vector.shape_cast %30 : vector<16x96xf32> to vector<2x8x96xf32>
    %c0_32 = arith.constant 0 : index
    %c0_33 = arith.constant 0 : index
    %32 = vector.load %arg10[%c0_32, %c0_33] : memref<2x32xf32, #tpu.memory_space<vmem>>, vector<2x32xf32>
    %c0_34 = arith.constant 0 : index
    %c0_35 = arith.constant 0 : index
    %33 = vector.load %arg11[%c0_34, %c0_35] : memref<2x32xf32, #tpu.memory_space<vmem>>, vector<2x32xf32>
    %c8_i32 = arith.constant 8 : i32
    %34 = arith.muli %arg0, %c8_i32 : i32
    %c0_i32_36 = arith.constant 0 : i32
    %35 = arith.addi %34, %c0_i32_36 : i32
    %36 = vector.broadcast %35 : i32 to vector<2x1xi32>
    %37 = arith.cmpi slt, %36, %3 : vector<2x1xi32>
    %38 = vector.extract_strided_slice %25 {offsets = [0, 0, 0], sizes = [2, 1, 96], strides = [1, 1, 1]} : vector<2x8x96xf32> to vector<2x1x96xf32>
    %39 = vector.shape_cast %38 : vector<2x1x96xf32> to vector<2x96xf32>
    %cst_37 = arith.constant dense<0.000000e+00> : vector<2x96xf32>
    %40 = tpu.matmul %32, %9, %cst_37 {dimension_numbers = #tpu.dot_dimension_numbers<[1], [0], [0], [1], [0, 0, 1, 1], [], []>} : vector<2x32xf32>, vector<32x96xf32>, vector<2x96xf32> -> vector<2x96xf32>
    %41 = vector.extract_strided_slice %39 {offsets = [0, 0], sizes = [2, 32], strides = [1, 1]} : vector<2x96xf32> to vector<2x32xf32>
    %42 = vector.extract_strided_slice %40 {offsets = [0, 0], sizes = [2, 32], strides = [1, 1]} : vector<2x96xf32> to vector<2x32xf32>
    %43 = arith.addf %41, %42 : vector<2x32xf32>
    %44 = arith.negf %43 : vector<2x32xf32>
    %45 = math.exp %44 : vector<2x32xf32>
    %cst_38 = arith.constant 1.000000e+00 : f32
    %46 = vector.broadcast %cst_38 : f32 to vector<2x32xf32>
    %47 = arith.addf %46, %45 : vector<2x32xf32>
    %48 = arith.divf %46, %47 : vector<2x32xf32>
    %49 = vector.extract_strided_slice %39 {offsets = [0, 32], sizes = [2, 32], strides = [1, 1]} : vector<2x96xf32> to vector<2x32xf32>
    %50 = vector.extract_strided_slice %40 {offsets = [0, 32], sizes = [2, 32], strides = [1, 1]} : vector<2x96xf32> to vector<2x32xf32>
    %51 = arith.addf %49, %50 : vector<2x32xf32>
    %52 = arith.negf %51 : vector<2x32xf32>
    %53 = math.exp %52 : vector<2x32xf32>
    %cst_39 = arith.constant 1.000000e+00 : f32
    %54 = vector.broadcast %cst_39 : f32 to vector<2x32xf32>
    %55 = arith.addf %54, %53 : vector<2x32xf32>
    %56 = arith.divf %54, %55 : vector<2x32xf32>
    %57 = vector.extract_strided_slice %39 {offsets = [0, 64], sizes = [2, 32], strides = [1, 1]} : vector<2x96xf32> to vector<2x32xf32>
    %58 = vector.extract_strided_slice %40 {offsets = [0, 64], sizes = [2, 32], strides = [1, 1]} : vector<2x96xf32> to vector<2x32xf32>
    %59 = vector.broadcast %13 : vector<1x32xf32> to vector<2x32xf32>
    %60 = arith.addf %58, %59 : vector<2x32xf32>
    %61 = arith.mulf %48, %60 : vector<2x32xf32>
    %62 = arith.addf %57, %61 : vector<2x32xf32>
    %63 = math.tanh %62 : vector<2x32xf32>
    %cst_40 = arith.constant 1.000000e+00 : f32
    %64 = vector.broadcast %cst_40 : f32 to vector<2x32xf32>
    %65 = arith.subf %64, %56 : vector<2x32xf32>
    %66 = arith.mulf %65, %63 : vector<2x32xf32>
    %67 = arith.mulf %56, %32 : vector<2x32xf32>
    %68 = arith.addf %66, %67 : vector<2x32xf32>
    %69 = vector.shape_cast %37 : vector<2x1xi1> to vector<2x1xi1>
    %70 = vector.broadcast %69 : vector<2x1xi1> to vector<2x32xi1>
    %71 = arith.select %70, %68, %32 : vector<2x32xi1>, vector<2x32xf32>
    %cst_41 = arith.constant 0.000000e+00 : f32
    %72 = vector.shape_cast %37 : vector<2x1xi1> to vector<2x1xi1>
    %73 = vector.broadcast %72 : vector<2x1xi1> to vector<2x32xi1>
    %74 = vector.broadcast %cst_41 : f32 to vector<2x32xf32>
    %75 = arith.select %73, %71, %74 : vector<2x32xi1>, vector<2x32xf32>
    %c0_42 = arith.constant 0 : index
    %c0_43 = arith.constant 0 : index
    %c0_44 = arith.constant 0 : index
    %76 = vector.load %arg8[%c0_42, %c0_43, %c0_44] : memref<2x8x32xf32, #tpu.memory_space<vmem>>, vector<2x1x32xf32>
    %77 = vector.shape_cast %76 : vector<2x1x32xf32> to vector<2x32xf32>
    %78 = vector.shape_cast %75 : vector<2x32xf32> to vector<2x1x32xf32>
    tpu.vector_store %arg8[%c0_42, %c0_43, %c0_44], %78 {strides = array<i32>} : memref<2x8x32xf32, #tpu.memory_space<vmem>>, vector<2x1x32xf32>,
    %c0_i32_45 = arith.constant 0 : i32
    %79 = arith.addi %34, %c0_i32_45 : i32
    %c7_i32 = arith.constant 7 : i32
    %80 = arith.subi %c7_i32, %79 : i32
    %81 = vector.broadcast %80 : i32 to vector<2x1xi32>
    %82 = arith.cmpi slt, %81, %3 : vector<2x1xi32>
    %83 = vector.extract_strided_slice %31 {offsets = [0, 7, 0], sizes = [2, 1, 96], strides = [1, 1, 1]} : vector<2x8x96xf32> to vector<2x1x96xf32>
    %84 = vector.shape_cast %83 : vector<2x1x96xf32> to vector<2x96xf32>
    %cst_46 = arith.constant dense<0.000000e+00> : vector<2x96xf32>
    %85 = tpu.matmul %33, %11, %cst_46 {dimension_numbers = #tpu.dot_dimension_numbers<[1], [0], [0], [1], [0, 0, 1, 1], [], []>} : vector<2x32xf32>, vector<32x96xf32>, vector<2x96xf32> -> vector<2x96xf32>
    %86 = vector.extract_strided_slice %84 {offsets = [0, 0], sizes = [2, 32], strides = [1, 1]} : vector<2x96xf32> to vector<2x32xf32>
    %87 = vector.extract_strided_slice %85 {offsets = [0, 0], sizes = [2, 32], strides = [1, 1]} : vector<2x96xf32> to vector<2x32xf32>
    %88 = arith.addf %86, %87 : vector<2x32xf32>
    %89 = arith.negf %88 : vector<2x32xf32>
    %90 = math.exp %89 : vector<2x32xf32>
    %cst_47 = arith.constant 1.000000e+00 : f32
    %91 = vector.broadcast %cst_47 : f32 to vector<2x32xf32>
    %92 = arith.addf %91, %90 : vector<2x32xf32>
    %93 = arith.divf %91, %92 : vector<2x32xf32>
    %94 = vector.extract_strided_slice %84 {offsets = [0, 32], sizes = [2, 32], strides = [1, 1]} : vector<2x96xf32> to vector<2x32xf32>
    %95 = vector.extract_strided_slice %85 {offsets = [0, 32], sizes = [2, 32], strides = [1, 1]} : vector<2x96xf32> to vector<2x32xf32>
    %96 = arith.addf %94, %95 : vector<2x32xf32>
    %97 = arith.negf %96 : vector<2x32xf32>
    %98 = math.exp %97 : vector<2x32xf32>
    %cst_48 = arith.constant 1.000000e+00 : f32
    %99 = vector.broadcast %cst_48 : f32 to vector<2x32xf32>
    %100 = arith.addf %99, %98 : vector<2x32xf32>
    %101 = arith.divf %99, %100 : vector<2x32xf32>
    %102 = vector.extract_strided_slice %84 {offsets = [0, 64], sizes = [2, 32], strides = [1, 1]} : vector<2x96xf32> to vector<2x32xf32>
    %103 = vector.extract_strided_slice %85 {offsets = [0, 64], sizes = [2, 32], strides = [1, 1]} : vector<2x96xf32> to vector<2x32xf32>
    %104 = vector.broadcast %15 : vector<1x32xf32> to vector<2x32xf32>
    %105 = arith.addf %103, %104 : vector<2x32xf32>
    %106 = arith.mulf %93, %105 : vector<2x32xf32>
    %107 = arith.addf %102, %106 : vector<2x32xf32>
    %108 = math.tanh %107 : vector<2x32xf32>
    %cst_49 = arith.constant 1.000000e+00 : f32
    %109 = vector.broadcast %cst_49 : f32 to vector<2x32xf32>
    %110 = arith.subf %109, %101 : vector<2x32xf32>
    %111 = arith.mulf %110, %108 : vector<2x32xf32>
    %112 = arith.mulf %101, %33 : vector<2x32xf32>
    %113 = arith.addf %111, %112 : vector<2x32xf32>
    %114 = vector.shape_cast %82 : vector<2x1xi1> to vector<2x1xi1>
    %115 = vector.broadcast %114 : vector<2x1xi1> to vector<2x32xi1>
    %116 = arith.select %115, %113, %33 : vector<2x32xi1>, vector<2x32xf32>
    %cst_50 = arith.constant 0.000000e+00 : f32
    %117 = vector.shape_cast %82 : vector<2x1xi1> to vector<2x1xi1>
    %118 = vector.broadcast %117 : vector<2x1xi1> to vector<2x32xi1>
    %119 = vector.broadcast %cst_50 : f32 to vector<2x32xf32>
    %120 = arith.select %118, %116, %119 : vector<2x32xi1>, vector<2x32xf32>
    %c0_51 = arith.constant 0 : index
    %c7 = arith.constant 7 : index
    %c0_52 = arith.constant 0 : index
    %121 = vector.load %arg9[%c0_51, %c7, %c0_52] : memref<2x8x32xf32, #tpu.memory_space<vmem>>, vector<2x1x32xf32>
    %122 = vector.shape_cast %121 : vector<2x1x32xf32> to vector<2x32xf32>
    %123 = vector.shape_cast %120 : vector<2x32xf32> to vector<2x1x32xf32>
    tpu.vector_store %arg9[%c0_51, %c7, %c0_52], %123 {strides = array<i32>} : memref<2x8x32xf32, #tpu.memory_space<vmem>>, vector<2x1x32xf32>,
    %c1_i32 = arith.constant 1 : i32
    %124 = arith.addi %34, %c1_i32 : i32
    %125 = vector.broadcast %124 : i32 to vector<2x1xi32>
    %126 = arith.cmpi slt, %125, %3 : vector<2x1xi32>
    %127 = vector.extract_strided_slice %25 {offsets = [0, 1, 0], sizes = [2, 1, 96], strides = [1, 1, 1]} : vector<2x8x96xf32> to vector<2x1x96xf32>
    %128 = vector.shape_cast %127 : vector<2x1x96xf32> to vector<2x96xf32>
    %cst_53 = arith.constant dense<0.000000e+00> : vector<2x96xf32>
    %129 = tpu.matmul %71, %9, %cst_53 {dimension_numbers = #tpu.dot_dimension_numbers<[1], [0], [0], [1], [0, 0, 1, 1], [], []>} : vector<2x32xf32>, vector<32x96xf32>, vector<2x96xf32> -> vector<2x96xf32>
    %130 = vector.extract_strided_slice %128 {offsets = [0, 0], sizes = [2, 32], strides = [1, 1]} : vector<2x96xf32> to vector<2x32xf32>
    %131 = vector.extract_strided_slice %129 {offsets = [0, 0], sizes = [2, 32], strides = [1, 1]} : vector<2x96xf32> to vector<2x32xf32>
    %132 = arith.addf %130, %131 : vector<2x32xf32>
    %133 = arith.negf %132 : vector<2x32xf32>
    %134 = math.exp %133 : vector<2x32xf32>
    %cst_54 = arith.constant 1.000000e+00 : f32
    %135 = vector.broadcast %cst_54 : f32 to vector<2x32xf32>
    %136 = arith.addf %135, %134 : vector<2x32xf32>
    %137 = arith.divf %135, %136 : vector<2x32xf32>
    %138 = vector.extract_strided_slice %128 {offsets = [0, 32], sizes = [2, 32], strides = [1, 1]} : vector<2x96xf32> to vector<2x32xf32>
    %139 = vector.extract_strided_slice %129 {offsets = [0, 32], sizes = [2, 32], strides = [1, 1]} : vector<2x96xf32> to vector<2x32xf32>
    %140 = arith.addf %138, %139 : vector<2x32xf32>
    %141 = arith.negf %140 : vector<2x32xf32>
    %142 = math.exp %141 : vector<2x32xf32>
    %cst_55 = arith.constant 1.000000e+00 : f32
    %143 = vector.broadcast %cst_55 : f32 to vector<2x32xf32>
    %144 = arith.addf %143, %142 : vector<2x32xf32>
    %145 = arith.divf %143, %144 : vector<2x32xf32>
    %146 = vector.extract_strided_slice %128 {offsets = [0, 64], sizes = [2, 32], strides = [1, 1]} : vector<2x96xf32> to vector<2x32xf32>
    %147 = vector.extract_strided_slice %129 {offsets = [0, 64], sizes = [2, 32], strides = [1, 1]} : vector<2x96xf32> to vector<2x32xf32>
    %148 = vector.broadcast %13 : vector<1x32xf32> to vector<2x32xf32>
    %149 = arith.addf %147, %148 : vector<2x32xf32>
    %150 = arith.mulf %137, %149 : vector<2x32xf32>
    %151 = arith.addf %146, %150 : vector<2x32xf32>
    %152 = math.tanh %151 : vector<2x32xf32>
    %cst_56 = arith.constant 1.000000e+00 : f32
    %153 = vector.broadcast %cst_56 : f32 to vector<2x32xf32>
    %154 = arith.subf %153, %145 : vector<2x32xf32>
    %155 = arith.mulf %154, %152 : vector<2x32xf32>
    %156 = arith.mulf %145, %71 : vector<2x32xf32>
    %157 = arith.addf %155, %156 : vector<2x32xf32>
    %158 = vector.shape_cast %126 : vector<2x1xi1> to vector<2x1xi1>
    %159 = vector.broadcast %158 : vector<2x1xi1> to vector<2x32xi1>
    %160 = arith.select %159, %157, %71 : vector<2x32xi1>, vector<2x32xf32>
    %cst_57 = arith.constant 0.000000e+00 : f32
    %161 = vector.shape_cast %126 : vector<2x1xi1> to vector<2x1xi1>
    %162 = vector.broadcast %161 : vector<2x1xi1> to vector<2x32xi1>
    %163 = vector.broadcast %cst_57 : f32 to vector<2x32xf32>
    %164 = arith.select %162, %160, %163 : vector<2x32xi1>, vector<2x32xf32>
    %c0_58 = arith.constant 0 : index
    %c1_59 = arith.constant 1 : index
    %c0_60 = arith.constant 0 : index
    %165 = vector.load %arg8[%c0_58, %c1_59, %c0_60] : memref<2x8x32xf32, #tpu.memory_space<vmem>>, vector<2x1x32xf32>
    %166 = vector.shape_cast %165 : vector<2x1x32xf32> to vector<2x32xf32>
    %167 = vector.shape_cast %164 : vector<2x32xf32> to vector<2x1x32xf32>
    tpu.vector_store %arg8[%c0_58, %c1_59, %c0_60], %167 {strides = array<i32>} : memref<2x8x32xf32, #tpu.memory_space<vmem>>, vector<2x1x32xf32>,
    %c1_i32_61 = arith.constant 1 : i32
    %168 = arith.addi %34, %c1_i32_61 : i32
    %c7_i32_62 = arith.constant 7 : i32
    %169 = arith.subi %c7_i32_62, %168 : i32
    %170 = vector.broadcast %169 : i32 to vector<2x1xi32>
    %171 = arith.cmpi slt, %170, %3 : vector<2x1xi32>
    %172 = vector.extract_strided_slice %31 {offsets = [0, 6, 0], sizes = [2, 1, 96], strides = [1, 1, 1]} : vector<2x8x96xf32> to vector<2x1x96xf32>
    %173 = vector.shape_cast %172 : vector<2x1x96xf32> to vector<2x96xf32>
    %cst_63 = arith.constant dense<0.000000e+00> : vector<2x96xf32>
    %174 = tpu.matmul %116, %11, %cst_63 {dimension_numbers = #tpu.dot_dimension_numbers<[1], [0], [0], [1], [0, 0, 1, 1], [], []>} : vector<2x32xf32>, vector<32x96xf32>, vector<2x96xf32> -> vector<2x96xf32>
    %175 = vector.extract_strided_slice %173 {offsets = [0, 0], sizes = [2, 32], strides = [1, 1]} : vector<2x96xf32> to vector<2x32xf32>
    %176 = vector.extract_strided_slice %174 {offsets = [0, 0], sizes = [2, 32], strides = [1, 1]} : vector<2x96xf32> to vector<2x32xf32>
    %177 = arith.addf %175, %176 : vector<2x32xf32>
    %178 = arith.negf %177 : vector<2x32xf32>
    %179 = math.exp %178 : vector<2x32xf32>
    %cst_64 = arith.constant 1.000000e+00 : f32
    %180 = vector.broadcast %cst_64 : f32 to vector<2x32xf32>
    %181 = arith.addf %180, %179 : vector<2x32xf32>
    %182 = arith.divf %180, %181 : vector<2x32xf32>
    %183 = vector.extract_strided_slice %173 {offsets = [0, 32], sizes = [2, 32], strides = [1, 1]} : vector<2x96xf32> to vector<2x32xf32>
    %184 = vector.extract_strided_slice %174 {offsets = [0, 32], sizes = [2, 32], strides = [1, 1]} : vector<2x96xf32> to vector<2x32xf32>
    %185 = arith.addf %183, %184 : vector<2x32xf32>
    %186 = arith.negf %185 : vector<2x32xf32>
    %187 = math.exp %186 : vector<2x32xf32>
    %cst_65 = arith.constant 1.000000e+00 : f32
    %188 = vector.broadcast %cst_65 : f32 to vector<2x32xf32>
    %189 = arith.addf %188, %187 : vector<2x32xf32>
    %190 = arith.divf %188, %189 : vector<2x32xf32>
    %191 = vector.extract_strided_slice %173 {offsets = [0, 64], sizes = [2, 32], strides = [1, 1]} : vector<2x96xf32> to vector<2x32xf32>
    %192 = vector.extract_strided_slice %174 {offsets = [0, 64], sizes = [2, 32], strides = [1, 1]} : vector<2x96xf32> to vector<2x32xf32>
    %193 = vector.broadcast %15 : vector<1x32xf32> to vector<2x32xf32>
    %194 = arith.addf %192, %193 : vector<2x32xf32>
    %195 = arith.mulf %182, %194 : vector<2x32xf32>
    %196 = arith.addf %191, %195 : vector<2x32xf32>
    %197 = math.tanh %196 : vector<2x32xf32>
    %cst_66 = arith.constant 1.000000e+00 : f32
    %198 = vector.broadcast %cst_66 : f32 to vector<2x32xf32>
    %199 = arith.subf %198, %190 : vector<2x32xf32>
    %200 = arith.mulf %199, %197 : vector<2x32xf32>
    %201 = arith.mulf %190, %116 : vector<2x32xf32>
    %202 = arith.addf %200, %201 : vector<2x32xf32>
    %203 = vector.shape_cast %171 : vector<2x1xi1> to vector<2x1xi1>
    %204 = vector.broadcast %203 : vector<2x1xi1> to vector<2x32xi1>
    %205 = arith.select %204, %202, %116 : vector<2x32xi1>, vector<2x32xf32>
    %cst_67 = arith.constant 0.000000e+00 : f32
    %206 = vector.shape_cast %171 : vector<2x1xi1> to vector<2x1xi1>
    %207 = vector.broadcast %206 : vector<2x1xi1> to vector<2x32xi1>
    %208 = vector.broadcast %cst_67 : f32 to vector<2x32xf32>
    %209 = arith.select %207, %205, %208 : vector<2x32xi1>, vector<2x32xf32>
    %c0_68 = arith.constant 0 : index
    %c6 = arith.constant 6 : index
    %c0_69 = arith.constant 0 : index
    %210 = vector.load %arg9[%c0_68, %c6, %c0_69] : memref<2x8x32xf32, #tpu.memory_space<vmem>>, vector<2x1x32xf32>
    %211 = vector.shape_cast %210 : vector<2x1x32xf32> to vector<2x32xf32>
    %212 = vector.shape_cast %209 : vector<2x32xf32> to vector<2x1x32xf32>
    tpu.vector_store %arg9[%c0_68, %c6, %c0_69], %212 {strides = array<i32>} : memref<2x8x32xf32, #tpu.memory_space<vmem>>, vector<2x1x32xf32>,
    %c2_i32 = arith.constant 2 : i32
    %213 = arith.addi %34, %c2_i32 : i32
    %214 = vector.broadcast %213 : i32 to vector<2x1xi32>
    %215 = arith.cmpi slt, %214, %3 : vector<2x1xi32>
    %216 = vector.extract_strided_slice %25 {offsets = [0, 2, 0], sizes = [2, 1, 96], strides = [1, 1, 1]} : vector<2x8x96xf32> to vector<2x1x96xf32>
    %217 = vector.shape_cast %216 : vector<2x1x96xf32> to vector<2x96xf32>
    %cst_70 = arith.constant dense<0.000000e+00> : vector<2x96xf32>
    %218 = tpu.matmul %160, %9, %cst_70 {dimension_numbers = #tpu.dot_dimension_numbers<[1], [0], [0], [1], [0, 0, 1, 1], [], []>} : vector<2x32xf32>, vector<32x96xf32>, vector<2x96xf32> -> vector<2x96xf32>
    %219 = vector.extract_strided_slice %217 {offsets = [0, 0], sizes = [2, 32], strides = [1, 1]} : vector<2x96xf32> to vector<2x32xf32>
    %220 = vector.extract_strided_slice %218 {offsets = [0, 0], sizes = [2, 32], strides = [1, 1]} : vector<2x96xf32> to vector<2x32xf32>
    %221 = arith.addf %219, %220 : vector<2x32xf32>
    %222 = arith.negf %221 : vector<2x32xf32>
    %223 = math.exp %222 : vector<2x32xf32>
    %cst_71 = arith.constant 1.000000e+00 : f32
    %224 = vector.broadcast %cst_71 : f32 to vector<2x32xf32>
    %225 = arith.addf %224, %223 : vector<2x32xf32>
    %226 = arith.divf %224, %225 : vector<2x32xf32>
    %227 = vector.extract_strided_slice %217 {offsets = [0, 32], sizes = [2, 32], strides = [1, 1]} : vector<2x96xf32> to vector<2x32xf32>
    %228 = vector.extract_strided_slice %218 {offsets = [0, 32], sizes = [2, 32], strides = [1, 1]} : vector<2x96xf32> to vector<2x32xf32>
    %229 = arith.addf %227, %228 : vector<2x32xf32>
    %230 = arith.negf %229 : vector<2x32xf32>
    %231 = math.exp %230 : vector<2x32xf32>
    %cst_72 = arith.constant 1.000000e+00 : f32
    %232 = vector.broadcast %cst_72 : f32 to vector<2x32xf32>
    %233 = arith.addf %232, %231 : vector<2x32xf32>
    %234 = arith.divf %232, %233 : vector<2x32xf32>
    %235 = vector.extract_strided_slice %217 {offsets = [0, 64], sizes = [2, 32], strides = [1, 1]} : vector<2x96xf32> to vector<2x32xf32>
    %236 = vector.extract_strided_slice %218 {offsets = [0, 64], sizes = [2, 32], strides = [1, 1]} : vector<2x96xf32> to vector<2x32xf32>
    %237 = vector.broadcast %13 : vector<1x32xf32> to vector<2x32xf32>
    %238 = arith.addf %236, %237 : vector<2x32xf32>
    %239 = arith.mulf %226, %238 : vector<2x32xf32>
    %240 = arith.addf %235, %239 : vector<2x32xf32>
    %241 = math.tanh %240 : vector<2x32xf32>
    %cst_73 = arith.constant 1.000000e+00 : f32
    %242 = vector.broadcast %cst_73 : f32 to vector<2x32xf32>
    %243 = arith.subf %242, %234 : vector<2x32xf32>
    %244 = arith.mulf %243, %241 : vector<2x32xf32>
    %245 = arith.mulf %234, %160 : vector<2x32xf32>
    %246 = arith.addf %244, %245 : vector<2x32xf32>
    %247 = vector.shape_cast %215 : vector<2x1xi1> to vector<2x1xi1>
    %248 = vector.broadcast %247 : vector<2x1xi1> to vector<2x32xi1>
    %249 = arith.select %248, %246, %160 : vector<2x32xi1>, vector<2x32xf32>
    %cst_74 = arith.constant 0.000000e+00 : f32
    %250 = vector.shape_cast %215 : vector<2x1xi1> to vector<2x1xi1>
    %251 = vector.broadcast %250 : vector<2x1xi1> to vector<2x32xi1>
    %252 = vector.broadcast %cst_74 : f32 to vector<2x32xf32>
    %253 = arith.select %251, %249, %252 : vector<2x32xi1>, vector<2x32xf32>
    %c0_75 = arith.constant 0 : index
    %c2 = arith.constant 2 : index
    %c0_76 = arith.constant 0 : index
    %254 = vector.load %arg8[%c0_75, %c2, %c0_76] : memref<2x8x32xf32, #tpu.memory_space<vmem>>, vector<2x1x32xf32>
    %255 = vector.shape_cast %254 : vector<2x1x32xf32> to vector<2x32xf32>
    %256 = vector.shape_cast %253 : vector<2x32xf32> to vector<2x1x32xf32>
    tpu.vector_store %arg8[%c0_75, %c2, %c0_76], %256 {strides = array<i32>} : memref<2x8x32xf32, #tpu.memory_space<vmem>>, vector<2x1x32xf32>,
    %c2_i32_77 = arith.constant 2 : i32
    %257 = arith.addi %34, %c2_i32_77 : i32
    %c7_i32_78 = arith.constant 7 : i32
    %258 = arith.subi %c7_i32_78, %257 : i32
    %259 = vector.broadcast %258 : i32 to vector<2x1xi32>
    %260 = arith.cmpi slt, %259, %3 : vector<2x1xi32>
    %261 = vector.extract_strided_slice %31 {offsets = [0, 5, 0], sizes = [2, 1, 96], strides = [1, 1, 1]} : vector<2x8x96xf32> to vector<2x1x96xf32>
    %262 = vector.shape_cast %261 : vector<2x1x96xf32> to vector<2x96xf32>
    %cst_79 = arith.constant dense<0.000000e+00> : vector<2x96xf32>
    %263 = tpu.matmul %205, %11, %cst_79 {dimension_numbers = #tpu.dot_dimension_numbers<[1], [0], [0], [1], [0, 0, 1, 1], [], []>} : vector<2x32xf32>, vector<32x96xf32>, vector<2x96xf32> -> vector<2x96xf32>
    %264 = vector.extract_strided_slice %262 {offsets = [0, 0], sizes = [2, 32], strides = [1, 1]} : vector<2x96xf32> to vector<2x32xf32>
    %265 = vector.extract_strided_slice %263 {offsets = [0, 0], sizes = [2, 32], strides = [1, 1]} : vector<2x96xf32> to vector<2x32xf32>
    %266 = arith.addf %264, %265 : vector<2x32xf32>
    %267 = arith.negf %266 : vector<2x32xf32>
    %268 = math.exp %267 : vector<2x32xf32>
    %cst_80 = arith.constant 1.000000e+00 : f32
    %269 = vector.broadcast %cst_80 : f32 to vector<2x32xf32>
    %270 = arith.addf %269, %268 : vector<2x32xf32>
    %271 = arith.divf %269, %270 : vector<2x32xf32>
    %272 = vector.extract_strided_slice %262 {offsets = [0, 32], sizes = [2, 32], strides = [1, 1]} : vector<2x96xf32> to vector<2x32xf32>
    %273 = vector.extract_strided_slice %263 {offsets = [0, 32], sizes = [2, 32], strides = [1, 1]} : vector<2x96xf32> to vector<2x32xf32>
    %274 = arith.addf %272, %273 : vector<2x32xf32>
    %275 = arith.negf %274 : vector<2x32xf32>
    %276 = math.exp %275 : vector<2x32xf32>
    %cst_81 = arith.constant 1.000000e+00 : f32
    %277 = vector.broadcast %cst_81 : f32 to vector<2x32xf32>
    %278 = arith.addf %277, %276 : vector<2x32xf32>
    %279 = arith.divf %277, %278 : vector<2x32xf32>
    %280 = vector.extract_strided_slice %262 {offsets = [0, 64], sizes = [2, 32], strides = [1, 1]} : vector<2x96xf32> to vector<2x32xf32>
    %281 = vector.extract_strided_slice %263 {offsets = [0, 64], sizes = [2, 32], strides = [1, 1]} : vector<2x96xf32> to vector<2x32xf32>
    %282 = vector.broadcast %15 : vector<1x32xf32> to vector<2x32xf32>
    %283 = arith.addf %281, %282 : vector<2x32xf32>
    %284 = arith.mulf %271, %283 : vector<2x32xf32>
    %285 = arith.addf %280, %284 : vector<2x32xf32>
    %286 = math.tanh %285 : vector<2x32xf32>
    %cst_82 = arith.constant 1.000000e+00 : f32
    %287 = vector.broadcast %cst_82 : f32 to vector<2x32xf32>
    %288 = arith.subf %287, %279 : vector<2x32xf32>
    %289 = arith.mulf %288, %286 : vector<2x32xf32>
    %290 = arith.mulf %279, %205 : vector<2x32xf32>
    %291 = arith.addf %289, %290 : vector<2x32xf32>
    %292 = vector.shape_cast %260 : vector<2x1xi1> to vector<2x1xi1>
    %293 = vector.broadcast %292 : vector<2x1xi1> to vector<2x32xi1>
    %294 = arith.select %293, %291, %205 : vector<2x32xi1>, vector<2x32xf32>
    %cst_83 = arith.constant 0.000000e+00 : f32
    %295 = vector.shape_cast %260 : vector<2x1xi1> to vector<2x1xi1>
    %296 = vector.broadcast %295 : vector<2x1xi1> to vector<2x32xi1>
    %297 = vector.broadcast %cst_83 : f32 to vector<2x32xf32>
    %298 = arith.select %296, %294, %297 : vector<2x32xi1>, vector<2x32xf32>
    %c0_84 = arith.constant 0 : index
    %c5 = arith.constant 5 : index
    %c0_85 = arith.constant 0 : index
    %299 = vector.load %arg9[%c0_84, %c5, %c0_85] : memref<2x8x32xf32, #tpu.memory_space<vmem>>, vector<2x1x32xf32>
    %300 = vector.shape_cast %299 : vector<2x1x32xf32> to vector<2x32xf32>
    %301 = vector.shape_cast %298 : vector<2x32xf32> to vector<2x1x32xf32>
    tpu.vector_store %arg9[%c0_84, %c5, %c0_85], %301 {strides = array<i32>} : memref<2x8x32xf32, #tpu.memory_space<vmem>>, vector<2x1x32xf32>,
    %c3_i32 = arith.constant 3 : i32
    %302 = arith.addi %34, %c3_i32 : i32
    %303 = vector.broadcast %302 : i32 to vector<2x1xi32>
    %304 = arith.cmpi slt, %303, %3 : vector<2x1xi32>
    %305 = vector.extract_strided_slice %25 {offsets = [0, 3, 0], sizes = [2, 1, 96], strides = [1, 1, 1]} : vector<2x8x96xf32> to vector<2x1x96xf32>
    %306 = vector.shape_cast %305 : vector<2x1x96xf32> to vector<2x96xf32>
    %cst_86 = arith.constant dense<0.000000e+00> : vector<2x96xf32>
    %307 = tpu.matmul %249, %9, %cst_86 {dimension_numbers = #tpu.dot_dimension_numbers<[1], [0], [0], [1], [0, 0, 1, 1], [], []>} : vector<2x32xf32>, vector<32x96xf32>, vector<2x96xf32> -> vector<2x96xf32>
    %308 = vector.extract_strided_slice %306 {offsets = [0, 0], sizes = [2, 32], strides = [1, 1]} : vector<2x96xf32> to vector<2x32xf32>
    %309 = vector.extract_strided_slice %307 {offsets = [0, 0], sizes = [2, 32], strides = [1, 1]} : vector<2x96xf32> to vector<2x32xf32>
    %310 = arith.addf %308, %309 : vector<2x32xf32>
    %311 = arith.negf %310 : vector<2x32xf32>
    %312 = math.exp %311 : vector<2x32xf32>
    %cst_87 = arith.constant 1.000000e+00 : f32
    %313 = vector.broadcast %cst_87 : f32 to vector<2x32xf32>
    %314 = arith.addf %313, %312 : vector<2x32xf32>
    %315 = arith.divf %313, %314 : vector<2x32xf32>
    %316 = vector.extract_strided_slice %306 {offsets = [0, 32], sizes = [2, 32], strides = [1, 1]} : vector<2x96xf32> to vector<2x32xf32>
    %317 = vector.extract_strided_slice %307 {offsets = [0, 32], sizes = [2, 32], strides = [1, 1]} : vector<2x96xf32> to vector<2x32xf32>
    %318 = arith.addf %316, %317 : vector<2x32xf32>
    %319 = arith.negf %318 : vector<2x32xf32>
    %320 = math.exp %319 : vector<2x32xf32>
    %cst_88 = arith.constant 1.000000e+00 : f32
    %321 = vector.broadcast %cst_88 : f32 to vector<2x32xf32>
    %322 = arith.addf %321, %320 : vector<2x32xf32>
    %323 = arith.divf %321, %322 : vector<2x32xf32>
    %324 = vector.extract_strided_slice %306 {offsets = [0, 64], sizes = [2, 32], strides = [1, 1]} : vector<2x96xf32> to vector<2x32xf32>
    %325 = vector.extract_strided_slice %307 {offsets = [0, 64], sizes = [2, 32], strides = [1, 1]} : vector<2x96xf32> to vector<2x32xf32>
    %326 = vector.broadcast %13 : vector<1x32xf32> to vector<2x32xf32>
    %327 = arith.addf %325, %326 : vector<2x32xf32>
    %328 = arith.mulf %315, %327 : vector<2x32xf32>
    %329 = arith.addf %324, %328 : vector<2x32xf32>
    %330 = math.tanh %329 : vector<2x32xf32>
    %cst_89 = arith.constant 1.000000e+00 : f32
    %331 = vector.broadcast %cst_89 : f32 to vector<2x32xf32>
    %332 = arith.subf %331, %323 : vector<2x32xf32>
    %333 = arith.mulf %332, %330 : vector<2x32xf32>
    %334 = arith.mulf %323, %249 : vector<2x32xf32>
    %335 = arith.addf %333, %334 : vector<2x32xf32>
    %336 = vector.shape_cast %304 : vector<2x1xi1> to vector<2x1xi1>
    %337 = vector.broadcast %336 : vector<2x1xi1> to vector<2x32xi1>
    %338 = arith.select %337, %335, %249 : vector<2x32xi1>, vector<2x32xf32>
    %cst_90 = arith.constant 0.000000e+00 : f32
    %339 = vector.shape_cast %304 : vector<2x1xi1> to vector<2x1xi1>
    %340 = vector.broadcast %339 : vector<2x1xi1> to vector<2x32xi1>
    %341 = vector.broadcast %cst_90 : f32 to vector<2x32xf32>
    %342 = arith.select %340, %338, %341 : vector<2x32xi1>, vector<2x32xf32>
    %c0_91 = arith.constant 0 : index
    %c3 = arith.constant 3 : index
    %c0_92 = arith.constant 0 : index
    %343 = vector.load %arg8[%c0_91, %c3, %c0_92] : memref<2x8x32xf32, #tpu.memory_space<vmem>>, vector<2x1x32xf32>
    %344 = vector.shape_cast %343 : vector<2x1x32xf32> to vector<2x32xf32>
    %345 = vector.shape_cast %342 : vector<2x32xf32> to vector<2x1x32xf32>
    tpu.vector_store %arg8[%c0_91, %c3, %c0_92], %345 {strides = array<i32>} : memref<2x8x32xf32, #tpu.memory_space<vmem>>, vector<2x1x32xf32>,
    %c3_i32_93 = arith.constant 3 : i32
    %346 = arith.addi %34, %c3_i32_93 : i32
    %c7_i32_94 = arith.constant 7 : i32
    %347 = arith.subi %c7_i32_94, %346 : i32
    %348 = vector.broadcast %347 : i32 to vector<2x1xi32>
    %349 = arith.cmpi slt, %348, %3 : vector<2x1xi32>
    %350 = vector.extract_strided_slice %31 {offsets = [0, 4, 0], sizes = [2, 1, 96], strides = [1, 1, 1]} : vector<2x8x96xf32> to vector<2x1x96xf32>
    %351 = vector.shape_cast %350 : vector<2x1x96xf32> to vector<2x96xf32>
    %cst_95 = arith.constant dense<0.000000e+00> : vector<2x96xf32>
    %352 = tpu.matmul %294, %11, %cst_95 {dimension_numbers = #tpu.dot_dimension_numbers<[1], [0], [0], [1], [0, 0, 1, 1], [], []>} : vector<2x32xf32>, vector<32x96xf32>, vector<2x96xf32> -> vector<2x96xf32>
    %353 = vector.extract_strided_slice %351 {offsets = [0, 0], sizes = [2, 32], strides = [1, 1]} : vector<2x96xf32> to vector<2x32xf32>
    %354 = vector.extract_strided_slice %352 {offsets = [0, 0], sizes = [2, 32], strides = [1, 1]} : vector<2x96xf32> to vector<2x32xf32>
    %355 = arith.addf %353, %354 : vector<2x32xf32>
    %356 = arith.negf %355 : vector<2x32xf32>
    %357 = math.exp %356 : vector<2x32xf32>
    %cst_96 = arith.constant 1.000000e+00 : f32
    %358 = vector.broadcast %cst_96 : f32 to vector<2x32xf32>
    %359 = arith.addf %358, %357 : vector<2x32xf32>
    %360 = arith.divf %358, %359 : vector<2x32xf32>
    %361 = vector.extract_strided_slice %351 {offsets = [0, 32], sizes = [2, 32], strides = [1, 1]} : vector<2x96xf32> to vector<2x32xf32>
    %362 = vector.extract_strided_slice %352 {offsets = [0, 32], sizes = [2, 32], strides = [1, 1]} : vector<2x96xf32> to vector<2x32xf32>
    %363 = arith.addf %361, %362 : vector<2x32xf32>
    %364 = arith.negf %363 : vector<2x32xf32>
    %365 = math.exp %364 : vector<2x32xf32>
    %cst_97 = arith.constant 1.000000e+00 : f32
    %366 = vector.broadcast %cst_97 : f32 to vector<2x32xf32>
    %367 = arith.addf %366, %365 : vector<2x32xf32>
    %368 = arith.divf %366, %367 : vector<2x32xf32>
    %369 = vector.extract_strided_slice %351 {offsets = [0, 64], sizes = [2, 32], strides = [1, 1]} : vector<2x96xf32> to vector<2x32xf32>
    %370 = vector.extract_strided_slice %352 {offsets = [0, 64], sizes = [2, 32], strides = [1, 1]} : vector<2x96xf32> to vector<2x32xf32>
    %371 = vector.broadcast %15 : vector<1x32xf32> to vector<2x32xf32>
    %372 = arith.addf %370, %371 : vector<2x32xf32>
    %373 = arith.mulf %360, %372 : vector<2x32xf32>
    %374 = arith.addf %369, %373 : vector<2x32xf32>
    %375 = math.tanh %374 : vector<2x32xf32>
    %cst_98 = arith.constant 1.000000e+00 : f32
    %376 = vector.broadcast %cst_98 : f32 to vector<2x32xf32>
    %377 = arith.subf %376, %368 : vector<2x32xf32>
    %378 = arith.mulf %377, %375 : vector<2x32xf32>
    %379 = arith.mulf %368, %294 : vector<2x32xf32>
    %380 = arith.addf %378, %379 : vector<2x32xf32>
    %381 = vector.shape_cast %349 : vector<2x1xi1> to vector<2x1xi1>
    %382 = vector.broadcast %381 : vector<2x1xi1> to vector<2x32xi1>
    %383 = arith.select %382, %380, %294 : vector<2x32xi1>, vector<2x32xf32>
    %cst_99 = arith.constant 0.000000e+00 : f32
    %384 = vector.shape_cast %349 : vector<2x1xi1> to vector<2x1xi1>
    %385 = vector.broadcast %384 : vector<2x1xi1> to vector<2x32xi1>
    %386 = vector.broadcast %cst_99 : f32 to vector<2x32xf32>
    %387 = arith.select %385, %383, %386 : vector<2x32xi1>, vector<2x32xf32>
    %c0_100 = arith.constant 0 : index
    %c4 = arith.constant 4 : index
    %c0_101 = arith.constant 0 : index
    %388 = vector.load %arg9[%c0_100, %c4, %c0_101] : memref<2x8x32xf32, #tpu.memory_space<vmem>>, vector<2x1x32xf32>
    %389 = vector.shape_cast %388 : vector<2x1x32xf32> to vector<2x32xf32>
    %390 = vector.shape_cast %387 : vector<2x32xf32> to vector<2x1x32xf32>
    tpu.vector_store %arg9[%c0_100, %c4, %c0_101], %390 {strides = array<i32>} : memref<2x8x32xf32, #tpu.memory_space<vmem>>, vector<2x1x32xf32>,
    %c4_i32 = arith.constant 4 : i32
    %391 = arith.addi %34, %c4_i32 : i32
    %392 = vector.broadcast %391 : i32 to vector<2x1xi32>
    %393 = arith.cmpi slt, %392, %3 : vector<2x1xi32>
    %394 = vector.extract_strided_slice %25 {offsets = [0, 4, 0], sizes = [2, 1, 96], strides = [1, 1, 1]} : vector<2x8x96xf32> to vector<2x1x96xf32>
    %395 = vector.shape_cast %394 : vector<2x1x96xf32> to vector<2x96xf32>
    %cst_102 = arith.constant dense<0.000000e+00> : vector<2x96xf32>
    %396 = tpu.matmul %338, %9, %cst_102 {dimension_numbers = #tpu.dot_dimension_numbers<[1], [0], [0], [1], [0, 0, 1, 1], [], []>} : vector<2x32xf32>, vector<32x96xf32>, vector<2x96xf32> -> vector<2x96xf32>
    %397 = vector.extract_strided_slice %395 {offsets = [0, 0], sizes = [2, 32], strides = [1, 1]} : vector<2x96xf32> to vector<2x32xf32>
    %398 = vector.extract_strided_slice %396 {offsets = [0, 0], sizes = [2, 32], strides = [1, 1]} : vector<2x96xf32> to vector<2x32xf32>
    %399 = arith.addf %397, %398 : vector<2x32xf32>
    %400 = arith.negf %399 : vector<2x32xf32>
    %401 = math.exp %400 : vector<2x32xf32>
    %cst_103 = arith.constant 1.000000e+00 : f32
    %402 = vector.broadcast %cst_103 : f32 to vector<2x32xf32>
    %403 = arith.addf %402, %401 : vector<2x32xf32>
    %404 = arith.divf %402, %403 : vector<2x32xf32>
    %405 = vector.extract_strided_slice %395 {offsets = [0, 32], sizes = [2, 32], strides = [1, 1]} : vector<2x96xf32> to vector<2x32xf32>
    %406 = vector.extract_strided_slice %396 {offsets = [0, 32], sizes = [2, 32], strides = [1, 1]} : vector<2x96xf32> to vector<2x32xf32>
    %407 = arith.addf %405, %406 : vector<2x32xf32>
    %408 = arith.negf %407 : vector<2x32xf32>
    %409 = math.exp %408 : vector<2x32xf32>
    %cst_104 = arith.constant 1.000000e+00 : f32
    %410 = vector.broadcast %cst_104 : f32 to vector<2x32xf32>
    %411 = arith.addf %410, %409 : vector<2x32xf32>
    %412 = arith.divf %410, %411 : vector<2x32xf32>
    %413 = vector.extract_strided_slice %395 {offsets = [0, 64], sizes = [2, 32], strides = [1, 1]} : vector<2x96xf32> to vector<2x32xf32>
    %414 = vector.extract_strided_slice %396 {offsets = [0, 64], sizes = [2, 32], strides = [1, 1]} : vector<2x96xf32> to vector<2x32xf32>
    %415 = vector.broadcast %13 : vector<1x32xf32> to vector<2x32xf32>
    %416 = arith.addf %414, %415 : vector<2x32xf32>
    %417 = arith.mulf %404, %416 : vector<2x32xf32>
    %418 = arith.addf %413, %417 : vector<2x32xf32>
    %419 = math.tanh %418 : vector<2x32xf32>
    %cst_105 = arith.constant 1.000000e+00 : f32
    %420 = vector.broadcast %cst_105 : f32 to vector<2x32xf32>
    %421 = arith.subf %420, %412 : vector<2x32xf32>
    %422 = arith.mulf %421, %419 : vector<2x32xf32>
    %423 = arith.mulf %412, %338 : vector<2x32xf32>
    %424 = arith.addf %422, %423 : vector<2x32xf32>
    %425 = vector.shape_cast %393 : vector<2x1xi1> to vector<2x1xi1>
    %426 = vector.broadcast %425 : vector<2x1xi1> to vector<2x32xi1>
    %427 = arith.select %426, %424, %338 : vector<2x32xi1>, vector<2x32xf32>
    %cst_106 = arith.constant 0.000000e+00 : f32
    %428 = vector.shape_cast %393 : vector<2x1xi1> to vector<2x1xi1>
    %429 = vector.broadcast %428 : vector<2x1xi1> to vector<2x32xi1>
    %430 = vector.broadcast %cst_106 : f32 to vector<2x32xf32>
    %431 = arith.select %429, %427, %430 : vector<2x32xi1>, vector<2x32xf32>
    %c0_107 = arith.constant 0 : index
    %c4_108 = arith.constant 4 : index
    %c0_109 = arith.constant 0 : index
    %432 = vector.load %arg8[%c0_107, %c4_108, %c0_109] : memref<2x8x32xf32, #tpu.memory_space<vmem>>, vector<2x1x32xf32>
    %433 = vector.shape_cast %432 : vector<2x1x32xf32> to vector<2x32xf32>
    %434 = vector.shape_cast %431 : vector<2x32xf32> to vector<2x1x32xf32>
    tpu.vector_store %arg8[%c0_107, %c4_108, %c0_109], %434 {strides = array<i32>} : memref<2x8x32xf32, #tpu.memory_space<vmem>>, vector<2x1x32xf32>,
    %c4_i32_110 = arith.constant 4 : i32
    %435 = arith.addi %34, %c4_i32_110 : i32
    %c7_i32_111 = arith.constant 7 : i32
    %436 = arith.subi %c7_i32_111, %435 : i32
    %437 = vector.broadcast %436 : i32 to vector<2x1xi32>
    %438 = arith.cmpi slt, %437, %3 : vector<2x1xi32>
    %439 = vector.extract_strided_slice %31 {offsets = [0, 3, 0], sizes = [2, 1, 96], strides = [1, 1, 1]} : vector<2x8x96xf32> to vector<2x1x96xf32>
    %440 = vector.shape_cast %439 : vector<2x1x96xf32> to vector<2x96xf32>
    %cst_112 = arith.constant dense<0.000000e+00> : vector<2x96xf32>
    %441 = tpu.matmul %383, %11, %cst_112 {dimension_numbers = #tpu.dot_dimension_numbers<[1], [0], [0], [1], [0, 0, 1, 1], [], []>} : vector<2x32xf32>, vector<32x96xf32>, vector<2x96xf32> -> vector<2x96xf32>
    %442 = vector.extract_strided_slice %440 {offsets = [0, 0], sizes = [2, 32], strides = [1, 1]} : vector<2x96xf32> to vector<2x32xf32>
    %443 = vector.extract_strided_slice %441 {offsets = [0, 0], sizes = [2, 32], strides = [1, 1]} : vector<2x96xf32> to vector<2x32xf32>
    %444 = arith.addf %442, %443 : vector<2x32xf32>
    %445 = arith.negf %444 : vector<2x32xf32>
    %446 = math.exp %445 : vector<2x32xf32>
    %cst_113 = arith.constant 1.000000e+00 : f32
    %447 = vector.broadcast %cst_113 : f32 to vector<2x32xf32>
    %448 = arith.addf %447, %446 : vector<2x32xf32>
    %449 = arith.divf %447, %448 : vector<2x32xf32>
    %450 = vector.extract_strided_slice %440 {offsets = [0, 32], sizes = [2, 32], strides = [1, 1]} : vector<2x96xf32> to vector<2x32xf32>
    %451 = vector.extract_strided_slice %441 {offsets = [0, 32], sizes = [2, 32], strides = [1, 1]} : vector<2x96xf32> to vector<2x32xf32>
    %452 = arith.addf %450, %451 : vector<2x32xf32>
    %453 = arith.negf %452 : vector<2x32xf32>
    %454 = math.exp %453 : vector<2x32xf32>
    %cst_114 = arith.constant 1.000000e+00 : f32
    %455 = vector.broadcast %cst_114 : f32 to vector<2x32xf32>
    %456 = arith.addf %455, %454 : vector<2x32xf32>
    %457 = arith.divf %455, %456 : vector<2x32xf32>
    %458 = vector.extract_strided_slice %440 {offsets = [0, 64], sizes = [2, 32], strides = [1, 1]} : vector<2x96xf32> to vector<2x32xf32>
    %459 = vector.extract_strided_slice %441 {offsets = [0, 64], sizes = [2, 32], strides = [1, 1]} : vector<2x96xf32> to vector<2x32xf32>
    %460 = vector.broadcast %15 : vector<1x32xf32> to vector<2x32xf32>
    %461 = arith.addf %459, %460 : vector<2x32xf32>
    %462 = arith.mulf %449, %461 : vector<2x32xf32>
    %463 = arith.addf %458, %462 : vector<2x32xf32>
    %464 = math.tanh %463 : vector<2x32xf32>
    %cst_115 = arith.constant 1.000000e+00 : f32
    %465 = vector.broadcast %cst_115 : f32 to vector<2x32xf32>
    %466 = arith.subf %465, %457 : vector<2x32xf32>
    %467 = arith.mulf %466, %464 : vector<2x32xf32>
    %468 = arith.mulf %457, %383 : vector<2x32xf32>
    %469 = arith.addf %467, %468 : vector<2x32xf32>
    %470 = vector.shape_cast %438 : vector<2x1xi1> to vector<2x1xi1>
    %471 = vector.broadcast %470 : vector<2x1xi1> to vector<2x32xi1>
    %472 = arith.select %471, %469, %383 : vector<2x32xi1>, vector<2x32xf32>
    %cst_116 = arith.constant 0.000000e+00 : f32
    %473 = vector.shape_cast %438 : vector<2x1xi1> to vector<2x1xi1>
    %474 = vector.broadcast %473 : vector<2x1xi1> to vector<2x32xi1>
    %475 = vector.broadcast %cst_116 : f32 to vector<2x32xf32>
    %476 = arith.select %474, %472, %475 : vector<2x32xi1>, vector<2x32xf32>
    %c0_117 = arith.constant 0 : index
    %c3_118 = arith.constant 3 : index
    %c0_119 = arith.constant 0 : index
    %477 = vector.load %arg9[%c0_117, %c3_118, %c0_119] : memref<2x8x32xf32, #tpu.memory_space<vmem>>, vector<2x1x32xf32>
    %478 = vector.shape_cast %477 : vector<2x1x32xf32> to vector<2x32xf32>
    %479 = vector.shape_cast %476 : vector<2x32xf32> to vector<2x1x32xf32>
    tpu.vector_store %arg9[%c0_117, %c3_118, %c0_119], %479 {strides = array<i32>} : memref<2x8x32xf32, #tpu.memory_space<vmem>>, vector<2x1x32xf32>,
    %c5_i32 = arith.constant 5 : i32
    %480 = arith.addi %34, %c5_i32 : i32
    %481 = vector.broadcast %480 : i32 to vector<2x1xi32>
    %482 = arith.cmpi slt, %481, %3 : vector<2x1xi32>
    %483 = vector.extract_strided_slice %25 {offsets = [0, 5, 0], sizes = [2, 1, 96], strides = [1, 1, 1]} : vector<2x8x96xf32> to vector<2x1x96xf32>
    %484 = vector.shape_cast %483 : vector<2x1x96xf32> to vector<2x96xf32>
    %cst_120 = arith.constant dense<0.000000e+00> : vector<2x96xf32>
    %485 = tpu.matmul %427, %9, %cst_120 {dimension_numbers = #tpu.dot_dimension_numbers<[1], [0], [0], [1], [0, 0, 1, 1], [], []>} : vector<2x32xf32>, vector<32x96xf32>, vector<2x96xf32> -> vector<2x96xf32>
    %486 = vector.extract_strided_slice %484 {offsets = [0, 0], sizes = [2, 32], strides = [1, 1]} : vector<2x96xf32> to vector<2x32xf32>
    %487 = vector.extract_strided_slice %485 {offsets = [0, 0], sizes = [2, 32], strides = [1, 1]} : vector<2x96xf32> to vector<2x32xf32>
    %488 = arith.addf %486, %487 : vector<2x32xf32>
    %489 = arith.negf %488 : vector<2x32xf32>
    %490 = math.exp %489 : vector<2x32xf32>
    %cst_121 = arith.constant 1.000000e+00 : f32
    %491 = vector.broadcast %cst_121 : f32 to vector<2x32xf32>
    %492 = arith.addf %491, %490 : vector<2x32xf32>
    %493 = arith.divf %491, %492 : vector<2x32xf32>
    %494 = vector.extract_strided_slice %484 {offsets = [0, 32], sizes = [2, 32], strides = [1, 1]} : vector<2x96xf32> to vector<2x32xf32>
    %495 = vector.extract_strided_slice %485 {offsets = [0, 32], sizes = [2, 32], strides = [1, 1]} : vector<2x96xf32> to vector<2x32xf32>
    %496 = arith.addf %494, %495 : vector<2x32xf32>
    %497 = arith.negf %496 : vector<2x32xf32>
    %498 = math.exp %497 : vector<2x32xf32>
    %cst_122 = arith.constant 1.000000e+00 : f32
    %499 = vector.broadcast %cst_122 : f32 to vector<2x32xf32>
    %500 = arith.addf %499, %498 : vector<2x32xf32>
    %501 = arith.divf %499, %500 : vector<2x32xf32>
    %502 = vector.extract_strided_slice %484 {offsets = [0, 64], sizes = [2, 32], strides = [1, 1]} : vector<2x96xf32> to vector<2x32xf32>
    %503 = vector.extract_strided_slice %485 {offsets = [0, 64], sizes = [2, 32], strides = [1, 1]} : vector<2x96xf32> to vector<2x32xf32>
    %504 = vector.broadcast %13 : vector<1x32xf32> to vector<2x32xf32>
    %505 = arith.addf %503, %504 : vector<2x32xf32>
    %506 = arith.mulf %493, %505 : vector<2x32xf32>
    %507 = arith.addf %502, %506 : vector<2x32xf32>
    %508 = math.tanh %507 : vector<2x32xf32>
    %cst_123 = arith.constant 1.000000e+00 : f32
    %509 = vector.broadcast %cst_123 : f32 to vector<2x32xf32>
    %510 = arith.subf %509, %501 : vector<2x32xf32>
    %511 = arith.mulf %510, %508 : vector<2x32xf32>
    %512 = arith.mulf %501, %427 : vector<2x32xf32>
    %513 = arith.addf %511, %512 : vector<2x32xf32>
    %514 = vector.shape_cast %482 : vector<2x1xi1> to vector<2x1xi1>
    %515 = vector.broadcast %514 : vector<2x1xi1> to vector<2x32xi1>
    %516 = arith.select %515, %513, %427 : vector<2x32xi1>, vector<2x32xf32>
    %cst_124 = arith.constant 0.000000e+00 : f32
    %517 = vector.shape_cast %482 : vector<2x1xi1> to vector<2x1xi1>
    %518 = vector.broadcast %517 : vector<2x1xi1> to vector<2x32xi1>
    %519 = vector.broadcast %cst_124 : f32 to vector<2x32xf32>
    %520 = arith.select %518, %516, %519 : vector<2x32xi1>, vector<2x32xf32>
    %c0_125 = arith.constant 0 : index
    %c5_126 = arith.constant 5 : index
    %c0_127 = arith.constant 0 : index
    %521 = vector.load %arg8[%c0_125, %c5_126, %c0_127] : memref<2x8x32xf32, #tpu.memory_space<vmem>>, vector<2x1x32xf32>
    %522 = vector.shape_cast %521 : vector<2x1x32xf32> to vector<2x32xf32>
    %523 = vector.shape_cast %520 : vector<2x32xf32> to vector<2x1x32xf32>
    tpu.vector_store %arg8[%c0_125, %c5_126, %c0_127], %523 {strides = array<i32>} : memref<2x8x32xf32, #tpu.memory_space<vmem>>, vector<2x1x32xf32>,
    %c5_i32_128 = arith.constant 5 : i32
    %524 = arith.addi %34, %c5_i32_128 : i32
    %c7_i32_129 = arith.constant 7 : i32
    %525 = arith.subi %c7_i32_129, %524 : i32
    %526 = vector.broadcast %525 : i32 to vector<2x1xi32>
    %527 = arith.cmpi slt, %526, %3 : vector<2x1xi32>
    %528 = vector.extract_strided_slice %31 {offsets = [0, 2, 0], sizes = [2, 1, 96], strides = [1, 1, 1]} : vector<2x8x96xf32> to vector<2x1x96xf32>
    %529 = vector.shape_cast %528 : vector<2x1x96xf32> to vector<2x96xf32>
    %cst_130 = arith.constant dense<0.000000e+00> : vector<2x96xf32>
    %530 = tpu.matmul %472, %11, %cst_130 {dimension_numbers = #tpu.dot_dimension_numbers<[1], [0], [0], [1], [0, 0, 1, 1], [], []>} : vector<2x32xf32>, vector<32x96xf32>, vector<2x96xf32> -> vector<2x96xf32>
    %531 = vector.extract_strided_slice %529 {offsets = [0, 0], sizes = [2, 32], strides = [1, 1]} : vector<2x96xf32> to vector<2x32xf32>
    %532 = vector.extract_strided_slice %530 {offsets = [0, 0], sizes = [2, 32], strides = [1, 1]} : vector<2x96xf32> to vector<2x32xf32>
    %533 = arith.addf %531, %532 : vector<2x32xf32>
    %534 = arith.negf %533 : vector<2x32xf32>
    %535 = math.exp %534 : vector<2x32xf32>
    %cst_131 = arith.constant 1.000000e+00 : f32
    %536 = vector.broadcast %cst_131 : f32 to vector<2x32xf32>
    %537 = arith.addf %536, %535 : vector<2x32xf32>
    %538 = arith.divf %536, %537 : vector<2x32xf32>
    %539 = vector.extract_strided_slice %529 {offsets = [0, 32], sizes = [2, 32], strides = [1, 1]} : vector<2x96xf32> to vector<2x32xf32>
    %540 = vector.extract_strided_slice %530 {offsets = [0, 32], sizes = [2, 32], strides = [1, 1]} : vector<2x96xf32> to vector<2x32xf32>
    %541 = arith.addf %539, %540 : vector<2x32xf32>
    %542 = arith.negf %541 : vector<2x32xf32>
    %543 = math.exp %542 : vector<2x32xf32>
    %cst_132 = arith.constant 1.000000e+00 : f32
    %544 = vector.broadcast %cst_132 : f32 to vector<2x32xf32>
    %545 = arith.addf %544, %543 : vector<2x32xf32>
    %546 = arith.divf %544, %545 : vector<2x32xf32>
    %547 = vector.extract_strided_slice %529 {offsets = [0, 64], sizes = [2, 32], strides = [1, 1]} : vector<2x96xf32> to vector<2x32xf32>
    %548 = vector.extract_strided_slice %530 {offsets = [0, 64], sizes = [2, 32], strides = [1, 1]} : vector<2x96xf32> to vector<2x32xf32>
    %549 = vector.broadcast %15 : vector<1x32xf32> to vector<2x32xf32>
    %550 = arith.addf %548, %549 : vector<2x32xf32>
    %551 = arith.mulf %538, %550 : vector<2x32xf32>
    %552 = arith.addf %547, %551 : vector<2x32xf32>
    %553 = math.tanh %552 : vector<2x32xf32>
    %cst_133 = arith.constant 1.000000e+00 : f32
    %554 = vector.broadcast %cst_133 : f32 to vector<2x32xf32>
    %555 = arith.subf %554, %546 : vector<2x32xf32>
    %556 = arith.mulf %555, %553 : vector<2x32xf32>
    %557 = arith.mulf %546, %472 : vector<2x32xf32>
    %558 = arith.addf %556, %557 : vector<2x32xf32>
    %559 = vector.shape_cast %527 : vector<2x1xi1> to vector<2x1xi1>
    %560 = vector.broadcast %559 : vector<2x1xi1> to vector<2x32xi1>
    %561 = arith.select %560, %558, %472 : vector<2x32xi1>, vector<2x32xf32>
    %cst_134 = arith.constant 0.000000e+00 : f32
    %562 = vector.shape_cast %527 : vector<2x1xi1> to vector<2x1xi1>
    %563 = vector.broadcast %562 : vector<2x1xi1> to vector<2x32xi1>
    %564 = vector.broadcast %cst_134 : f32 to vector<2x32xf32>
    %565 = arith.select %563, %561, %564 : vector<2x32xi1>, vector<2x32xf32>
    %c0_135 = arith.constant 0 : index
    %c2_136 = arith.constant 2 : index
    %c0_137 = arith.constant 0 : index
    %566 = vector.load %arg9[%c0_135, %c2_136, %c0_137] : memref<2x8x32xf32, #tpu.memory_space<vmem>>, vector<2x1x32xf32>
    %567 = vector.shape_cast %566 : vector<2x1x32xf32> to vector<2x32xf32>
    %568 = vector.shape_cast %565 : vector<2x32xf32> to vector<2x1x32xf32>
    tpu.vector_store %arg9[%c0_135, %c2_136, %c0_137], %568 {strides = array<i32>} : memref<2x8x32xf32, #tpu.memory_space<vmem>>, vector<2x1x32xf32>,
    %c6_i32 = arith.constant 6 : i32
    %569 = arith.addi %34, %c6_i32 : i32
    %570 = vector.broadcast %569 : i32 to vector<2x1xi32>
    %571 = arith.cmpi slt, %570, %3 : vector<2x1xi32>
    %572 = vector.extract_strided_slice %25 {offsets = [0, 6, 0], sizes = [2, 1, 96], strides = [1, 1, 1]} : vector<2x8x96xf32> to vector<2x1x96xf32>
    %573 = vector.shape_cast %572 : vector<2x1x96xf32> to vector<2x96xf32>
    %cst_138 = arith.constant dense<0.000000e+00> : vector<2x96xf32>
    %574 = tpu.matmul %516, %9, %cst_138 {dimension_numbers = #tpu.dot_dimension_numbers<[1], [0], [0], [1], [0, 0, 1, 1], [], []>} : vector<2x32xf32>, vector<32x96xf32>, vector<2x96xf32> -> vector<2x96xf32>
    %575 = vector.extract_strided_slice %573 {offsets = [0, 0], sizes = [2, 32], strides = [1, 1]} : vector<2x96xf32> to vector<2x32xf32>
    %576 = vector.extract_strided_slice %574 {offsets = [0, 0], sizes = [2, 32], strides = [1, 1]} : vector<2x96xf32> to vector<2x32xf32>
    %577 = arith.addf %575, %576 : vector<2x32xf32>
    %578 = arith.negf %577 : vector<2x32xf32>
    %579 = math.exp %578 : vector<2x32xf32>
    %cst_139 = arith.constant 1.000000e+00 : f32
    %580 = vector.broadcast %cst_139 : f32 to vector<2x32xf32>
    %581 = arith.addf %580, %579 : vector<2x32xf32>
    %582 = arith.divf %580, %581 : vector<2x32xf32>
    %583 = vector.extract_strided_slice %573 {offsets = [0, 32], sizes = [2, 32], strides = [1, 1]} : vector<2x96xf32> to vector<2x32xf32>
    %584 = vector.extract_strided_slice %574 {offsets = [0, 32], sizes = [2, 32], strides = [1, 1]} : vector<2x96xf32> to vector<2x32xf32>
    %585 = arith.addf %583, %584 : vector<2x32xf32>
    %586 = arith.negf %585 : vector<2x32xf32>
    %587 = math.exp %586 : vector<2x32xf32>
    %cst_140 = arith.constant 1.000000e+00 : f32
    %588 = vector.broadcast %cst_140 : f32 to vector<2x32xf32>
    %589 = arith.addf %588, %587 : vector<2x32xf32>
    %590 = arith.divf %588, %589 : vector<2x32xf32>
    %591 = vector.extract_strided_slice %573 {offsets = [0, 64], sizes = [2, 32], strides = [1, 1]} : vector<2x96xf32> to vector<2x32xf32>
    %592 = vector.extract_strided_slice %574 {offsets = [0, 64], sizes = [2, 32], strides = [1, 1]} : vector<2x96xf32> to vector<2x32xf32>
    %593 = vector.broadcast %13 : vector<1x32xf32> to vector<2x32xf32>
    %594 = arith.addf %592, %593 : vector<2x32xf32>
    %595 = arith.mulf %582, %594 : vector<2x32xf32>
    %596 = arith.addf %591, %595 : vector<2x32xf32>
    %597 = math.tanh %596 : vector<2x32xf32>
    %cst_141 = arith.constant 1.000000e+00 : f32
    %598 = vector.broadcast %cst_141 : f32 to vector<2x32xf32>
    %599 = arith.subf %598, %590 : vector<2x32xf32>
    %600 = arith.mulf %599, %597 : vector<2x32xf32>
    %601 = arith.mulf %590, %516 : vector<2x32xf32>
    %602 = arith.addf %600, %601 : vector<2x32xf32>
    %603 = vector.shape_cast %571 : vector<2x1xi1> to vector<2x1xi1>
    %604 = vector.broadcast %603 : vector<2x1xi1> to vector<2x32xi1>
    %605 = arith.select %604, %602, %516 : vector<2x32xi1>, vector<2x32xf32>
    %cst_142 = arith.constant 0.000000e+00 : f32
    %606 = vector.shape_cast %571 : vector<2x1xi1> to vector<2x1xi1>
    %607 = vector.broadcast %606 : vector<2x1xi1> to vector<2x32xi1>
    %608 = vector.broadcast %cst_142 : f32 to vector<2x32xf32>
    %609 = arith.select %607, %605, %608 : vector<2x32xi1>, vector<2x32xf32>
    %c0_143 = arith.constant 0 : index
    %c6_144 = arith.constant 6 : index
    %c0_145 = arith.constant 0 : index
    %610 = vector.load %arg8[%c0_143, %c6_144, %c0_145] : memref<2x8x32xf32, #tpu.memory_space<vmem>>, vector<2x1x32xf32>
    %611 = vector.shape_cast %610 : vector<2x1x32xf32> to vector<2x32xf32>
    %612 = vector.shape_cast %609 : vector<2x32xf32> to vector<2x1x32xf32>
    tpu.vector_store %arg8[%c0_143, %c6_144, %c0_145], %612 {strides = array<i32>} : memref<2x8x32xf32, #tpu.memory_space<vmem>>, vector<2x1x32xf32>,
    %c6_i32_146 = arith.constant 6 : i32
    %613 = arith.addi %34, %c6_i32_146 : i32
    %c7_i32_147 = arith.constant 7 : i32
    %614 = arith.subi %c7_i32_147, %613 : i32
    %615 = vector.broadcast %614 : i32 to vector<2x1xi32>
    %616 = arith.cmpi slt, %615, %3 : vector<2x1xi32>
    %617 = vector.extract_strided_slice %31 {offsets = [0, 1, 0], sizes = [2, 1, 96], strides = [1, 1, 1]} : vector<2x8x96xf32> to vector<2x1x96xf32>
    %618 = vector.shape_cast %617 : vector<2x1x96xf32> to vector<2x96xf32>
    %cst_148 = arith.constant dense<0.000000e+00> : vector<2x96xf32>
    %619 = tpu.matmul %561, %11, %cst_148 {dimension_numbers = #tpu.dot_dimension_numbers<[1], [0], [0], [1], [0, 0, 1, 1], [], []>} : vector<2x32xf32>, vector<32x96xf32>, vector<2x96xf32> -> vector<2x96xf32>
    %620 = vector.extract_strided_slice %618 {offsets = [0, 0], sizes = [2, 32], strides = [1, 1]} : vector<2x96xf32> to vector<2x32xf32>
    %621 = vector.extract_strided_slice %619 {offsets = [0, 0], sizes = [2, 32], strides = [1, 1]} : vector<2x96xf32> to vector<2x32xf32>
    %622 = arith.addf %620, %621 : vector<2x32xf32>
    %623 = arith.negf %622 : vector<2x32xf32>
    %624 = math.exp %623 : vector<2x32xf32>
    %cst_149 = arith.constant 1.000000e+00 : f32
    %625 = vector.broadcast %cst_149 : f32 to vector<2x32xf32>
    %626 = arith.addf %625, %624 : vector<2x32xf32>
    %627 = arith.divf %625, %626 : vector<2x32xf32>
    %628 = vector.extract_strided_slice %618 {offsets = [0, 32], sizes = [2, 32], strides = [1, 1]} : vector<2x96xf32> to vector<2x32xf32>
    %629 = vector.extract_strided_slice %619 {offsets = [0, 32], sizes = [2, 32], strides = [1, 1]} : vector<2x96xf32> to vector<2x32xf32>
    %630 = arith.addf %628, %629 : vector<2x32xf32>
    %631 = arith.negf %630 : vector<2x32xf32>
    %632 = math.exp %631 : vector<2x32xf32>
    %cst_150 = arith.constant 1.000000e+00 : f32
    %633 = vector.broadcast %cst_150 : f32 to vector<2x32xf32>
    %634 = arith.addf %633, %632 : vector<2x32xf32>
    %635 = arith.divf %633, %634 : vector<2x32xf32>
    %636 = vector.extract_strided_slice %618 {offsets = [0, 64], sizes = [2, 32], strides = [1, 1]} : vector<2x96xf32> to vector<2x32xf32>
    %637 = vector.extract_strided_slice %619 {offsets = [0, 64], sizes = [2, 32], strides = [1, 1]} : vector<2x96xf32> to vector<2x32xf32>
    %638 = vector.broadcast %15 : vector<1x32xf32> to vector<2x32xf32>
    %639 = arith.addf %637, %638 : vector<2x32xf32>
    %640 = arith.mulf %627, %639 : vector<2x32xf32>
    %641 = arith.addf %636, %640 : vector<2x32xf32>
    %642 = math.tanh %641 : vector<2x32xf32>
    %cst_151 = arith.constant 1.000000e+00 : f32
    %643 = vector.broadcast %cst_151 : f32 to vector<2x32xf32>
    %644 = arith.subf %643, %635 : vector<2x32xf32>
    %645 = arith.mulf %644, %642 : vector<2x32xf32>
    %646 = arith.mulf %635, %561 : vector<2x32xf32>
    %647 = arith.addf %645, %646 : vector<2x32xf32>
    %648 = vector.shape_cast %616 : vector<2x1xi1> to vector<2x1xi1>
    %649 = vector.broadcast %648 : vector<2x1xi1> to vector<2x32xi1>
    %650 = arith.select %649, %647, %561 : vector<2x32xi1>, vector<2x32xf32>
    %cst_152 = arith.constant 0.000000e+00 : f32
    %651 = vector.shape_cast %616 : vector<2x1xi1> to vector<2x1xi1>
    %652 = vector.broadcast %651 : vector<2x1xi1> to vector<2x32xi1>
    %653 = vector.broadcast %cst_152 : f32 to vector<2x32xf32>
    %654 = arith.select %652, %650, %653 : vector<2x32xi1>, vector<2x32xf32>
    %c0_153 = arith.constant 0 : index
    %c1_154 = arith.constant 1 : index
    %c0_155 = arith.constant 0 : index
    %655 = vector.load %arg9[%c0_153, %c1_154, %c0_155] : memref<2x8x32xf32, #tpu.memory_space<vmem>>, vector<2x1x32xf32>
    %656 = vector.shape_cast %655 : vector<2x1x32xf32> to vector<2x32xf32>
    %657 = vector.shape_cast %654 : vector<2x32xf32> to vector<2x1x32xf32>
    tpu.vector_store %arg9[%c0_153, %c1_154, %c0_155], %657 {strides = array<i32>} : memref<2x8x32xf32, #tpu.memory_space<vmem>>, vector<2x1x32xf32>,
    %c7_i32_156 = arith.constant 7 : i32
    %658 = arith.addi %34, %c7_i32_156 : i32
    %659 = vector.broadcast %658 : i32 to vector<2x1xi32>
    %660 = arith.cmpi slt, %659, %3 : vector<2x1xi32>
    %661 = vector.extract_strided_slice %25 {offsets = [0, 7, 0], sizes = [2, 1, 96], strides = [1, 1, 1]} : vector<2x8x96xf32> to vector<2x1x96xf32>
    %662 = vector.shape_cast %661 : vector<2x1x96xf32> to vector<2x96xf32>
    %cst_157 = arith.constant dense<0.000000e+00> : vector<2x96xf32>
    %663 = tpu.matmul %605, %9, %cst_157 {dimension_numbers = #tpu.dot_dimension_numbers<[1], [0], [0], [1], [0, 0, 1, 1], [], []>} : vector<2x32xf32>, vector<32x96xf32>, vector<2x96xf32> -> vector<2x96xf32>
    %664 = vector.extract_strided_slice %662 {offsets = [0, 0], sizes = [2, 32], strides = [1, 1]} : vector<2x96xf32> to vector<2x32xf32>
    %665 = vector.extract_strided_slice %663 {offsets = [0, 0], sizes = [2, 32], strides = [1, 1]} : vector<2x96xf32> to vector<2x32xf32>
    %666 = arith.addf %664, %665 : vector<2x32xf32>
    %667 = arith.negf %666 : vector<2x32xf32>
    %668 = math.exp %667 : vector<2x32xf32>
    %cst_158 = arith.constant 1.000000e+00 : f32
    %669 = vector.broadcast %cst_158 : f32 to vector<2x32xf32>
    %670 = arith.addf %669, %668 : vector<2x32xf32>
    %671 = arith.divf %669, %670 : vector<2x32xf32>
    %672 = vector.extract_strided_slice %662 {offsets = [0, 32], sizes = [2, 32], strides = [1, 1]} : vector<2x96xf32> to vector<2x32xf32>
    %673 = vector.extract_strided_slice %663 {offsets = [0, 32], sizes = [2, 32], strides = [1, 1]} : vector<2x96xf32> to vector<2x32xf32>
    %674 = arith.addf %672, %673 : vector<2x32xf32>
    %675 = arith.negf %674 : vector<2x32xf32>
    %676 = math.exp %675 : vector<2x32xf32>
    %cst_159 = arith.constant 1.000000e+00 : f32
    %677 = vector.broadcast %cst_159 : f32 to vector<2x32xf32>
    %678 = arith.addf %677, %676 : vector<2x32xf32>
    %679 = arith.divf %677, %678 : vector<2x32xf32>
    %680 = vector.extract_strided_slice %662 {offsets = [0, 64], sizes = [2, 32], strides = [1, 1]} : vector<2x96xf32> to vector<2x32xf32>
    %681 = vector.extract_strided_slice %663 {offsets = [0, 64], sizes = [2, 32], strides = [1, 1]} : vector<2x96xf32> to vector<2x32xf32>
    %682 = vector.broadcast %13 : vector<1x32xf32> to vector<2x32xf32>
    %683 = arith.addf %681, %682 : vector<2x32xf32>
    %684 = arith.mulf %671, %683 : vector<2x32xf32>
    %685 = arith.addf %680, %684 : vector<2x32xf32>
    %686 = math.tanh %685 : vector<2x32xf32>
    %cst_160 = arith.constant 1.000000e+00 : f32
    %687 = vector.broadcast %cst_160 : f32 to vector<2x32xf32>
    %688 = arith.subf %687, %679 : vector<2x32xf32>
    %689 = arith.mulf %688, %686 : vector<2x32xf32>
    %690 = arith.mulf %679, %605 : vector<2x32xf32>
    %691 = arith.addf %689, %690 : vector<2x32xf32>
    %692 = vector.shape_cast %660 : vector<2x1xi1> to vector<2x1xi1>
    %693 = vector.broadcast %692 : vector<2x1xi1> to vector<2x32xi1>
    %694 = arith.select %693, %691, %605 : vector<2x32xi1>, vector<2x32xf32>
    %cst_161 = arith.constant 0.000000e+00 : f32
    %695 = vector.shape_cast %660 : vector<2x1xi1> to vector<2x1xi1>
    %696 = vector.broadcast %695 : vector<2x1xi1> to vector<2x32xi1>
    %697 = vector.broadcast %cst_161 : f32 to vector<2x32xf32>
    %698 = arith.select %696, %694, %697 : vector<2x32xi1>, vector<2x32xf32>
    %c0_162 = arith.constant 0 : index
    %c7_163 = arith.constant 7 : index
    %c0_164 = arith.constant 0 : index
    %699 = vector.load %arg8[%c0_162, %c7_163, %c0_164] : memref<2x8x32xf32, #tpu.memory_space<vmem>>, vector<2x1x32xf32>
    %700 = vector.shape_cast %699 : vector<2x1x32xf32> to vector<2x32xf32>
    %701 = vector.shape_cast %698 : vector<2x32xf32> to vector<2x1x32xf32>
    tpu.vector_store %arg8[%c0_162, %c7_163, %c0_164], %701 {strides = array<i32>} : memref<2x8x32xf32, #tpu.memory_space<vmem>>, vector<2x1x32xf32>,
    %c7_i32_165 = arith.constant 7 : i32
    %702 = arith.addi %34, %c7_i32_165 : i32
    %c7_i32_166 = arith.constant 7 : i32
    %703 = arith.subi %c7_i32_166, %702 : i32
    %704 = vector.broadcast %703 : i32 to vector<2x1xi32>
    %705 = arith.cmpi slt, %704, %3 : vector<2x1xi32>
    %706 = vector.extract_strided_slice %31 {offsets = [0, 0, 0], sizes = [2, 1, 96], strides = [1, 1, 1]} : vector<2x8x96xf32> to vector<2x1x96xf32>
    %707 = vector.shape_cast %706 : vector<2x1x96xf32> to vector<2x96xf32>
    %cst_167 = arith.constant dense<0.000000e+00> : vector<2x96xf32>
    %708 = tpu.matmul %650, %11, %cst_167 {dimension_numbers = #tpu.dot_dimension_numbers<[1], [0], [0], [1], [0, 0, 1, 1], [], []>} : vector<2x32xf32>, vector<32x96xf32>, vector<2x96xf32> -> vector<2x96xf32>
    %709 = vector.extract_strided_slice %707 {offsets = [0, 0], sizes = [2, 32], strides = [1, 1]} : vector<2x96xf32> to vector<2x32xf32>
    %710 = vector.extract_strided_slice %708 {offsets = [0, 0], sizes = [2, 32], strides = [1, 1]} : vector<2x96xf32> to vector<2x32xf32>
    %711 = arith.addf %709, %710 : vector<2x32xf32>
    %712 = arith.negf %711 : vector<2x32xf32>
    %713 = math.exp %712 : vector<2x32xf32>
    %cst_168 = arith.constant 1.000000e+00 : f32
    %714 = vector.broadcast %cst_168 : f32 to vector<2x32xf32>
    %715 = arith.addf %714, %713 : vector<2x32xf32>
    %716 = arith.divf %714, %715 : vector<2x32xf32>
    %717 = vector.extract_strided_slice %707 {offsets = [0, 32], sizes = [2, 32], strides = [1, 1]} : vector<2x96xf32> to vector<2x32xf32>
    %718 = vector.extract_strided_slice %708 {offsets = [0, 32], sizes = [2, 32], strides = [1, 1]} : vector<2x96xf32> to vector<2x32xf32>
    %719 = arith.addf %717, %718 : vector<2x32xf32>
    %720 = arith.negf %719 : vector<2x32xf32>
    %721 = math.exp %720 : vector<2x32xf32>
    %cst_169 = arith.constant 1.000000e+00 : f32
    %722 = vector.broadcast %cst_169 : f32 to vector<2x32xf32>
    %723 = arith.addf %722, %721 : vector<2x32xf32>
    %724 = arith.divf %722, %723 : vector<2x32xf32>
    %725 = vector.extract_strided_slice %707 {offsets = [0, 64], sizes = [2, 32], strides = [1, 1]} : vector<2x96xf32> to vector<2x32xf32>
    %726 = vector.extract_strided_slice %708 {offsets = [0, 64], sizes = [2, 32], strides = [1, 1]} : vector<2x96xf32> to vector<2x32xf32>
    %727 = vector.broadcast %15 : vector<1x32xf32> to vector<2x32xf32>
    %728 = arith.addf %726, %727 : vector<2x32xf32>
    %729 = arith.mulf %716, %728 : vector<2x32xf32>
    %730 = arith.addf %725, %729 : vector<2x32xf32>
    %731 = math.tanh %730 : vector<2x32xf32>
    %cst_170 = arith.constant 1.000000e+00 : f32
    %732 = vector.broadcast %cst_170 : f32 to vector<2x32xf32>
    %733 = arith.subf %732, %724 : vector<2x32xf32>
    %734 = arith.mulf %733, %731 : vector<2x32xf32>
    %735 = arith.mulf %724, %650 : vector<2x32xf32>
    %736 = arith.addf %734, %735 : vector<2x32xf32>
    %737 = vector.shape_cast %705 : vector<2x1xi1> to vector<2x1xi1>
    %738 = vector.broadcast %737 : vector<2x1xi1> to vector<2x32xi1>
    %739 = arith.select %738, %736, %650 : vector<2x32xi1>, vector<2x32xf32>
    %cst_171 = arith.constant 0.000000e+00 : f32
    %740 = vector.shape_cast %705 : vector<2x1xi1> to vector<2x1xi1>
    %741 = vector.broadcast %740 : vector<2x1xi1> to vector<2x32xi1>
    %742 = vector.broadcast %cst_171 : f32 to vector<2x32xf32>
    %743 = arith.select %741, %739, %742 : vector<2x32xi1>, vector<2x32xf32>
    %c0_172 = arith.constant 0 : index
    %c0_173 = arith.constant 0 : index
    %c0_174 = arith.constant 0 : index
    %744 = vector.load %arg9[%c0_172, %c0_173, %c0_174] : memref<2x8x32xf32, #tpu.memory_space<vmem>>, vector<2x1x32xf32>
    %745 = vector.shape_cast %744 : vector<2x1x32xf32> to vector<2x32xf32>
    %746 = vector.shape_cast %743 : vector<2x32xf32> to vector<2x1x32xf32>
    tpu.vector_store %arg9[%c0_172, %c0_173, %c0_174], %746 {strides = array<i32>} : memref<2x8x32xf32, #tpu.memory_space<vmem>>, vector<2x1x32xf32>,
    %c0_175 = arith.constant 0 : index
    %c0_176 = arith.constant 0 : index
    %747 = vector.load %arg10[%c0_175, %c0_176] : memref<2x32xf32, #tpu.memory_space<vmem>>, vector<2x32xf32>
    tpu.vector_store %arg10[%c0_175, %c0_176], %694 {strides = array<i32>} : memref<2x32xf32, #tpu.memory_space<vmem>>, vector<2x32xf32>,
    %c0_177 = arith.constant 0 : index
    %c0_178 = arith.constant 0 : index
    %748 = vector.load %arg11[%c0_177, %c0_178] : memref<2x32xf32, #tpu.memory_space<vmem>>, vector<2x32xf32>
    tpu.vector_store %arg11[%c0_177, %c0_178], %739 {strides = array<i32>} : memref<2x32xf32, #tpu.memory_space<vmem>>, vector<2x32xf32>,
    return
  }
  func.func @transform_0(%arg0: i32) -> (i32, i32) {
    %c0_i32 = arith.constant 0 : i32
    %c0_i32_0 = arith.constant 0 : i32
    %c0_i32_1 = arith.constant 0 : i32
    return %c0_i32, %c0_i32_0 : i32, i32
  }
  func.func @transform_1(%arg0: i32) -> (i32, i32, i32) {
    %c0_i32 = arith.constant 0 : i32
    %c0_i32_0 = arith.constant 0 : i32
    %c0_i32_1 = arith.constant 0 : i32
    return %c0_i32, %arg0, %c0_i32_0 : i32, i32, i32
  }
  func.func @transform_2(%arg0: i32) -> (i32, i32, i32) {
    %c0_i32 = arith.constant 0 : i32
    %0 = arith.subi %c0_i32, %arg0 : i32
    %c0_i32_0 = arith.constant 0 : i32
    %c0_i32_1 = arith.constant 0 : i32
    %c0_i32_2 = arith.constant 0 : i32
    return %c0_i32_0, %0, %c0_i32_1 : i32, i32, i32
  }
  func.func @transform_3(%arg0: i32) -> (i32, i32, i32) {
    %c0_i32 = arith.constant 0 : i32
    %c0_i32_0 = arith.constant 0 : i32
    %c0_i32_1 = arith.constant 0 : i32
    %c0_i32_2 = arith.constant 0 : i32
    return %c0_i32, %c0_i32_0, %c0_i32_1 : i32, i32, i32
  }
  func.func @transform_4(%arg0: i32) -> (i32, i32, i32) {
    %c0_i32 = arith.constant 0 : i32
    %c0_i32_0 = arith.constant 0 : i32
    %c0_i32_1 = arith.constant 0 : i32
    %c0_i32_2 = arith.constant 0 : i32
    return %c0_i32, %c0_i32_0, %c0_i32_1 : i32, i32, i32
  }
  func.func @transform_5(%arg0: i32) -> (i32, i32, i32) {
    %c0_i32 = arith.constant 0 : i32
    %c0_i32_0 = arith.constant 0 : i32
    %c0_i32_1 = arith.constant 0 : i32
    %c0_i32_2 = arith.constant 0 : i32
    return %c0_i32, %c0_i32_0, %c0_i32_1 : i32, i32, i32
  }
  func.func @transform_6(%arg0: i32) -> (i32, i32, i32) {
    %c0_i32 = arith.constant 0 : i32
    %c0_i32_0 = arith.constant 0 : i32
    %c0_i32_1 = arith.constant 0 : i32
    %c0_i32_2 = arith.constant 0 : i32
    return %c0_i32, %c0_i32_0, %c0_i32_1 : i32, i32, i32
  }
  func.func @transform_7(%arg0: i32) -> (i32, i32, i32) {
    %c0_i32 = arith.constant 0 : i32
    %c0_i32_0 = arith.constant 0 : i32
    %c0_i32_1 = arith.constant 0 : i32
    return %c0_i32, %arg0, %c0_i32_0 : i32, i32, i32
  }
  func.func @transform_8(%arg0: i32) -> (i32, i32, i32) {
    %c0_i32 = arith.constant 0 : i32
    %0 = arith.subi %c0_i32, %arg0 : i32
    %c0_i32_0 = arith.constant 0 : i32
    %c0_i32_1 = arith.constant 0 : i32
    %c0_i32_2 = arith.constant 0 : i32
    return %c0_i32_0, %0, %c0_i32_1 : i32, i32, i32
  }
}

</mosaic_0001>

<bundles_post_ra>
// kernel: tpu_custom_call.1
= control target key start
LH: loop header
LB: loop body
LE: loop exit
PB: predicated region body
PF: predicated region fallthrough
CT: control target
= control target key end

     0   :  { %14 = vsyncpa [#allocation5], 0  ;;  %s4969_s0 = inlined_call_operand.vmem [shape: s32[2,1], index: 0, kind: input, shape index: {}]   ;;  %s4970_s1 = inlined_call_operand.hbm [shape: f32[2,8,16], index: 1, kind: input, shape index: {}]   ;;  %s4971_s2 = inlined_call_operand.hbm [shape: f32[2,8,16], index: 2, kind: input, shape index: {}]   ;;  %s4972_s3 = inlined_call_operand.hbm [shape: f32[2,16,96], index: 3, kind: input, shape index: {}]   ;;  %s4973_s4 = inlined_call_operand.hbm [shape: f32[2,32,96], index: 4, kind: input, shape index: {}]   ;;  %s4974_s5 = inlined_call_operand.vmem [shape: f32[2,1,96], index: 5, kind: input, shape index: {}]   ;;  %s4975_s6 = inlined_call_operand.vmem [shape: f32[2,1,32], index: 6, kind: input, shape index: {}]   ;;  %s4976_s7 = inlined_call_operand.hbm [shape: f32[2,8,32], index: 7, kind: output, shape index: {0}]   ;;  %s4977_s8 = inlined_call_operand.hbm [shape: f32[2,8,32], index: 8, kind: output, shape index: {1}]  }
   0x1   :  { %15 = vsyncpa [#allocation8], 0 }
   0x2   :  { %16 = vsyncpa [#allocation11], 0 }
   0x3   :  { %17 = vsyncpa [#allocation6], 0 }
   0x4   :  { %18 = vsyncpa [#allocation14], 0  ;;  %s4115_s27 = smov [#allocation7]   ;;  %s4116_s29 = smov [#allocation4]  }
   0x5   :  { %s41_s28 = sshll.u32 %s4115_s27, 4  ;;  %s26_s30 = sshll.u32 %s4116_s29, 4  ;;  %s42_s28 = int_to_ptr.vmem [resolvable:$true] %s41_s28  ;;  %s4176_s30 = int_to_ptr.vmem [resolvable:$true] %s26_s30 }
   0x6   :  { %s3973_s11 = scalar_lea.hbm %s4971_s2, 256 }
   0x7   :  { %p3974_p0 = scmp.ne.s32.totalorder %s4971_s2, %s3973_s11  ;;  %p3977_p1 = scmp.lt.u32.totalorder %s3973_s11, %s4971_s2 }
   0x9   :  { %p3979_p2 = pnand %p3977_p1, %p3974_p0 }
   0xb   :  { %3982 = shalt.err (!%p3979_p2)
}
   0xc   :  { %s3983_s16 = scalar_lea.vmem %s42_s28, 256  ;;  %p3988_p4 = scmp.lt.s32.totalorder %s42_s28, %s42_s28 }
   0xd   :  { %p3984_p3 = scmp.ne.s32.totalorder %s42_s28, %s3983_s16  ;;  %p3989_p5 = scmp.lt.s32.totalorder %s3983_s16, %s3983_s16 }
   0xf   :  { %p3990_p6 = por %p3989_p5, %p3988_p4 }
  0x11   :  { %p3991_p7 = pnand %p3990_p6, %p3984_p3 }
  0x13   :  { %3994 = shalt.err (!%p3991_p7)
}
  0x14   :  { %s4117_s17 = smov 128   ;;  %s4118_s18 = smov 8  }
  0x15   :  { %47 = dma.hbm_to_vmem [thread:$0]  %s4971_s2, 256, %s42_s28, [#allocation8], %s4117_s17, %s4117_s17, %s4118_s18  }
  0x16   :  { %s3995_s23 = scalar_lea.hbm %s4970_s1, 256 }
  0x17   :  { %p3996_p8 = scmp.ne.s32.totalorder %s4970_s1, %s3995_s23  ;;  %p3999_p9 = scmp.lt.u32.totalorder %s3995_s23, %s4970_s1 }
  0x19   :  { %p4001_p10 = pnand %p3999_p9, %p3996_p8 }
  0x1b   :  { %4004 = shalt.err (!%p4001_p10)
}
  0x1c   :  { %s4005_s29 = scalar_lea.vmem %s4176_s30, 256  ;;  %p4010_p12 = scmp.lt.s32.totalorder %s4176_s30, %s4176_s30 }
  0x1d   :  { %p4006_p11 = scmp.ne.s32.totalorder %s4176_s30, %s4005_s29  ;;  %p4011_p13 = scmp.lt.s32.totalorder %s4005_s29, %s4005_s29 }
  0x1f   :  { %p4012_p0 = por %p4011_p13, %p4010_p12 }
  0x21   :  { %p4013_p1 = pnand %p4012_p0, %p4006_p11 }
  0x23   :  { %4016 = shalt.err (!%p4013_p1)
}
  0x24   :  { %32 = dma.hbm_to_vmem [thread:$0]  %s4970_s1, 256, %s4176_s30, [#allocation5], %s4117_s17, %s4117_s17, %s4118_s18  }
  0x25   :  { %s4119_s9 = smov [#allocation9]   ;;  %s4120_s11 = smov [#allocation10]  }
  0x26   :  { %s53_s10 = sshll.u32 %s4119_s9, 4  ;;  %s65_s12 = sshll.u32 %s4120_s11, 4  ;;  %s54_s10 = int_to_ptr.vmem [resolvable:$true] %s53_s10  ;;  %s4213_s12 = int_to_ptr.vmem [resolvable:$true] %s65_s12 }
  0x27   :  { %s4017_s15 = scalar_lea.hbm %s4972_s3, 512 }
  0x28   :  { %p4018_p2 = scmp.ne.s32.totalorder %s4972_s3, %s4017_s15  ;;  %p4021_p3 = scmp.lt.u32.totalorder %s4017_s15, %s4972_s3 }
  0x2a   :  { %p4023_p4 = pnand %p4021_p3, %p4018_p2 }
  0x2c   :  { %4026 = shalt.err (!%p4023_p4)
}
  0x2d   :  { %s4027_s1 = scalar_lea.vmem %s54_s10, 512  ;;  %p4032_p6 = scmp.lt.s32.totalorder %s54_s10, %s54_s10 }
  0x2e   :  { %p4028_p5 = scmp.ne.s32.totalorder %s54_s10, %s4027_s1  ;;  %p4033_p7 = scmp.lt.s32.totalorder %s4027_s1, %s4027_s1 }
  0x30   :  { %p4034_p8 = por %p4033_p7, %p4032_p6 }
  0x32   :  { %p4035_p9 = pnand %p4034_p8, %p4028_p5 }
  0x34   :  { %4038 = shalt.err (!%p4035_p9)
}
  0x35   :  { %59 = dma.hbm_to_vmem [thread:$0]  %s4972_s3, 512, %s54_s10, [#allocation8], %s4117_s17, %s4117_s17, %s4118_s18  }
  0x36   :  { %s4039_s25 = scalar_lea.hbm %s4973_s4, 1024 }
  0x37   :  { %p4040_p10 = scmp.ne.s32.totalorder %s4973_s4, %s4039_s25  ;;  %p4043_p11 = scmp.lt.u32.totalorder %s4039_s25, %s4973_s4 }
  0x39   :  { %p4045_p12 = pnand %p4043_p11, %p4040_p10 }
  0x3b   :  { %4048 = shalt.err (!%p4045_p12)
}
  0x3c   :  { %s4049_s28 = scalar_lea.vmem %s4213_s12, 1024  ;;  %p4054_p0 = scmp.lt.s32.totalorder %s4213_s12, %s4213_s12 }
  0x3d   :  { %p4050_p13 = scmp.ne.s32.totalorder %s4213_s12, %s4049_s28  ;;  %p4055_p1 = scmp.lt.s32.totalorder %s4049_s28, %s4049_s28 }
  0x3f   :  { %p4056_p2 = por %p4055_p1, %p4054_p0 }
  0x41   :  { %p4057_p3 = pnand %p4056_p2, %p4050_p13 }
  0x43   :  { %4060 = shalt.err (!%p4057_p3)
}
  0x44   :  { %71 = dma.hbm_to_vmem [thread:$0]  %s4973_s4, 1024, %s4213_s12, [#allocation11], %s4117_s17, %s4117_s17, %s4118_s18  }
  0x45   :  { %4105 = dma.done.wait [#allocation5], 256  }
  0x46   :  { %4106 = vsyncadd [#allocation5], 4294967040 }
  0x47   :  { %4107 = dma.done.wait [#allocation8], 768  }
  0x48   :  { %4108 = vsyncadd [#allocation8], 4294966528 }
  0x49   :  { %4109 = dma.done.wait [#allocation11], 1024  }
  0x4a   :  { %4110 = vsyncadd [#allocation11], 4294966272  ;;  %vm94_vm0 = vcmask 254976   ;;  %v4121_v0 = vmov 0.0   ;;  %vm126_vm1 = vcmask 130048   ;;  %v98_v1 = vld [vmem:[#allocation9] sm:$0xff] }
  0x4b   :  { %95 = vst.msk [vmem:[#allocation2] sm:$0x3] %vm94_vm0, %v4121_v0  ;;  %96 = vst.msk [vmem:[#allocation3] sm:$0x3] %vm94_vm0, %v4121_v0  ;;  %v99_v2 = vld [vmem:[#allocation9 + $0x8] sm:$0xff]  ;;  %v101_v3 = vld [vmem:[#allocation9 + $0x10] sm:$0xff] }
  0x4c   :  { %v3659_v4 = vpack.c.bf16 %v99_v2, %v98_v1  ;;  %v102_v5 = vld [vmem:[#allocation9 + $0x18] sm:$0xff]  ;;  %v115_v6 = vld [vmem:[#allocation4] sm:$0xff]  ;;  %v117_v8 = vld [vmem:[#allocation7] sm:$0xff]  ;;  %v4122_v15 = vmov 0.0|0.0   ;;  %s4123_s11 = smov 64   ;;  %vm4124_vm2 = vmmov 0  }
  0x4d   :  { %v3663_v7 = vpack.c.bf16 %v102_v5, %v101_v3  ;;  %3473 = vmatprep.mubr.msk.f32.mxu0 %vm126_vm1, %v115_v6  ;;  %v103_v9 = vld [vmem:[#allocation10] sm:$0xff]  ;;  %3480 = vmatprep.mubr.msk.f32.mxu1 %vm126_vm1, %v117_v8  ;;  %v104_v10 = vld [vmem:[#allocation10 + $0x8] sm:$0xff]  ;;  %v118_v16 = vld [vmem:[#allocation7 + $0x8] sm:$0xff]  ;;  %vm302_vm3 = vcmask 261120   ;;  %s4127_s19 = smov 96   ;;  %vm456_vm6 = vcmask 1041409  }
  0x4e   :  { %3660 = vmatprep.subr.bf16.mxu0 %v3659_v4  ;;  %v108_v11 = vld [vmem:[#allocation10 + $0x20] sm:$0xff]  ;;  %v109_v12 = vld [vmem:[#allocation10 + $0x28] sm:$0xff]  ;;  %v4256_v14 = vpack.c.bf16 %v104_v10, %v103_v9  ;;  %v105_v18 = vld [vmem:[#allocation10 + $0x10] sm:$0xff]  ;;  %vm488_vm9 = vcmask 253952  }
  0x4f   :  { %3664 = vmatprep.subr.bf16.mxu1 %v3663_v7  ;;  %3662 = vmatpush3.bf16.msra.mxu0 %v3659_v4  ;;  %v116_v13 = vld [vmem:[#allocation4 + $0x8] sm:$0xff]  ;;  %v4259_v17 = vpack.c.bf16 %v109_v12, %v108_v11  ;;  %v106_v19 = vld [vmem:[#allocation10 + $0x18] sm:$0xff]  ;;  %v110_v20 = vld [vmem:[#allocation10 + $0x30] sm:$0xff] }
  0x50   :  { %3666 = vmatpush3.bf16.msra.mxu1 %v3663_v7  ;;  %3667 = vmatprep.subr.bf16.mxu0 %v4122_v15  ;;  %v111_v21 = vld [vmem:[#allocation10 + $0x38] sm:$0xff]  ;;  %v3319_v22 = vld [vmem:[%s4975_s6] ss:$0 sm:$0xff]  ;;  %v4269_v23 = vpack.c.bf16 %v106_v19, %v105_v18  ;;  %v3324_v24 = vld [vmem:[%s4975_s6 + $0x1] ss:$0 sm:$0xff] }
  0x51   :  { %3673 = vmatprep.subr.bf16.mxu1 %v4122_v15  ;;  %399 = vrot.lane.b32.xlu0 %v3319_v22, %s4123_s11  ;;  %v4276_v25 = vpack.c.bf16 %v111_v21, %v110_v20  ;;  %v3308_v43 = vld [vmem:[%s4974_s5] ss:$0 sm:$0xff]  ;;  %v3312_v46 = vld [vmem:[%s4974_s5 + $0x1] ss:$0 sm:$0xff]  ;;  %s4125_s5 = smov 32   ;;  %v4126_v22 = vmov 0  }
  0x52   :  { %3474 = vmatmul.mubr.msk.f32.vlgmr.msra.gmra.mrb[0].mxu0 %vm126_vm1, %v116_v13  ;;  %v4285_v26 = vld [vmem:[#allocation2] sm:$0x3]  ;;  %v4288_v27 = vld [vmem:[#allocation3] sm:$0x3]  ;;  %3779 = vset.pattern.permute.xlu0 %v4126_v22 }
  0x53   :  { %3481 = vmatmul.mubr.msk.f32.vlgmr.msra.gmra.mrb[0].mxu1 %vm126_vm1, %v118_v16  ;;  %3669 = vmatpush3.bf16.msra.mxu0 %v4256_v14  ;;  %v630_v16 = vrot.slane %v4288_v27, 1  ;;  %v437_v21 = vrot.slane %v4285_v26, 1 }
  0x54   :  { %3675 = vmatpush3.bf16.msra.mxu1 %v4259_v17  ;;  %3670 = vmatprep.subr.bf16.mxu0 %v4122_v15 }
  0x55   :  { %3676 = vmatprep.subr.bf16.mxu1 %v4122_v15  ;;  %3491 = vmatprep.mubr.msk.f32.mxu0 %vm4124_vm2, %v4121_v0 }
  0x56   :  { %3502 = vmatprep.mubr.msk.f32.mxu1 %vm4124_vm2, %v4121_v0  ;;  %591 = vrot.lane.b32.xlu0 %v3324_v24, %s4123_s11  ;;  %v631_v24 = vrot.slane %v4288_v27, 2 }
  0x57   :  { %3672 = vmatpush3.bf16.msra.mxu0 %v4269_v23  ;;  %3780 = vset.pattern.permute.xlu1 %v4126_v22 }
  0x58   :  { %3678 = vmatpush3.bf16.msra.mxu1 %v4276_v25  ;;  %3679 = vmatprep.subr.bf16.mxu0 %v4122_v15 }
  0x59   :  { %3685 = vmatprep.subr.bf16.mxu1 %v4122_v15 }
  0x5a   :  { %3492 = vmatmul.mubr.msk.f32.vlgmr.msra.gmra.mrb[2].mxu0 %vm302_vm3, %v4285_v26 }
  0x5b   :  { %3503 = vmatmul.mubr.msk.f32.vlgmr.msra.gmra.mrb[2].mxu1 %vm302_vm3, %v4288_v27  ;;  %3681 = vmatpush3.bf16.msra.mxu0 %v4256_v14 }
  0x5c   :  { %3687 = vmatpush3.bf16.msra.mxu1 %v4259_v17  ;;  %3682 = vmatprep.subr.bf16.mxu0 %v4122_v15 }
  0x5d   :  { %3688 = vmatprep.subr.bf16.mxu1 %v4122_v15  ;;  %3524 = vmatprep.mubr.msk.f32.mxu1 %vm4124_vm2, %v4121_v0 }
  0x5e   :  { %3513 = vmatprep.mubr.msk.f32.mxu0 %vm4124_vm2, %v4121_v0 }
  0x5f   :  { %3684 = vmatpush3.bf16.msra.mxu0 %v4269_v23 }
  0x60   :  { %3690 = vmatpush3.bf16.msra.mxu1 %v4276_v25  ;;  %3691 = vmatprep.subr.bf16.mxu0 %v4122_v15 }
  0x61   :  { %3697 = vmatprep.subr.bf16.mxu1 %v4122_v15 }
  0xc3   :  { %v4308_v29 = vpop.permute.xlu0 %399 }
  0xc8   :  { %v4310_v33 = vpop.permute.xlu0 %591 }
 0x125   :  { %v3475_v28 = vpop.f32.mrb[0].mxu0 }
 0x126   :  { %v199_v30 = vpop.f32.mrb[1].mxu0  ;;  %v3482_v31 = vpop.f32.mrb[0].mxu1  ;;  %v4321_v45 = vadd.f32 %v3475_v28, %v3308_v43 }
 0x127   :  { %v288_v32 = vpop.f32.mrb[1].mxu1  ;;  %v4329_v51 = vadd.f32 %v3482_v31, %v3312_v46  ;;  %v4333_v55 = vadd.f32 %v3308_v43, %v199_v30 }
 0x128   :  { %v4327_v50 = vadd.f32 %v3312_v46, %v288_v32 }
 0x12d   :  { %v372_v34 = vpop.f32.mrb[2].mxu0 }
 0x12e   :  { %v563_v35 = vpop.f32.mrb[2].mxu1  ;;  %v3493_v36 = vpop.f32.mrb[3].mxu0  ;;  %v402_v37 = vadd.f32 %v4308_v29, %v372_v34  ;;  %v377_v44 = vrot.slane %v372_v34, 1  ;;  %v380_v57 = vadd.f32 %v372_v34, %v4333_v55 }
 0x12f   :  { %v594_v38 = vadd.f32 %v4310_v33, %v563_v35  ;;  %v3504_v39 = vpop.f32.mrb[3].mxu1  ;;  %v568_v47 = vrot.slane %v563_v35, 1  ;;  %v569_v49 = vrot.slane %v563_v35, 2 }
 0x130   :  { %v404_v40 = vrot.slane %v402_v37, 1  ;;  %v381_v48 = vadd.f32 %v377_v44, %v4321_v45  ;;  %v3317_v59 = vmul.f32 -1.442695, %v380_v57 }
 0x131   :  { %v597_v41 = vrot.slane %v594_v38, 2  ;;  %v596_v42 = vrot.slane %v594_v38, 1  ;;  %v572_v52 = vadd.f32 %v568_v47, %v4327_v50  ;;  %v573_v54 = vadd.f32 %v569_v49, %v4329_v51 }
 0x132   :  { %407 = vrot.lane.b32.xlu1 %v404_v40, %s4123_s11  ;;  %v3318_v53 = vmul.f32 -1.442695, %v381_v48  ;;  %v4368_v40 = vld [vmem:[%s4969_s0] sm:$0x3]  ;;  %s4129_s0 = smov [#allocation12]  }
 0x133   :  { %600 = vrot.lane.b32.xlu0 %v597_v41, %s4123_s11  ;;  %v3322_v56 = vmul.f32 -1.442695, %v572_v52  ;;  %v3323_v58 = vmul.f32 -1.442695, %v573_v54  ;;  %vm3315_vm4 = vcmp.gt.s32.totalorder %v4368_v40, 0  ;;  %vm3320_vm5 = vcmp.gt.s32.totalorder %v4368_v40, 7 }
 0x134   :  { %3781 = vpow2.f32 %v3318_v53  ;;  %v4378_v43 = vsel %vm3315_vm4, 1, %v4126_v22  ;;  %v4381_v44 = vsel %vm3320_vm5, 1, %v4126_v22  ;;  %vm3325_vm10 = vcmp.gt.s32.totalorder %v4368_v40, 1  ;;  %s3270_s1 = sshll.u32 %s4129_s0, 4  ;;  %s3271_s1 = int_to_ptr.vmem [resolvable:$true] %s3270_s1 }
 0x135   :  { %3783 = vpow2.f32 %v3322_v56  ;;  %vm3329_vm11 = vcmp.gt.s32.totalorder %v4368_v40, 6  ;;  %vm3337_vm14 = vcmp.gt.s32.totalorder %v4368_v40, 5  ;;  %vm3333_vm15 = vcmp.gt.s32.totalorder %v4368_v40, 2  ;;  %s4061_s30 = scalar_lea.vmem %s3271_s1, 256  ;;  %p4066_p5 = scmp.lt.s32.totalorder %s3271_s1, %s3271_s1 }
 0x136   :  { %598 = vrot.lane.b32.xlu1 %v596_v42, %s4123_s11  ;;  %3785 = vpow2.f32 %v3323_v58  ;;  %vm3345_vm5 = vcmp.gt.s32.totalorder %v4368_v40, 4  ;;  %p4062_p4 = scmp.ne.s32.totalorder %s3271_s1, %s4061_s30  ;;  %p4067_p6 = scmp.lt.s32.totalorder %s4061_s30, %s4061_s30 }
 0x137   :  { %3787 = vpow2.f32 %v3317_v59 }
 0x138   :  { %p4068_p7 = por %p4067_p6, %p4066_p5 }
 0x13a   :  { %405 = vrot.lane.b32.xlu1 %v402_v37, %s4123_s11  ;;  %p4069_p8 = pnand %p4068_p7, %p4062_p4 }
 0x13e   :  { %v3782_v60 = vpop.eup %3781 }
 0x13f   :  { %v3784_v61 = vpop.eup %3783  ;;  %v389_v62 = vadd.f32 1.0, %v3782_v60 }
 0x140   :  { %v3786_v63 = vpop.eup %3785  ;;  %v580_v1 = vadd.f32 1.0, %v3784_v61 }
 0x141   :  { %3789 = vrcp.f32 %v389_v62  ;;  %v581_v2 = vadd.f32 1.0, %v3786_v63  ;;  %v3788_v3 = vpop.eup %3787 }
 0x142   :  { %3791 = vrcp.f32 %v580_v1  ;;  %v388_v4 = vadd.f32 1.0, %v3788_v3 }
 0x143   :  { %3793 = vrcp.f32 %v581_v2 }
 0x144   :  { %3795 = vrcp.f32 %v388_v4 }
 0x14b   :  { %v4336_v5 = vpop.eup %3789 }
 0x14c   :  { %v4339_v9 = vpop.eup %3791  ;;  %v426_v52 = vsub.f32 1.0, %v4336_v5 }
 0x14d   :  { %v4342_v10 = vpop.eup %3793  ;;  %v618_v53 = vsub.f32 1.0, %v4339_v9 }
 0x14e   :  { %v4349_v18 = vpop.eup %3795  ;;  %v619_v56 = vsub.f32 1.0, %v4342_v10 }
 0x14f   :  { %v425_v2 = vsub.f32 1.0, %v4349_v18 }
 0x1a4   :  { %v408_v6 = vpop.permute.xlu1 %407 }
 0x1a5   :  { %v412_v7 = vmul.f32 %v4336_v5, %v408_v6  ;;  %v601_v8 = vpop.permute.xlu0 %600 }
 0x1a6   :  { %v605_v12 = vmul.f32 %v4342_v10, %v601_v8 }
 0x1a7   :  { %417 = vrot.lane.b32.xlu0 %v412_v7, %s4123_s11 }
 0x1a8   :  { %v599_v11 = vpop.permute.xlu1 %598 }
 0x1a9   :  { %v604_v13 = vmul.f32 %v4339_v9, %v599_v11 }
 0x1ab   :  { %608 = vrot.lane.b32.xlu1 %v604_v13, %s4123_s11  ;;  %610 = vrot.lane.b32.xlu0 %v605_v12, %s4123_s11 }
 0x1ac   :  { %v406_v19 = vpop.permute.xlu1 %405 }
 0x1ad   :  { %v411_v20 = vmul.f32 %v4349_v18, %v406_v19  ;;  %v4128_v19 = vmov 1966171168  }
 0x1af   :  { %415 = vrot.lane.b32.xlu1 %v411_v20, %s4123_s11  ;;  %632 = vrot.lane.b32.xlu0 %v630_v16, %s4125_s5  ;;  %v465_v20 = vunpack.c.l.s4 %v4128_v19 }
 0x1b3   :  { %440 = vrot.lane.b32.xlu1 %v437_v21, %s4125_s5  ;;  %v467_v21 = vlaneseq }
 0x1b7   :  { %634 = vrot.lane.b32.xlu1 %v631_v24, %s4125_s5 }
 0x219   :  { %v418_v28 = vpop.permute.xlu0 %417 }
 0x21a   :  { %v422_v30 = vadd.f32 %v418_v28, %v4321_v45  ;;  %v466_v28 = vunpack.c.0.s8 %v465_v20 }
 0x21c   :  { %3797 = vtanh.f32 %v422_v30  ;;  %v468_v30 = vshrl.u32 %v467_v21, 7 }
 0x21d   :  { %v609_v31 = vpop.permute.xlu1 %608  ;;  %v611_v32 = vpop.permute.xlu0 %610 }
 0x21e   :  { %v614_v34 = vadd.f32 %v609_v31, %v4327_v50  ;;  %v615_v35 = vadd.f32 %v611_v32, %v4329_v51  ;;  %v4397_v32 = vsub.s32 %v466_v28, %v468_v30 }
 0x220   :  { %3799 = vtanh.f32 %v614_v34 }
 0x221   :  { %3801 = vtanh.f32 %v615_v35  ;;  %v416_v36 = vpop.permute.xlu1 %415  ;;  %v633_v47 = vpop.permute.xlu0 %632 }
 0x222   :  { %v421_v37 = vadd.f32 %v416_v36, %v4333_v55  ;;  %v638_v58 = vmul.f32 %v4339_v9, %v633_v47 }
 0x224   :  { %3803 = vtanh.f32 %v421_v37 }
 0x225   :  { %v441_v46 = vpop.permute.xlu1 %440 }
 0x226   :  { %v3798_v38 = vpop.eup %3797  ;;  %v445_v61 = vmul.f32 %v4336_v5, %v441_v46 }
 0x227   :  { %431 = vrot.lane.b32.xlu0 %v3798_v38, %s4127_s19 }
 0x229   :  { %v635_v49 = vpop.permute.xlu1 %634 }
 0x22a   :  { %v3800_v39 = vpop.eup %3799  ;;  %v639_v62 = vmul.f32 %v4342_v10, %v635_v49 }
 0x22b   :  { %v3802_v41 = vpop.eup %3801  ;;  %622 = vrot.lane.b32.xlu0 %v3800_v39, %s4127_s19 }
 0x22c   :  { %624 = vrot.lane.b32.xlu1 %v3802_v41, %s4127_s19 }
 0x22e   :  { %v3804_v42 = vpop.eup %3803 }
 0x22f   :  { %429 = vrot.lane.b32.xlu0 %v3804_v42, %s4127_s19 }
 0x230   :  { %438 = vrot.lane.b32.xlu1 %v4285_v26, %s4125_s5 }
 0x233   :  { %450 = vperm.xlu0 %3779, %v4378_v43  }
 0x234   :  { %644 = vperm.xlu1 %3780, %v4381_v44  }
 0x299   :  { %v432_v48 = vpop.permute.xlu0 %431 }
 0x29a   :  { %v436_v54 = vmul.f32 %v432_v48, %v426_v52 }
 0x29c   :  { %v447_v3 = vadd.f32 %v445_v61, %v436_v54 }
 0x29d   :  { %v623_v57 = vpop.permute.xlu0 %622 }
 0x29e   :  { %v625_v59 = vpop.permute.xlu1 %624  ;;  %v628_v60 = vmul.f32 %v623_v57, %v618_v53  ;;  %v455_v13 = vrot.slane %v447_v3, 7 }
 0x29f   :  { %v629_v63 = vmul.f32 %v625_v59, %v619_v56 }
 0x2a0   :  { %v640_v1 = vadd.f32 %v638_v58, %v628_v60 }
 0x2a1   :  { %v641_v4 = vadd.f32 %v639_v62, %v629_v63  ;;  %v430_v6 = vpop.permute.xlu0 %429 }
 0x2a2   :  { %v649_v7 = vrot.slane %v640_v1, 7  ;;  %v439_v8 = vpop.permute.xlu1 %438  ;;  %v435_v11 = vmul.f32 %v430_v6, %v425_v2 }
 0x2a3   :  { %v650_v12 = vrot.slane %v641_v4, 6  ;;  %v444_v9 = vmul.f32 %v4349_v18, %v439_v8 }
 0x2a5   :  { %v446_v16 = vadd.f32 %v444_v9, %v435_v11  ;;  %v651_v5 = vsel %vm456_vm6, %v650_v12, %v649_v7 }
 0x2a6   :  { %652 = vrot.lane.b32.xlu0 %v651_v5, %s4127_s19 }
 0x2a7   :  { %v457_v10 = vsel %vm456_vm6, %v455_v13, %v446_v16 }
 0x2a8   :  { %458 = vrot.lane.b32.xlu1 %v457_v10, %s4127_s19 }
 0x2b2   :  { %v451_v24 = vpop.permute.xlu0 %450 }
 0x2b3   :  { %v645_v31 = vpop.permute.xlu1 %644  ;;  %vm452_vm8 = vcmp.eq.s32.totalorder %v451_v24, 1 }
 0x2b4   :  { %vm646_vm7 = vcmp.eq.s32.totalorder %v645_v31, 1 }
 0x318   :  { %v653_v18 = vpop.permute.xlu0 %652 }
 0x319   :  { %v4400_v34 = vsel %vm646_vm7, %v653_v18, %v4288_v27  ;;  %v656_v35 = vsel %vm646_vm7, %v653_v18, 0.0  ;;  %vm3341_vm7 = vcmp.gt.s32.totalorder %v4368_v40, 3 }
 0x31a   :  { %v664_v36 = vrot.slane %v656_v35, %v4397_v32  ;;  %v459_v37 = vpop.permute.xlu1 %458  ;;  %3525 = vmatmul.mubr.msk.f32.vlgmr.msra.gmra.mrb[4].mxu1 %vm302_vm3, %v4400_v34 }
 0x31b   :  { %v4406_v38 = vsel %vm452_vm8, %v459_v37, %v4285_v26  ;;  %v462_v39 = vsel %vm452_vm8, %v459_v37, 0.0  ;;  %3699 = vmatpush3.bf16.msra.mxu1 %v4259_v17  ;;  %3546 = vmatprep.mubr.msk.f32.mxu1 %vm4124_vm2, %v4121_v0 }
 0x31c   :  { %v665_v41 = vcombine.high %v664_v36, %v664_v36  ;;  %v672_v27 = vrot.slane %v664_v36, %v4397_v32  ;;  %v470_v42 = vrot.slane %v462_v39, %v4397_v32  ;;  %3514 = vmatmul.mubr.msk.f32.vlgmr.msra.gmra.mrb[4].mxu0 %vm302_vm3, %v4406_v38  ;;  %3700 = vmatprep.subr.bf16.mxu1 %v4122_v15 }
 0x31d   :  { %3693 = vmatpush3.bf16.msra.mxu0 %v4256_v14  ;;  %3535 = vmatprep.mubr.msk.f32.mxu0 %vm4124_vm2, %v4121_v0 }
 0x31e   :  { %v679_v26 = vrot.slane %v665_v41, %v4397_v32  ;;  %682 = vst.msk [vmem:[#allocation13 + $0x7] sm:$0x1] %vm488_vm9, %v672_v27  ;;  %v471_v46 = vcombine.high %v470_v42, %v470_v42  ;;  %v478_v47 = vrot.slane %v470_v42, %v4397_v32  ;;  %3694 = vmatprep.subr.bf16.mxu0 %v4122_v15  ;;  %v813_v42 = vrot.slane %v4406_v38, 7 }
 0x31f   :  { %3702 = vmatpush3.bf16.msra.mxu1 %v4276_v25 }
 0x320   :  { %683 = vst.msk [vmem:[#allocation13 + $0xf] sm:$0x1] %vm488_vm9, %v679_v26  ;;  %v485_v48 = vrot.slane %v471_v46, %v4397_v32  ;;  %489 = vst.msk [vmem:[#allocation12] sm:$0x1] %vm488_vm9, %v478_v47  ;;  %3709 = vmatprep.subr.bf16.mxu1 %v4122_v15  ;;  %v996_v26 = vrot.slane %v4400_v34, 2  ;;  %v997_v46 = vrot.slane %v4400_v34, 3 }
 0x321   :  { %3696 = vmatpush3.bf16.msra.mxu0 %v4269_v23 }
 0x322   :  { %490 = vst.msk [vmem:[#allocation12 + $0x8] sm:$0x1] %vm488_vm9, %v485_v48  ;;  %3703 = vmatprep.subr.bf16.mxu0 %v4122_v15 }
 0x3ed   :  { %v937_v49 = vpop.f32.mrb[4].mxu1 }
 0x3ee   :  { %v960_v52 = vadd.f32 %v937_v49, %v4310_v33  ;;  %v3526_v53 = vpop.f32.mrb[5].mxu1  ;;  %v942_v61 = vrot.slane %v937_v49, 2  ;;  %v943_v1 = vrot.slane %v937_v49, 3 }
 0x3ef   :  { %v756_v54 = vpop.f32.mrb[4].mxu0 }
 0x3f0   :  { %v3515_v56 = vpop.f32.mrb[5].mxu0  ;;  %v778_v57 = vadd.f32 %v756_v54, %v4308_v29  ;;  %v962_v58 = vrot.slane %v960_v52, 2  ;;  %v963_v60 = vrot.slane %v960_v52, 3  ;;  %v761_v62 = vrot.slane %v756_v54, 7 }
 0x3f1   :  { %v946_v63 = vadd.f32 %v942_v61, %v4327_v50  ;;  %v765_v4 = vadd.f32 %v756_v54, %v4321_v45  ;;  %v947_v6 = vadd.f32 %v943_v1, %v4329_v51 }
 0x3f2   :  { %964 = vrot.lane.b32.xlu0 %v962_v58, %s4123_s11  ;;  %v780_v59 = vrot.slane %v778_v57, 7  ;;  %v764_v2 = vadd.f32 %v761_v62, %v4333_v55  ;;  %v4470_v62 = vsel %vm3325_vm10, 1, %v4126_v22 }
 0x3f3   :  { %v3331_v3 = vmul.f32 -1.442695, %v946_v63  ;;  %v3328_v8 = vmul.f32 -1.442695, %v765_v4  ;;  %v3332_v11 = vmul.f32 -1.442695, %v947_v6 }
 0x3f4   :  { %781 = vrot.lane.b32.xlu1 %v780_v59, %s4123_s11  ;;  %v3327_v7 = vmul.f32 -1.442695, %v764_v2  ;;  %v4473_v63 = vsel %vm3329_vm11, 1, %v4126_v22 }
 0x3f5   :  { %3805 = vpow2.f32 %v3331_v3 }
 0x3f6   :  { %783 = vrot.lane.b32.xlu0 %v778_v57, %s4123_s11  ;;  %3807 = vpow2.f32 %v3327_v7 }
 0x3f7   :  { %3809 = vpow2.f32 %v3328_v8 }
 0x3f8   :  { %966 = vrot.lane.b32.xlu1 %v963_v60, %s4123_s11  ;;  %3811 = vpow2.f32 %v3332_v11 }
 0x3ff   :  { %v3806_v12 = vpop.eup %3805 }
 0x400   :  { %v3808_v9 = vpop.eup %3807  ;;  %v954_v13 = vadd.f32 1.0, %v3806_v12 }
 0x401   :  { %v3810_v16 = vpop.eup %3809  ;;  %v772_v5 = vadd.f32 1.0, %v3808_v9 }
 0x402   :  { %v3812_v10 = vpop.eup %3811  ;;  %3813 = vrcp.f32 %v954_v13  ;;  %v773_v19 = vadd.f32 1.0, %v3810_v16 }
 0x403   :  { %v955_v20 = vadd.f32 1.0, %v3812_v10  ;;  %3815 = vrcp.f32 %v772_v5 }
 0x404   :  { %3817 = vrcp.f32 %v773_v19 }
 0x405   :  { %3819 = vrcp.f32 %v955_v20 }
 0x40c   :  { %v4441_v21 = vpop.eup %3813 }
 0x40d   :  { %v3816_v30 = vpop.eup %3815  ;;  %v984_v11 = vsub.f32 1.0, %v4441_v21 }
 0x40e   :  { %v4445_v35 = vpop.eup %3817  ;;  %v801_v6 = vsub.f32 1.0, %v3816_v30 }
 0x40f   :  { %v3820_v39 = vpop.eup %3819 }
 0x410   :  { %v985_v8 = vsub.f32 1.0, %v3820_v39 }
 0x464   :  { %v965_v24 = vpop.permute.xlu0 %964 }
 0x465   :  { %v970_v28 = vmul.f32 %v4441_v21, %v965_v24 }
 0x466   :  { %v782_v31 = vpop.permute.xlu1 %781 }
 0x467   :  { %v787_v18 = vmul.f32 %v3816_v30, %v782_v31  ;;  %974 = vrot.lane.b32.xlu0 %v970_v28, %s4123_s11  ;;  %v802_v31 = vsub.f32 1.0, %v4445_v35 }
 0x468   :  { %v784_v36 = vpop.permute.xlu0 %783 }
 0x469   :  { %v788_v37 = vmul.f32 %v4445_v35, %v784_v36  ;;  %791 = vrot.lane.b32.xlu1 %v787_v18, %s4123_s11 }
 0x46a   :  { %v967_v41 = vpop.permute.xlu1 %966 }
 0x46b   :  { %v971_v27 = vmul.f32 %v3820_v39, %v967_v41  ;;  %793 = vrot.lane.b32.xlu0 %v788_v37, %s4123_s11 }
 0x46d   :  { %976 = vrot.lane.b32.xlu1 %v971_v27, %s4123_s11 }
 0x46f   :  { %814 = vrot.lane.b32.xlu0 %v813_v42, %s4125_s5 }
 0x471   :  { %998 = vrot.lane.b32.xlu1 %v996_v26, %s4125_s5 }
 0x473   :  { %1000 = vrot.lane.b32.xlu0 %v997_v46, %s4125_s5 }
 0x4d9   :  { %v975_v47 = vpop.permute.xlu0 %974 }
 0x4da   :  { %v980_v52 = vadd.f32 %v975_v47, %v4327_v50 }
 0x4db   :  { %v792_v48 = vpop.permute.xlu1 %791 }
 0x4dc   :  { %v797_v49 = vadd.f32 %v792_v48, %v4333_v55 }
 0x4dd   :  { %v794_v53 = vpop.permute.xlu0 %793 }
 0x4de   :  { %3821 = vtanh.f32 %v797_v49  ;;  %v798_v57 = vadd.f32 %v794_v53, %v4321_v45 }
 0x4df   :  { %v977_v54 = vpop.permute.xlu1 %976  ;;  %3823 = vtanh.f32 %v980_v52 }
 0x4e0   :  { %v981_v56 = vadd.f32 %v977_v54, %v4329_v51 }
 0x4e1   :  { %v815_v1 = vpop.permute.xlu0 %814 }
 0x4e2   :  { %3825 = vtanh.f32 %v981_v56  ;;  %v820_v12 = vmul.f32 %v3816_v30, %v815_v1 }
 0x4e3   :  { %3827 = vtanh.f32 %v798_v57  ;;  %v999_v2 = vpop.permute.xlu1 %998 }
 0x4e4   :  { %v1004_v16 = vmul.f32 %v4441_v21, %v999_v2 }
 0x4e5   :  { %v1001_v3 = vpop.permute.xlu0 %1000 }
 0x4e6   :  { %v1005_v5 = vmul.f32 %v3820_v39, %v1001_v3 }
 0x4e8   :  { %v3822_v58 = vpop.eup %3821 }
 0x4e9   :  { %805 = vrot.lane.b32.xlu1 %v3822_v58, %s4127_s19  ;;  %v3824_v59 = vpop.eup %3823 }
 0x4ec   :  { %v3826_v60 = vpop.eup %3825 }
 0x4ed   :  { %988 = vrot.lane.b32.xlu1 %v3824_v59, %s4127_s19  ;;  %990 = vrot.lane.b32.xlu0 %v3826_v60, %s4127_s19  ;;  %v3828_v61 = vpop.eup %3827 }
 0x4f1   :  { %807 = vrot.lane.b32.xlu1 %v3828_v61, %s4127_s19  ;;  %816 = vrot.lane.b32.xlu0 %v4406_v38, %s4125_s5 }
 0x4f5   :  { %826 = vperm.xlu1 %3780, %v4470_v62   ;;  %1010 = vperm.xlu0 %3779, %v4473_v63  }
 0x55b   :  { %v806_v4 = vpop.permute.xlu1 %805 }
 0x55c   :  { %v811_v7 = vmul.f32 %v806_v4, %v801_v6 }
 0x55e   :  { %v822_v20 = vadd.f32 %v820_v12, %v811_v7 }
 0x55f   :  { %v991_v9 = vpop.permute.xlu0 %990  ;;  %v989_v13 = vpop.permute.xlu1 %988 }
 0x560   :  { %v995_v10 = vmul.f32 %v991_v9, %v985_v8  ;;  %v994_v19 = vmul.f32 %v989_v13, %v984_v11  ;;  %v831_v30 = vrot.slane %v822_v20, 1 }
 0x562   :  { %v1007_v24 = vadd.f32 %v1005_v5, %v995_v10  ;;  %v1006_v28 = vadd.f32 %v1004_v16, %v994_v19 }
 0x563   :  { %v817_v18 = vpop.permute.xlu0 %816  ;;  %v808_v36 = vpop.permute.xlu1 %807 }
 0x564   :  { %v1016_v37 = vrot.slane %v1007_v24, 5  ;;  %v1015_v41 = vrot.slane %v1006_v28, 6  ;;  %v821_v27 = vmul.f32 %v4445_v35, %v817_v18  ;;  %v812_v42 = vmul.f32 %v808_v36, %v802_v31 }
 0x566   :  { %v823_v26 = vadd.f32 %v821_v27, %v812_v42  ;;  %v1017_v46 = vsel %vm456_vm6, %v1016_v37, %v1015_v41 }
 0x567   :  { %1018 = vrot.lane.b32.xlu0 %v1017_v46, %s4127_s19 }
 0x568   :  { %v832_v21 = vsel %vm456_vm6, %v823_v26, %v831_v30 }
 0x569   :  { %833 = vrot.lane.b32.xlu1 %v832_v21, %s4127_s19 }
 0x574   :  { %v1011_v39 = vpop.permute.xlu0 %1010  ;;  %v827_v47 = vpop.permute.xlu1 %826 }
 0x575   :  { %vm1012_vm12 = vcmp.eq.s32.totalorder %v1011_v39, 1  ;;  %vm828_vm13 = vcmp.eq.s32.totalorder %v827_v47, 1 }
 0x5d9   :  { %v1019_v48 = vpop.permute.xlu0 %1018 }
 0x5da   :  { %v4486_v49 = vsel %vm1012_vm12, %v1019_v48, %v4400_v34  ;;  %v1022_v52 = vsel %vm1012_vm12, %v1019_v48, 0.0 }
 0x5db   :  { %v1030_v35 = vrot.slane %v1022_v52, %v4397_v32  ;;  %3547 = vmatmul.mubr.msk.f32.vlgmr.msra.gmra.mrb[6].mxu1 %vm302_vm3, %v4486_v49  ;;  %v834_v53 = vpop.permute.xlu1 %833 }
 0x5dc   :  { %v4492_v54 = vsel %vm828_vm13, %v834_v53, %v4406_v38  ;;  %v837_v56 = vsel %vm828_vm13, %v834_v53, 0.0  ;;  %3711 = vmatpush3.bf16.msra.mxu1 %v4259_v17  ;;  %3568 = vmatprep.mubr.msk.f32.mxu1 %vm4124_vm2, %v4121_v0 }
 0x5dd   :  { %v1031_v57 = vcombine.high %v1030_v35, %v1030_v35  ;;  %v1038_v34 = vrot.slane %v1030_v35, %v4397_v32  ;;  %v845_v58 = vrot.slane %v837_v56, %v4397_v32  ;;  %3536 = vmatmul.mubr.msk.f32.vlgmr.msra.gmra.mrb[6].mxu0 %vm302_vm3, %v4492_v54  ;;  %3712 = vmatprep.subr.bf16.mxu1 %v4122_v15 }
 0x5de   :  { %3705 = vmatpush3.bf16.msra.mxu0 %v4256_v14  ;;  %3557 = vmatprep.mubr.msk.f32.mxu0 %vm4124_vm2, %v4121_v0 }
 0x5df   :  { %v1045_v38 = vrot.slane %v1031_v57, %v4397_v32  ;;  %1048 = vst.msk [vmem:[#allocation13 + $0x6] sm:$0x1] %vm488_vm9, %v1038_v34  ;;  %v846_v59 = vcombine.high %v845_v58, %v845_v58  ;;  %v853_v60 = vrot.slane %v845_v58, %v4397_v32  ;;  %3706 = vmatprep.subr.bf16.mxu0 %v4122_v15 }
 0x5e0   :  { %3714 = vmatpush3.bf16.msra.mxu1 %v4276_v25 }
 0x5e1   :  { %1049 = vst.msk [vmem:[#allocation13 + $0xe] sm:$0x1] %vm488_vm9, %v1045_v38  ;;  %v860_v61 = vrot.slane %v846_v59, %v4397_v32  ;;  %863 = vst.msk [vmem:[#allocation12 + $0x1] sm:$0x1] %vm488_vm9, %v853_v60  ;;  %3721 = vmatprep.subr.bf16.mxu1 %v4122_v15 }
 0x5e2   :  { %3708 = vmatpush3.bf16.msra.mxu0 %v4269_v23 }
 0x5e3   :  { %864 = vst.msk [vmem:[#allocation12 + $0x9] sm:$0x1] %vm488_vm9, %v860_v61  ;;  %3715 = vmatprep.subr.bf16.mxu0 %v4122_v15  ;;  %v1182_v61 = vrot.slane %v4492_v54, 7 }
 0x6ae   :  { %v1307_v1 = vpop.f32.mrb[6].mxu1 }
 0x6af   :  { %v3548_v2 = vpop.f32.mrb[7].mxu1  ;;  %v1330_v7 = vadd.f32 %v1307_v1, %v4310_v33  ;;  %v1312_v5 = vrot.slane %v1307_v1, 3  ;;  %v1313_v19 = vrot.slane %v1307_v1, 4  ;;  %v1181_v1 = vrot.slane %v4492_v54, 6 }
 0x6b0   :  { %v1122_v3 = vpop.f32.mrb[6].mxu0 }
 0x6b1   :  { %v3537_v4 = vpop.f32.mrb[7].mxu0  ;;  %v1145_v6 = vadd.f32 %v1122_v3, %v4308_v29  ;;  %v1333_v12 = vrot.slane %v1330_v7, 4  ;;  %v1332_v9 = vrot.slane %v1330_v7, 3  ;;  %v1127_v13 = vrot.slane %v1122_v3, 6 }
 0x6b2   :  { %v1128_v16 = vrot.slane %v1122_v3, 7  ;;  %v1316_v24 = vadd.f32 %v1312_v5, %v4327_v50  ;;  %v1317_v31 = vadd.f32 %v1313_v19, %v4329_v51  ;;  %v1366_v19 = vrot.slane %v4486_v49, 3 }
 0x6b3   :  { %v1148_v8 = vrot.slane %v1145_v6, 7  ;;  %v1147_v11 = vrot.slane %v1145_v6, 6  ;;  %v1131_v10 = vadd.f32 %v1127_v13, %v4333_v55 }
 0x6b4   :  { %v1132_v20 = vadd.f32 %v1128_v16, %v4321_v45  ;;  %v3339_v36 = vmul.f32 -1.442695, %v1316_v24  ;;  %v3340_v37 = vmul.f32 -1.442695, %v1317_v31  ;;  %v4556_v24 = vsel %vm3333_vm15, 1, %v4126_v22 }
 0x6b5   :  { %1151 = vrot.lane.b32.xlu0 %v1148_v8, %s4123_s11  ;;  %1149 = vrot.lane.b32.xlu1 %v1147_v11, %s4123_s11  ;;  %v3335_v28 = vmul.f32 -1.442695, %v1131_v10  ;;  %v1367_v10 = vrot.slane %v4486_v49, 4 }
 0x6b6   :  { %v3336_v18 = vmul.f32 -1.442695, %v1132_v20  ;;  %v4553_v20 = vsel %vm3337_vm14, 1, %v4126_v22 }
 0x6b7   :  { %3829 = vpow2.f32 %v3335_v28 }
 0x6b8   :  { %3831 = vpow2.f32 %v3336_v18 }
 0x6b9   :  { %1336 = vrot.lane.b32.xlu0 %v1333_v12, %s4123_s11  ;;  %1334 = vrot.lane.b32.xlu1 %v1332_v9, %s4123_s11  ;;  %3833 = vpow2.f32 %v3339_v36 }
 0x6ba   :  { %3835 = vpow2.f32 %v3340_v37 }
 0x6c1   :  { %v3830_v41 = vpop.eup %3829 }
 0x6c2   :  { %v3832_v27 = vpop.eup %3831  ;;  %v1139_v42 = vadd.f32 1.0, %v3830_v41 }
 0x6c3   :  { %v3834_v30 = vpop.eup %3833  ;;  %v1140_v26 = vadd.f32 1.0, %v3832_v27 }
 0x6c4   :  { %v3836_v46 = vpop.eup %3835  ;;  %v1324_v21 = vadd.f32 1.0, %v3834_v30  ;;  %3837 = vrcp.f32 %v1139_v42 }
 0x6c5   :  { %v1325_v39 = vadd.f32 1.0, %v3836_v46  ;;  %3839 = vrcp.f32 %v1140_v26 }
 0x6c6   :  { %3841 = vrcp.f32 %v1324_v21 }
 0x6c7   :  { %3843 = vrcp.f32 %v1325_v39 }
 0x6ce   :  { %v3838_v47 = vpop.eup %3837 }
 0x6cf   :  { %v3840_v48 = vpop.eup %3839  ;;  %v1169_v37 = vsub.f32 1.0, %v3838_v47 }
 0x6d0   :  { %v4527_v57 = vpop.eup %3841  ;;  %v1170_v18 = vsub.f32 1.0, %v3840_v48 }
 0x6d1   :  { %v3844_v34 = vpop.eup %3843 }
 0x727   :  { %v1152_v52 = vpop.permute.xlu0 %1151  ;;  %v1150_v35 = vpop.permute.xlu1 %1149 }
 0x728   :  { %v1156_v53 = vmul.f32 %v3840_v48, %v1152_v52  ;;  %v1155_v56 = vmul.f32 %v3838_v47, %v1150_v35 }
 0x72a   :  { %1161 = vrot.lane.b32.xlu0 %v1156_v53, %s4123_s11  ;;  %1159 = vrot.lane.b32.xlu1 %v1155_v56, %s4123_s11  ;;  %v1355_v56 = vsub.f32 1.0, %v3844_v34 }
 0x72b   :  { %v1337_v58 = vpop.permute.xlu0 %1336  ;;  %v1335_v38 = vpop.permute.xlu1 %1334 }
 0x72c   :  { %v1341_v59 = vmul.f32 %v3844_v34, %v1337_v58  ;;  %v1340_v60 = vmul.f32 %v4527_v57, %v1335_v38  ;;  %v1354_v58 = vsub.f32 1.0, %v4527_v57 }
 0x72e   :  { %1346 = vrot.lane.b32.xlu0 %v1341_v59, %s4123_s11  ;;  %1344 = vrot.lane.b32.xlu1 %v1340_v60, %s4123_s11 }
 0x732   :  { %1185 = vrot.lane.b32.xlu0 %v1182_v61, %s4125_s5  ;;  %1183 = vrot.lane.b32.xlu1 %v1181_v1, %s4125_s5 }
 0x79c   :  { %v1162_v2 = vpop.permute.xlu0 %1161  ;;  %v1160_v3 = vpop.permute.xlu1 %1159 }
 0x79d   :  { %v1166_v4 = vadd.f32 %v1162_v2, %v4321_v45  ;;  %v1165_v6 = vadd.f32 %v1160_v3, %v4333_v55 }
 0x79f   :  { %3845 = vtanh.f32 %v1166_v4 }
 0x7a0   :  { %3847 = vtanh.f32 %v1165_v6  ;;  %v1347_v7 = vpop.permute.xlu0 %1346  ;;  %v1345_v8 = vpop.permute.xlu1 %1344 }
 0x7a1   :  { %v1351_v11 = vadd.f32 %v1347_v7, %v4329_v51  ;;  %v1350_v12 = vadd.f32 %v1345_v8, %v4327_v50 }
 0x7a3   :  { %3849 = vtanh.f32 %v1351_v11 }
 0x7a4   :  { %3851 = vtanh.f32 %v1350_v12  ;;  %v1186_v28 = vpop.permute.xlu0 %1185  ;;  %v1184_v31 = vpop.permute.xlu1 %1183 }
 0x7a5   :  { %v1190_v41 = vmul.f32 %v3840_v48, %v1186_v28  ;;  %v1189_v30 = vmul.f32 %v3838_v47, %v1184_v31 }
 0x7a9   :  { %v3846_v9 = vpop.eup %3845 }
 0x7aa   :  { %v3848_v13 = vpop.eup %3847  ;;  %1175 = vrot.lane.b32.xlu0 %v3846_v9, %s4127_s19 }
 0x7ab   :  { %1173 = vrot.lane.b32.xlu1 %v3848_v13, %s4127_s19 }
 0x7ad   :  { %v3850_v16 = vpop.eup %3849 }
 0x7ae   :  { %v3852_v5 = vpop.eup %3851  ;;  %1360 = vrot.lane.b32.xlu0 %v3850_v16, %s4127_s19 }
 0x7af   :  { %1358 = vrot.lane.b32.xlu1 %v3852_v5, %s4127_s19 }
 0x7b2   :  { %1370 = vrot.lane.b32.xlu0 %v1367_v10, %s4125_s5 }
 0x7b3   :  { %1368 = vrot.lane.b32.xlu1 %v1366_v19, %s4125_s5 }
 0x7b6   :  { %1380 = vperm.xlu0 %3779, %v4553_v20  }
 0x7b7   :  { %1195 = vperm.xlu1 %3780, %v4556_v24  }
 0x81c   :  { %v1176_v36 = vpop.permute.xlu0 %1175 }
 0x81d   :  { %v1180_v27 = vmul.f32 %v1176_v36, %v1170_v18  ;;  %v1174_v42 = vpop.permute.xlu1 %1173 }
 0x81e   :  { %v1179_v26 = vmul.f32 %v1174_v42, %v1169_v37 }
 0x81f   :  { %v1192_v46 = vadd.f32 %v1190_v41, %v1180_v27 }
 0x820   :  { %v1191_v21 = vadd.f32 %v1189_v30, %v1179_v26  ;;  %v1361_v39 = vpop.permute.xlu0 %1360 }
 0x821   :  { %v1201_v52 = vrot.slane %v1192_v46, 1  ;;  %v1359_v35 = vpop.permute.xlu1 %1358  ;;  %v1365_v60 = vmul.f32 %v1361_v39, %v1355_v56 }
 0x822   :  { %v1200_v53 = vrot.slane %v1191_v21, 2  ;;  %v1364_v1 = vmul.f32 %v1359_v35, %v1354_v58 }
 0x824   :  { %v1371_v38 = vpop.permute.xlu0 %1370  ;;  %v1202_v59 = vsel %vm456_vm6, %v1201_v52, %v1200_v53 }
 0x825   :  { %v1375_v61 = vmul.f32 %v3844_v34, %v1371_v38  ;;  %1203 = vrot.lane.b32.xlu1 %v1202_v59, %s4127_s19  ;;  %v1369_v48 = vpop.permute.xlu1 %1368 }
 0x826   :  { %v1374_v47 = vmul.f32 %v4527_v57, %v1369_v48 }
 0x827   :  { %v1377_v2 = vadd.f32 %v1375_v61, %v1365_v60 }
 0x828   :  { %v1376_v3 = vadd.f32 %v1374_v47, %v1364_v1 }
 0x829   :  { %v1386_v4 = vrot.slane %v1377_v2, 4 }
 0x82a   :  { %v1385_v6 = vrot.slane %v1376_v3, 5 }
 0x82c   :  { %v1387_v7 = vsel %vm456_vm6, %v1386_v4, %v1385_v6 }
 0x82d   :  { %1388 = vrot.lane.b32.xlu0 %v1387_v7, %s4127_s19 }
 0x835   :  { %v1381_v57 = vpop.permute.xlu0 %1380 }
 0x836   :  { %v1196_v8 = vpop.permute.xlu1 %1195  ;;  %vm1382_vm4 = vcmp.eq.s32.totalorder %v1381_v57, 1 }
 0x837   :  { %vm1197_vm1 = vcmp.eq.s32.totalorder %v1196_v8, 1 }
 0x897   :  { %v1204_v11 = vpop.permute.xlu1 %1203 }
 0x898   :  { %v4567_v12 = vsel %vm1197_vm1, %v1204_v11, %v4492_v54  ;;  %v1207_v34 = vsel %vm1197_vm1, %v1204_v11, 0.0 }
 0x899   :  { %v1215_v9 = vrot.slane %v1207_v34, %v4397_v32  ;;  %3558 = vmatmul.mubr.msk.f32.vlgmr.msra.gmra.mrb[8].mxu0 %vm302_vm3, %v4567_v12 }
 0x89a   :  { %3717 = vmatpush3.bf16.msra.mxu0 %v4256_v14  ;;  %3579 = vmatprep.mubr.msk.f32.mxu0 %vm4124_vm2, %v4121_v0 }
 0x89b   :  { %v1216_v13 = vcombine.high %v1215_v9, %v1215_v9  ;;  %v1223_v16 = vrot.slane %v1215_v9, %v4397_v32  ;;  %3718 = vmatprep.subr.bf16.mxu0 %v4122_v15 }
 0x89d   :  { %v1230_v54 = vrot.slane %v1216_v13, %v4397_v32  ;;  %1233 = vst.msk [vmem:[#allocation12 + $0x2] sm:$0x1] %vm488_vm9, %v1223_v16 }
 0x89e   :  { %3720 = vmatpush3.bf16.msra.mxu0 %v4269_v23 }
 0x89f   :  { %1234 = vst.msk [vmem:[#allocation12 + $0xa] sm:$0x1] %vm488_vm9, %v1230_v54  ;;  %v1389_v5 = vpop.permute.xlu0 %1388  ;;  %3727 = vmatprep.subr.bf16.mxu0 %v4122_v15 }
 0x8a0   :  { %v4583_v10 = vsel %vm1382_vm4, %v1389_v5, %v4486_v49  ;;  %v1392_v19 = vsel %vm1382_vm4, %v1389_v5, 0.0 }
 0x8a1   :  { %v1400_v28 = vrot.slane %v1392_v19, %v4397_v32  ;;  %3569 = vmatmul.mubr.msk.f32.vlgmr.msra.gmra.mrb[8].mxu1 %vm302_vm3, %v4583_v10 }
 0x8a2   :  { %3723 = vmatpush3.bf16.msra.mxu1 %v4259_v17  ;;  %3590 = vmatprep.mubr.msk.f32.mxu1 %vm4124_vm2, %v4121_v0 }
 0x8a3   :  { %v1401_v31 = vcombine.high %v1400_v28, %v1400_v28  ;;  %v1408_v18 = vrot.slane %v1400_v28, %v4397_v32  ;;  %3724 = vmatprep.subr.bf16.mxu1 %v4122_v15 }
 0x8a5   :  { %v1415_v36 = vrot.slane %v1401_v31, %v4397_v32  ;;  %1418 = vst.msk [vmem:[#allocation13 + $0x5] sm:$0x1] %vm488_vm9, %v1408_v18 }
 0x8a6   :  { %3726 = vmatpush3.bf16.msra.mxu1 %v4276_v25 }
 0x8a7   :  { %1419 = vst.msk [vmem:[#allocation13 + $0xd] sm:$0x1] %vm488_vm9, %v1415_v36  ;;  %3733 = vmatprep.subr.bf16.mxu1 %v4122_v15 }
 0x96c   :  { %v1492_v49 = vpop.f32.mrb[8].mxu0 }
 0x96d   :  { %v1515_v37 = vadd.f32 %v1492_v49, %v4308_v29  ;;  %v3559_v41 = vpop.f32.mrb[9].mxu0  ;;  %v1497_v52 = vrot.slane %v1492_v49, 5  ;;  %v1498_v35 = vrot.slane %v1492_v49, 6 }
 0x96e   :  { %v1551_v41 = vrot.slane %v4567_v12, 5 }
 0x96f   :  { %v1518_v27 = vrot.slane %v1515_v37, 6  ;;  %v1517_v42 = vrot.slane %v1515_v37, 5  ;;  %v1501_v53 = vadd.f32 %v1497_v52, %v4333_v55  ;;  %v1502_v56 = vadd.f32 %v1498_v35, %v4321_v45 }
 0x970   :  { %v1552_v37 = vrot.slane %v4567_v12, 6 }
 0x971   :  { %1521 = vrot.lane.b32.xlu0 %v1518_v27, %s4123_s11  ;;  %1519 = vrot.lane.b32.xlu1 %v1517_v42, %s4123_s11  ;;  %v3343_v58 = vmul.f32 -1.442695, %v1501_v53  ;;  %v3344_v59 = vmul.f32 -1.442695, %v1502_v56 }
 0x973   :  { %3853 = vpow2.f32 %v3343_v58 }
 0x974   :  { %v1677_v30 = vpop.f32.mrb[8].mxu1  ;;  %3855 = vpow2.f32 %v3344_v59  ;;  %v1736_v59 = vrot.slane %v4583_v10, 4 }
 0x975   :  { %v1700_v26 = vadd.f32 %v1677_v30, %v4310_v33  ;;  %v3570_v46 = vpop.f32.mrb[9].mxu1  ;;  %v1682_v38 = vrot.slane %v1677_v30, 4  ;;  %v1683_v60 = vrot.slane %v1677_v30, 5 }
 0x977   :  { %v1703_v21 = vrot.slane %v1700_v26, 5  ;;  %v1702_v39 = vrot.slane %v1700_v26, 4  ;;  %v1686_v61 = vadd.f32 %v1682_v38, %v4327_v50  ;;  %v1687_v48 = vadd.f32 %v1683_v60, %v4329_v51 }
 0x978   :  { %v1737_v38 = vrot.slane %v4583_v10, 5  ;;  %v4637_v60 = vsel %vm3345_vm5, 1, %v4126_v22 }
 0x979   :  { %1706 = vrot.lane.b32.xlu0 %v1703_v21, %s4123_s11  ;;  %1704 = vrot.lane.b32.xlu1 %v1702_v39, %s4123_s11  ;;  %v3347_v1 = vmul.f32 -1.442695, %v1686_v61  ;;  %v3348_v47 = vmul.f32 -1.442695, %v1687_v48  ;;  %v4640_v61 = vsel %vm3341_vm7, 1, %v4126_v22 }
 0x97b   :  { %3857 = vpow2.f32 %v3347_v1 }
 0x97c   :  { %3859 = vpow2.f32 %v3348_v47 }
 0x97d   :  { %v3854_v2 = vpop.eup %3853 }
 0x97e   :  { %v3856_v3 = vpop.eup %3855  ;;  %v1509_v4 = vadd.f32 1.0, %v3854_v2 }
 0x97f   :  { %v1510_v6 = vadd.f32 1.0, %v3856_v3 }
 0x980   :  { %3861 = vrcp.f32 %v1509_v4 }
 0x981   :  { %3863 = vrcp.f32 %v1510_v6 }
 0x985   :  { %v3858_v7 = vpop.eup %3857 }
 0x986   :  { %v3860_v8 = vpop.eup %3859  ;;  %v1694_v11 = vadd.f32 1.0, %v3858_v7 }
 0x987   :  { %v1695_v34 = vadd.f32 1.0, %v3860_v8 }
 0x988   :  { %3865 = vrcp.f32 %v1694_v11 }
 0x989   :  { %3867 = vrcp.f32 %v1695_v34 }
 0x98a   :  { %v3862_v9 = vpop.eup %3861 }
 0x98b   :  { %v3864_v57 = vpop.eup %3863  ;;  %v1539_v3 = vsub.f32 1.0, %v3862_v9 }
 0x98c   :  { %v1540_v47 = vsub.f32 1.0, %v3864_v57 }
 0x992   :  { %v4610_v19 = vpop.eup %3865 }
 0x993   :  { %v4612_v28 = vpop.eup %3867 }
 0x9e3   :  { %v1522_v13 = vpop.permute.xlu0 %1521  ;;  %v1520_v16 = vpop.permute.xlu1 %1519 }
 0x9e4   :  { %v1526_v54 = vmul.f32 %v3864_v57, %v1522_v13  ;;  %v1525_v5 = vmul.f32 %v3862_v9, %v1520_v16 }
 0x9e6   :  { %1531 = vrot.lane.b32.xlu0 %v1526_v54, %s4123_s11  ;;  %1529 = vrot.lane.b32.xlu1 %v1525_v5, %s4123_s11 }
 0x9eb   :  { %v1707_v31 = vpop.permute.xlu0 %1706  ;;  %v1705_v18 = vpop.permute.xlu1 %1704 }
 0x9ec   :  { %v1711_v36 = vmul.f32 %v4612_v28, %v1707_v31  ;;  %v1710_v49 = vmul.f32 %v4610_v19, %v1705_v18  ;;  %v1725_v31 = vsub.f32 1.0, %v4612_v28  ;;  %v1724_v18 = vsub.f32 1.0, %v4610_v19 }
 0x9ee   :  { %1716 = vrot.lane.b32.xlu0 %v1711_v36, %s4123_s11  ;;  %1714 = vrot.lane.b32.xlu1 %v1710_v49, %s4123_s11 }
 0x9f2   :  { %1555 = vrot.lane.b32.xlu0 %v1552_v37, %s4125_s5  ;;  %1553 = vrot.lane.b32.xlu1 %v1551_v41, %s4125_s5 }
 0xa58   :  { %v1532_v27 = vpop.permute.xlu0 %1531  ;;  %v1530_v42 = vpop.permute.xlu1 %1529 }
 0xa59   :  { %v1536_v30 = vadd.f32 %v1532_v27, %v4321_v45  ;;  %v1535_v26 = vadd.f32 %v1530_v42, %v4333_v55 }
 0xa5b   :  { %3869 = vtanh.f32 %v1536_v30 }
 0xa5c   :  { %3871 = vtanh.f32 %v1535_v26 }
 0xa60   :  { %v1717_v46 = vpop.permute.xlu0 %1716  ;;  %v1715_v21 = vpop.permute.xlu1 %1714 }
 0xa61   :  { %v1721_v39 = vadd.f32 %v1717_v46, %v4329_v51  ;;  %v1720_v52 = vadd.f32 %v1715_v21, %v4327_v50 }
 0xa63   :  { %3873 = vtanh.f32 %v1721_v39 }
 0xa64   :  { %3875 = vtanh.f32 %v1720_v52  ;;  %v1556_v48 = vpop.permute.xlu0 %1555  ;;  %v1554_v1 = vpop.permute.xlu1 %1553 }
 0xa65   :  { %v3870_v35 = vpop.eup %3869  ;;  %v1560_v40 = vmul.f32 %v3864_v57, %v1556_v48  ;;  %v1559_v7 = vmul.f32 %v3862_v9, %v1554_v1 }
 0xa66   :  { %v3872_v53 = vpop.eup %3871  ;;  %1545 = vrot.lane.b32.xlu0 %v3870_v35, %s4127_s19 }
 0xa67   :  { %1543 = vrot.lane.b32.xlu1 %v3872_v53, %s4127_s19 }
 0xa6d   :  { %v3874_v56 = vpop.eup %3873 }
 0xa6e   :  { %v3876_v58 = vpop.eup %3875  ;;  %1730 = vrot.lane.b32.xlu0 %v3874_v56, %s4127_s19 }
 0xa6f   :  { %1728 = vrot.lane.b32.xlu1 %v3876_v58, %s4127_s19 }
 0xa72   :  { %1740 = vrot.lane.b32.xlu0 %v1737_v38, %s4125_s5 }
 0xa73   :  { %1738 = vrot.lane.b32.xlu1 %v1736_v59, %s4125_s5 }
 0xa76   :  { %1750 = vperm.xlu0 %3779, %v4637_v60  }
 0xa77   :  { %1565 = vperm.xlu1 %3780, %v4640_v61  }
 0xad8   :  { %v1546_v2 = vpop.permute.xlu0 %1545 }
 0xad9   :  { %v1550_v4 = vmul.f32 %v1546_v2, %v1540_v47  ;;  %v1544_v6 = vpop.permute.xlu1 %1543 }
 0xada   :  { %v1549_v8 = vmul.f32 %v1544_v6, %v1539_v3 }
 0xadb   :  { %v1562_v11 = vadd.f32 %v1560_v40, %v1550_v4 }
 0xadc   :  { %v1561_v34 = vadd.f32 %v1559_v7, %v1549_v8 }
 0xadd   :  { %v1571_v13 = vrot.slane %v1562_v11, 2 }
 0xade   :  { %v1570_v16 = vrot.slane %v1561_v34, 3 }
 0xae0   :  { %v1731_v22 = vpop.permute.xlu0 %1730  ;;  %v1572_v54 = vsel %vm456_vm6, %v1571_v13, %v1570_v16 }
 0xae1   :  { %1573 = vrot.lane.b32.xlu1 %v1572_v54, %s4127_s19  ;;  %v1729_v5 = vpop.permute.xlu1 %1728  ;;  %v1735_v57 = vmul.f32 %v1731_v22, %v1725_v31 }
 0xae2   :  { %v1734_v37 = vmul.f32 %v1729_v5, %v1724_v18 }
 0xae4   :  { %v1741_v36 = vpop.permute.xlu0 %1740 }
 0xae5   :  { %v1745_v49 = vmul.f32 %v4612_v28, %v1741_v36  ;;  %v1739_v9 = vpop.permute.xlu1 %1738 }
 0xae6   :  { %v1744_v41 = vmul.f32 %v4610_v19, %v1739_v9 }
 0xae7   :  { %v1747_v27 = vadd.f32 %v1745_v49, %v1735_v57 }
 0xae8   :  { %v1746_v42 = vadd.f32 %v1744_v41, %v1734_v37 }
 0xae9   :  { %v1756_v30 = vrot.slane %v1747_v27, 3 }
 0xaea   :  { %v1755_v26 = vrot.slane %v1746_v42, 4 }
 0xaec   :  { %v1757_v46 = vsel %vm456_vm6, %v1756_v30, %v1755_v26 }
 0xaed   :  { %1758 = vrot.lane.b32.xlu0 %v1757_v46, %s4127_s19 }
 0xaf6   :  { %v1566_v21 = vpop.permute.xlu1 %1565 }
 0xaf7   :  { %vm1567_vm8 = vcmp.eq.s32.totalorder %v1566_v21, 1 }
 0xb53   :  { %v1574_v39 = vpop.permute.xlu1 %1573 }
 0xb54   :  { %v4653_v52 = vsel %vm1567_vm8, %v1574_v39, %v4567_v12  ;;  %v1577_v35 = vsel %vm1567_vm8, %v1574_v39, 0.0  ;;  %v1751_v12 = vpop.permute.xlu0 %1750 }
 0xb55   :  { %v1585_v28 = vrot.slane %v1577_v35, %v4397_v32  ;;  %3580 = vmatmul.mubr.msk.f32.vlgmr.msra.gmra.mrb[10].mxu0 %vm302_vm3, %v4653_v52  ;;  %vm1752_vm10 = vcmp.eq.s32.totalorder %v1751_v12, 1 }
 0xb56   :  { %3729 = vmatpush3.bf16.msra.mxu0 %v4256_v14  ;;  %3601 = vmatprep.mubr.msk.f32.mxu0 %vm4124_vm2, %v4121_v0 }
 0xb57   :  { %v1586_v19 = vcombine.high %v1585_v28, %v1585_v28  ;;  %v1593_v53 = vrot.slane %v1585_v28, %v4397_v32  ;;  %3730 = vmatprep.subr.bf16.mxu0 %v4122_v15 }
 0xb59   :  { %v1600_v56 = vrot.slane %v1586_v19, %v4397_v32  ;;  %1603 = vst.msk [vmem:[#allocation12 + $0x3] sm:$0x1] %vm488_vm9, %v1593_v53 }
 0xb5a   :  { %3732 = vmatpush3.bf16.msra.mxu0 %v4269_v23 }
 0xb5b   :  { %1604 = vst.msk [vmem:[#allocation12 + $0xb] sm:$0x1] %vm488_vm9, %v1600_v56  ;;  %3739 = vmatprep.subr.bf16.mxu0 %v4122_v15 }
 0xb5f   :  { %v1759_v58 = vpop.permute.xlu0 %1758 }
 0xb60   :  { %v4669_v38 = vsel %vm1752_vm10, %v1759_v58, %v4583_v10  ;;  %v1762_v59 = vsel %vm1752_vm10, %v1759_v58, 0.0 }
 0xb61   :  { %v1770_v48 = vrot.slane %v1762_v59, %v4397_v32  ;;  %3591 = vmatmul.mubr.msk.f32.vlgmr.msra.gmra.mrb[10].mxu1 %vm302_vm3, %v4669_v38 }
 0xb62   :  { %3735 = vmatpush3.bf16.msra.mxu1 %v4259_v17  ;;  %3612 = vmatprep.mubr.msk.f32.mxu1 %vm4124_vm2, %v4121_v0 }
 0xb63   :  { %v1771_v1 = vcombine.high %v1770_v48, %v1770_v48  ;;  %v1778_v47 = vrot.slane %v1770_v48, %v4397_v32  ;;  %3736 = vmatprep.subr.bf16.mxu1 %v4122_v15 }
 0xb65   :  { %v1785_v2 = vrot.slane %v1771_v1, %v4397_v32  ;;  %1788 = vst.msk [vmem:[#allocation13 + $0x4] sm:$0x1] %vm488_vm9, %v1778_v47 }
 0xb66   :  { %3738 = vmatpush3.bf16.msra.mxu1 %v4276_v25 }
 0xb67   :  { %1789 = vst.msk [vmem:[#allocation13 + $0xc] sm:$0x1] %vm488_vm9, %v1785_v2  ;;  %3745 = vmatprep.subr.bf16.mxu1 %v4122_v15 }
 0xc28   :  { %v1862_v10 = vpop.f32.mrb[10].mxu0 }
 0xc29   :  { %v1885_v3 = vadd.f32 %v1862_v10, %v4308_v29  ;;  %v3581_v40 = vpop.f32.mrb[11].mxu0  ;;  %v1867_v16 = vrot.slane %v1862_v10, 4  ;;  %v1868_v22 = vrot.slane %v1862_v10, 5 }
 0xc2a   :  { %v1921_v40 = vrot.slane %v4653_v52, 4 }
 0xc2b   :  { %v1888_v4 = vrot.slane %v1885_v3, 5  ;;  %v1887_v6 = vrot.slane %v1885_v3, 4  ;;  %v1871_v54 = vadd.f32 %v1867_v16, %v4333_v55  ;;  %v1872_v5 = vadd.f32 %v1868_v22, %v4321_v45 }
 0xc2c   :  { %v1922_v3 = vrot.slane %v4653_v52, 5 }
 0xc2d   :  { %1891 = vrot.lane.b32.xlu0 %v1888_v4, %s4123_s11  ;;  %1889 = vrot.lane.b32.xlu1 %v1887_v6, %s4123_s11  ;;  %v3351_v31 = vmul.f32 -1.442695, %v1871_v54  ;;  %v3352_v18 = vmul.f32 -1.442695, %v1872_v5 }
 0xc2f   :  { %3877 = vpow2.f32 %v3351_v31 }
 0xc30   :  { %3879 = vpow2.f32 %v3352_v18  ;;  %v2107_v18 = vrot.slane %v4669_v38, 6 }
 0xc34   :  { %v2047_v7 = vpop.f32.mrb[10].mxu1 }
 0xc35   :  { %v2070_v8 = vadd.f32 %v2047_v7, %v4310_v33  ;;  %v3592_v11 = vpop.f32.mrb[11].mxu1  ;;  %v2052_v36 = vrot.slane %v2047_v7, 5  ;;  %v2053_v57 = vrot.slane %v2047_v7, 6 }
 0xc37   :  { %v2073_v34 = vrot.slane %v2070_v8, 6  ;;  %v2072_v13 = vrot.slane %v2070_v8, 5  ;;  %v2056_v49 = vadd.f32 %v2052_v36, %v4327_v50  ;;  %v2057_v9 = vadd.f32 %v2053_v57, %v4329_v51 }
 0xc38   :  { %v2106_v36 = vrot.slane %v4669_v38, 5 }
 0xc39   :  { %2076 = vrot.lane.b32.xlu0 %v2073_v34, %s4123_s11  ;;  %2074 = vrot.lane.b32.xlu1 %v2072_v13, %s4123_s11  ;;  %v3355_v37 = vmul.f32 -1.442695, %v2056_v49  ;;  %v3356_v41 = vmul.f32 -1.442695, %v2057_v9  ;;  %v3878_v27 = vpop.eup %3877 }
 0xc3a   :  { %v3880_v42 = vpop.eup %3879  ;;  %v1879_v30 = vadd.f32 1.0, %v3878_v27 }
 0xc3b   :  { %3881 = vpow2.f32 %v3355_v37  ;;  %v1880_v26 = vadd.f32 1.0, %v3880_v42 }
 0xc3c   :  { %3883 = vpow2.f32 %v3356_v41 }
 0xc3d   :  { %3885 = vrcp.f32 %v1879_v30 }
 0xc3e   :  { %3887 = vrcp.f32 %v1880_v26 }
 0xc45   :  { %v3882_v46 = vpop.eup %3881 }
 0xc46   :  { %v3884_v21 = vpop.eup %3883  ;;  %v2064_v39 = vadd.f32 1.0, %v3882_v46 }
 0xc47   :  { %v2065_v35 = vadd.f32 1.0, %v3884_v21  ;;  %v3886_v28 = vpop.eup %3885 }
 0xc48   :  { %v3888_v19 = vpop.eup %3887  ;;  %3889 = vrcp.f32 %v2064_v39  ;;  %v1909_v41 = vsub.f32 1.0, %v3886_v28 }
 0xc49   :  { %3891 = vrcp.f32 %v2065_v35  ;;  %v1910_v9 = vsub.f32 1.0, %v3888_v19 }
 0xc52   :  { %v4696_v59 = vpop.eup %3889 }
 0xc53   :  { %v3892_v48 = vpop.eup %3891 }
 0xc9f   :  { %v1892_v53 = vpop.permute.xlu0 %1891  ;;  %v1890_v56 = vpop.permute.xlu1 %1889 }
 0xca0   :  { %v1896_v12 = vmul.f32 %v3888_v19, %v1892_v53  ;;  %v1895_v58 = vmul.f32 %v3886_v28, %v1890_v56 }
 0xca2   :  { %1901 = vrot.lane.b32.xlu0 %v1896_v12, %s4123_s11  ;;  %1899 = vrot.lane.b32.xlu1 %v1895_v58, %s4123_s11  ;;  %v2095_v12 = vsub.f32 1.0, %v3892_v48  ;;  %v2094_v58 = vsub.f32 1.0, %v4696_v59 }
 0xcab   :  { %v2077_v1 = vpop.permute.xlu0 %2076  ;;  %v2075_v47 = vpop.permute.xlu1 %2074 }
 0xcac   :  { %v2081_v2 = vmul.f32 %v3892_v48, %v2077_v1  ;;  %v2080_v10 = vmul.f32 %v4696_v59, %v2075_v47 }
 0xcae   :  { %2086 = vrot.lane.b32.xlu0 %v2081_v2, %s4123_s11  ;;  %2084 = vrot.lane.b32.xlu1 %v2080_v10, %s4123_s11 }
 0xcb2   :  { %1925 = vrot.lane.b32.xlu0 %v1922_v3, %s4125_s5  ;;  %1923 = vrot.lane.b32.xlu1 %v1921_v40, %s4125_s5 }
 0xd14   :  { %v1902_v4 = vpop.permute.xlu0 %1901  ;;  %v1900_v6 = vpop.permute.xlu1 %1899 }
 0xd15   :  { %v1906_v7 = vadd.f32 %v1902_v4, %v4321_v45  ;;  %v1905_v8 = vadd.f32 %v1900_v6, %v4333_v55 }
 0xd17   :  { %3893 = vtanh.f32 %v1906_v7 }
 0xd18   :  { %3895 = vtanh.f32 %v1905_v8 }
 0xd20   :  { %v2087_v11 = vpop.permute.xlu0 %2086  ;;  %v2085_v34 = vpop.permute.xlu1 %2084 }
 0xd21   :  { %v3894_v13 = vpop.eup %3893  ;;  %v2091_v16 = vadd.f32 %v2087_v11, %v4329_v51  ;;  %v2090_v22 = vadd.f32 %v2085_v34, %v4327_v50 }
 0xd22   :  { %v3896_v54 = vpop.eup %3895  ;;  %1915 = vrot.lane.b32.xlu0 %v3894_v13, %s4127_s19 }
 0xd23   :  { %3897 = vtanh.f32 %v2091_v16  ;;  %1913 = vrot.lane.b32.xlu1 %v3896_v54, %s4127_s19 }
 0xd24   :  { %3899 = vtanh.f32 %v2090_v22  ;;  %v1926_v57 = vpop.permute.xlu0 %1925  ;;  %v1924_v49 = vpop.permute.xlu1 %1923 }
 0xd25   :  { %v1930_v27 = vmul.f32 %v3888_v19, %v1926_v57  ;;  %v1929_v26 = vmul.f32 %v3886_v28, %v1924_v49 }
 0xd2d   :  { %v3898_v5 = vpop.eup %3897 }
 0xd2e   :  { %v3900_v31 = vpop.eup %3899  ;;  %2100 = vrot.lane.b32.xlu0 %v3898_v5, %s4127_s19 }
 0xd2f   :  { %2098 = vrot.lane.b32.xlu1 %v3900_v31, %s4127_s19 }
 0xd32   :  { %2110 = vrot.lane.b32.xlu0 %v2107_v18, %s4125_s5 }
 0xd33   :  { %2108 = vrot.lane.b32.xlu1 %v2106_v36, %s4125_s5 }
 0xd36   :  { %2120 = vperm.xlu0 %3779, %v4640_v61  }
 0xd37   :  { %1935 = vperm.xlu1 %3780, %v4637_v60  }
 0xd94   :  { %v1916_v37 = vpop.permute.xlu0 %1915 }
 0xd95   :  { %v1920_v42 = vmul.f32 %v1916_v37, %v1910_v9  ;;  %v1914_v30 = vpop.permute.xlu1 %1913 }
 0xd96   :  { %v1919_v46 = vmul.f32 %v1914_v30, %v1909_v41 }
 0xd97   :  { %v1932_v21 = vadd.f32 %v1930_v27, %v1920_v42 }
 0xd98   :  { %v1931_v39 = vadd.f32 %v1929_v26, %v1919_v46 }
 0xd99   :  { %v1941_v35 = vrot.slane %v1932_v21, 3 }
 0xd9a   :  { %v1940_v53 = vrot.slane %v1931_v39, 4 }
 0xd9c   :  { %v1942_v56 = vsel %vm456_vm6, %v1941_v35, %v1940_v53 }
 0xd9d   :  { %1943 = vrot.lane.b32.xlu1 %v1942_v56, %s4127_s19 }
 0xda0   :  { %v2101_v61 = vpop.permute.xlu0 %2100 }
 0xda1   :  { %v2099_v60 = vpop.permute.xlu1 %2098  ;;  %v2105_v47 = vmul.f32 %v2101_v61, %v2095_v12 }
 0xda2   :  { %v2104_v10 = vmul.f32 %v2099_v60, %v2094_v58 }
 0xda4   :  { %v2111_v1 = vpop.permute.xlu0 %2110 }
 0xda5   :  { %v2115_v19 = vmul.f32 %v3892_v48, %v2111_v1  ;;  %v2109_v2 = vpop.permute.xlu1 %2108 }
 0xda6   :  { %v2114_v28 = vmul.f32 %v4696_v59, %v2109_v2 }
 0xda7   :  { %v2117_v3 = vadd.f32 %v2115_v19, %v2105_v47 }
 0xda8   :  { %v2116_v40 = vadd.f32 %v2114_v28, %v2104_v10 }
 0xda9   :  { %v2126_v4 = vrot.slane %v2117_v3, 2 }
 0xdaa   :  { %v2125_v6 = vrot.slane %v2116_v40, 3 }
 0xdac   :  { %v2127_v7 = vsel %vm456_vm6, %v2126_v4, %v2125_v6 }
 0xdad   :  { %2128 = vrot.lane.b32.xlu0 %v2127_v7, %s4127_s19 }
 0xdb6   :  { %v1936_v8 = vpop.permute.xlu1 %1935 }
 0xdb7   :  { %vm1937_vm11 = vcmp.eq.s32.totalorder %v1936_v8, 1 }
 0xe0f   :  { %v1944_v11 = vpop.permute.xlu1 %1943 }
 0xe10   :  { %v4726_v34 = vsel %vm1937_vm11, %v1944_v11, %v4653_v52  ;;  %v1947_v13 = vsel %vm1937_vm11, %v1944_v11, 0.0  ;;  %v2121_v52 = vpop.permute.xlu0 %2120 }
 0xe11   :  { %v1955_v48 = vrot.slane %v1947_v13, %v4397_v32  ;;  %3602 = vmatmul.mubr.msk.f32.vlgmr.msra.gmra.mrb[12].mxu0 %vm302_vm3, %v4726_v34  ;;  %vm2122_vm12 = vcmp.eq.s32.totalorder %v2121_v52, 1 }
 0xe12   :  { %3741 = vmatpush3.bf16.msra.mxu0 %v4256_v14  ;;  %3623 = vmatprep.mubr.msk.f32.mxu0 %vm4124_vm2, %v4121_v0 }
 0xe13   :  { %v1956_v59 = vcombine.high %v1955_v48, %v1955_v48  ;;  %v1963_v16 = vrot.slane %v1955_v48, %v4397_v32  ;;  %3742 = vmatprep.subr.bf16.mxu0 %v4122_v15 }
 0xe15   :  { %v1970_v22 = vrot.slane %v1956_v59, %v4397_v32  ;;  %1973 = vst.msk [vmem:[#allocation12 + $0x4] sm:$0x1] %vm488_vm9, %v1963_v16 }
 0xe16   :  { %3744 = vmatpush3.bf16.msra.mxu0 %v4269_v23 }
 0xe17   :  { %1974 = vst.msk [vmem:[#allocation12 + $0xc] sm:$0x1] %vm488_vm9, %v1970_v22  ;;  %3751 = vmatprep.subr.bf16.mxu0 %v4122_v15 }
 0xe1f   :  { %v2129_v54 = vpop.permute.xlu0 %2128 }
 0xe20   :  { %v4742_v5 = vsel %vm2122_vm12, %v2129_v54, %v4669_v38  ;;  %v2132_v31 = vsel %vm2122_vm12, %v2129_v54, 0.0 }
 0xe21   :  { %v2140_v18 = vrot.slane %v2132_v31, %v4397_v32  ;;  %3613 = vmatmul.mubr.msk.f32.vlgmr.msra.gmra.mrb[12].mxu1 %vm302_vm3, %v4742_v5 }
 0xe22   :  { %3747 = vmatpush3.bf16.msra.mxu1 %v4259_v17  ;;  %3634 = vmatprep.mubr.msk.f32.mxu1 %vm4124_vm2, %v4121_v0 }
 0xe23   :  { %v2141_v36 = vcombine.high %v2140_v18, %v2140_v18  ;;  %v2148_v57 = vrot.slane %v2140_v18, %v4397_v32  ;;  %3748 = vmatprep.subr.bf16.mxu1 %v4122_v15 }
 0xe25   :  { %v2155_v49 = vrot.slane %v2141_v36, %v4397_v32  ;;  %2158 = vst.msk [vmem:[#allocation13 + $0x3] sm:$0x1] %vm488_vm9, %v2148_v57 }
 0xe26   :  { %3750 = vmatpush3.bf16.msra.mxu1 %v4276_v25 }
 0xe27   :  { %2159 = vst.msk [vmem:[#allocation13 + $0xb] sm:$0x1] %vm488_vm9, %v2155_v49  ;;  %3757 = vmatprep.subr.bf16.mxu1 %v4122_v15  ;;  %v2291_v49 = vrot.slane %v4726_v34, 3 }
 0xee4   :  { %v2232_v38 = vpop.f32.mrb[12].mxu0 }
 0xee5   :  { %v2255_v9 = vadd.f32 %v2232_v38, %v4308_v29  ;;  %v3603_v37 = vpop.f32.mrb[13].mxu0  ;;  %v2237_v39 = vrot.slane %v2232_v38, 3  ;;  %v2238_v35 = vrot.slane %v2232_v38, 4  ;;  %v2292_v38 = vrot.slane %v4726_v34, 4 }
 0xee7   :  { %v2257_v41 = vrot.slane %v2255_v9, 3  ;;  %v2258_v27 = vrot.slane %v2255_v9, 4  ;;  %v2241_v53 = vadd.f32 %v2237_v39, %v4333_v55  ;;  %v2242_v56 = vadd.f32 %v2238_v35, %v4321_v45 }
 0xee9   :  { %2261 = vrot.lane.b32.xlu0 %v2258_v27, %s4123_s11  ;;  %2259 = vrot.lane.b32.xlu1 %v2257_v41, %s4123_s11  ;;  %v3359_v61 = vmul.f32 -1.442695, %v2241_v53  ;;  %v3360_v60 = vmul.f32 -1.442695, %v2242_v56  ;;  %v2476_v56 = vrot.slane %v4742_v5, 6 }
 0xeeb   :  { %3901 = vpow2.f32 %v3359_v61  ;;  %v2477_v61 = vrot.slane %v4742_v5, 7 }
 0xeec   :  { %3903 = vpow2.f32 %v3360_v60 }
 0xef4   :  { %v2417_v42 = vpop.f32.mrb[12].mxu1 }
 0xef5   :  { %v2440_v30 = vadd.f32 %v2417_v42, %v4310_v33  ;;  %v3614_v26 = vpop.f32.mrb[13].mxu1  ;;  %v2422_v12 = vrot.slane %v2417_v42, 6  ;;  %v2423_v58 = vrot.slane %v2417_v42, 7  ;;  %v3902_v1 = vpop.eup %3901 }
 0xef6   :  { %v3904_v47 = vpop.eup %3903  ;;  %v2249_v10 = vadd.f32 1.0, %v3902_v1 }
 0xef7   :  { %v2442_v46 = vrot.slane %v2440_v30, 6  ;;  %v2443_v21 = vrot.slane %v2440_v30, 7  ;;  %v2426_v19 = vadd.f32 %v2422_v12, %v4327_v50  ;;  %v2427_v2 = vadd.f32 %v2423_v58, %v4329_v51 }
 0xef8   :  { %v2250_v28 = vadd.f32 1.0, %v3904_v47  ;;  %3905 = vrcp.f32 %v2249_v10 }
 0xef9   :  { %2444 = vrot.lane.b32.xlu1 %v2442_v46, %s4123_s11  ;;  %2446 = vrot.lane.b32.xlu0 %v2443_v21, %s4123_s11  ;;  %v3363_v3 = vmul.f32 -1.442695, %v2426_v19  ;;  %v3364_v40 = vmul.f32 -1.442695, %v2427_v2 }
 0xefa   :  { %3907 = vrcp.f32 %v2250_v28 }
 0xefb   :  { %3909 = vpow2.f32 %v3363_v3 }
 0xefc   :  { %3911 = vpow2.f32 %v3364_v40 }
 0xf02   :  { %v3906_v4 = vpop.eup %3905 }
 0xf03   :  { %v2279_v47 = vsub.f32 1.0, %v3906_v4 }
 0xf04   :  { %v3908_v6 = vpop.eup %3907 }
 0xf05   :  { %v3910_v7 = vpop.eup %3909  ;;  %v2280_v58 = vsub.f32 1.0, %v3908_v6 }
 0xf06   :  { %v3912_v8 = vpop.eup %3911  ;;  %v2434_v16 = vadd.f32 1.0, %v3910_v7 }
 0xf07   :  { %v2435_v22 = vadd.f32 1.0, %v3912_v8 }
 0xf08   :  { %3913 = vrcp.f32 %v2434_v16 }
 0xf09   :  { %3915 = vrcp.f32 %v2435_v22 }
 0xf12   :  { %v3914_v52 = vpop.eup %3913 }
 0xf13   :  { %v3916_v31 = vpop.eup %3915 }
 0xf5b   :  { %v2262_v11 = vpop.permute.xlu0 %2261  ;;  %v2260_v13 = vpop.permute.xlu1 %2259 }
 0xf5c   :  { %v2266_v48 = vmul.f32 %v3908_v6, %v2262_v11  ;;  %v2265_v59 = vmul.f32 %v3906_v4, %v2260_v13 }
 0xf5e   :  { %2271 = vrot.lane.b32.xlu0 %v2266_v48, %s4123_s11  ;;  %2269 = vrot.lane.b32.xlu1 %v2265_v59, %s4123_s11  ;;  %v2464_v48 = vsub.f32 1.0, %v3914_v52  ;;  %v2465_v59 = vsub.f32 1.0, %v3916_v31 }
 0xf6b   :  { %v2445_v54 = vpop.permute.xlu1 %2444  ;;  %v2447_v18 = vpop.permute.xlu0 %2446 }
 0xf6c   :  { %v2450_v36 = vmul.f32 %v3914_v52, %v2445_v54  ;;  %v2451_v57 = vmul.f32 %v3916_v31, %v2447_v18 }
 0xf6e   :  { %2454 = vrot.lane.b32.xlu1 %v2450_v36, %s4123_s11  ;;  %2456 = vrot.lane.b32.xlu0 %v2451_v57, %s4123_s11 }
 0xf72   :  { %2293 = vrot.lane.b32.xlu1 %v2291_v49, %s4125_s5  ;;  %2295 = vrot.lane.b32.xlu0 %v2292_v38, %s4125_s5 }
 0xfd0   :  { %v2272_v9 = vpop.permute.xlu0 %2271  ;;  %v2270_v37 = vpop.permute.xlu1 %2269 }
 0xfd1   :  { %v2276_v41 = vadd.f32 %v2272_v9, %v4321_v45  ;;  %v2275_v27 = vadd.f32 %v2270_v37, %v4333_v55 }
 0xfd3   :  { %3917 = vtanh.f32 %v2276_v41 }
 0xfd4   :  { %3919 = vtanh.f32 %v2275_v27 }
 0xfdd   :  { %v3918_v42 = vpop.eup %3917 }
 0xfde   :  { %v3920_v30 = vpop.eup %3919  ;;  %2285 = vrot.lane.b32.xlu0 %v3918_v42, %s4127_s19 }
 0xfdf   :  { %2283 = vrot.lane.b32.xlu1 %v3920_v30, %s4127_s19 }
 0xfe0   :  { %v2455_v26 = vpop.permute.xlu1 %2454  ;;  %v2457_v46 = vpop.permute.xlu0 %2456 }
 0xfe1   :  { %v2460_v21 = vadd.f32 %v2455_v26, %v4327_v50  ;;  %v2461_v39 = vadd.f32 %v2457_v46, %v4329_v51 }
 0xfe3   :  { %3921 = vtanh.f32 %v2460_v21 }
 0xfe4   :  { %3923 = vtanh.f32 %v2461_v39  ;;  %v2296_v60 = vpop.permute.xlu0 %2295  ;;  %v2294_v12 = vpop.permute.xlu1 %2293 }
 0xfe5   :  { %v2300_v19 = vmul.f32 %v3908_v6, %v2296_v60  ;;  %v2299_v28 = vmul.f32 %v3906_v4, %v2294_v12 }
 0xfed   :  { %v3922_v35 = vpop.eup %3921 }
 0xfee   :  { %v3924_v53 = vpop.eup %3923  ;;  %2468 = vrot.lane.b32.xlu1 %v3922_v35, %s4127_s19 }
 0xfef   :  { %2470 = vrot.lane.b32.xlu0 %v3924_v53, %s4127_s19 }
 0xff2   :  { %2478 = vrot.lane.b32.xlu1 %v2476_v56, %s4125_s5 }
 0xff3   :  { %2480 = vrot.lane.b32.xlu0 %v2477_v61, %s4125_s5 }
 0xff6   :  { %2305 = vperm.xlu1 %3780, %v4553_v20  }
 0xff7   :  { %2490 = vperm.xlu0 %3779, %v4556_v24  }
0x1050   :  { %v2286_v1 = vpop.permute.xlu0 %2285 }
0x1051   :  { %v2290_v2 = vmul.f32 %v2286_v1, %v2280_v58  ;;  %v2284_v10 = vpop.permute.xlu1 %2283 }
0x1052   :  { %v2289_v3 = vmul.f32 %v2284_v10, %v2279_v47 }
0x1053   :  { %v2302_v40 = vadd.f32 %v2300_v19, %v2290_v2 }
0x1054   :  { %v2301_v7 = vadd.f32 %v2299_v28, %v2289_v3 }
0x1055   :  { %v2311_v8 = vrot.slane %v2302_v40, 4 }
0x1056   :  { %v2310_v11 = vrot.slane %v2301_v7, 5 }
0x1058   :  { %v2312_v13 = vsel %vm456_vm6, %v2311_v8, %v2310_v11 }
0x1059   :  { %2313 = vrot.lane.b32.xlu1 %v2312_v13, %s4127_s19 }
0x1060   :  { %v2469_v20 = vpop.permute.xlu1 %2468 }
0x1061   :  { %v2471_v24 = vpop.permute.xlu0 %2470  ;;  %v2474_v22 = vmul.f32 %v2469_v20, %v2464_v48 }
0x1062   :  { %v2475_v18 = vmul.f32 %v2471_v24, %v2465_v59 }
0x1064   :  { %v2479_v16 = vpop.permute.xlu1 %2478 }
0x1065   :  { %v2481_v54 = vpop.permute.xlu0 %2480  ;;  %v2484_v6 = vmul.f32 %v3914_v52, %v2479_v16 }
0x1066   :  { %v2485_v36 = vmul.f32 %v3916_v31, %v2481_v54 }
0x1067   :  { %v2486_v4 = vadd.f32 %v2484_v6, %v2474_v22 }
0x1068   :  { %v2487_v57 = vadd.f32 %v2485_v36, %v2475_v18 }
0x1069   :  { %v2495_v49 = vrot.slane %v2486_v4, 2 }
0x106a   :  { %v2496_v38 = vrot.slane %v2487_v57, 1 }
0x106c   :  { %v2497_v9 = vsel %vm456_vm6, %v2496_v38, %v2495_v49 }
0x106d   :  { %2498 = vrot.lane.b32.xlu0 %v2497_v9, %s4127_s19 }
0x1075   :  { %v2306_v37 = vpop.permute.xlu1 %2305 }
0x1076   :  { %vm2307_vm13 = vcmp.eq.s32.totalorder %v2306_v37, 1 }
0x10cb   :  { %v2314_v41 = vpop.permute.xlu1 %2313 }
0x10cc   :  { %v4794_v27 = vsel %vm2307_vm13, %v2314_v41, %v4726_v34  ;;  %v2317_v42 = vsel %vm2307_vm13, %v2314_v41, 0.0  ;;  %v2491_v34 = vpop.permute.xlu0 %2490 }
0x10cd   :  { %v2325_v30 = vrot.slane %v2317_v42, %v4397_v32  ;;  %3624 = vmatmul.mubr.msk.f32.vlgmr.msra.gmra.mrb[14].mxu0 %vm302_vm3, %v4794_v27  ;;  %vm2492_vm14 = vcmp.eq.s32.totalorder %v2491_v34, 1 }
0x10ce   :  { %3753 = vmatpush3.bf16.msra.mxu0 %v4256_v14  ;;  %3645 = vmatprep.mubr.msk.f32.mxu0 %vm4124_vm2, %v4121_v0 }
0x10cf   :  { %v2326_v52 = vcombine.high %v2325_v30, %v2325_v30  ;;  %v2333_v31 = vrot.slane %v2325_v30, %v4397_v32  ;;  %3754 = vmatprep.subr.bf16.mxu0 %v4122_v15  ;;  %v2662_v30 = vrot.slane %v4794_v27, 3 }
0x10d1   :  { %v2340_v26 = vrot.slane %v2326_v52, %v4397_v32  ;;  %2343 = vst.msk [vmem:[#allocation12 + $0x5] sm:$0x1] %vm488_vm9, %v2333_v31  ;;  %v2661_v52 = vrot.slane %v4794_v27, 2 }
0x10d2   :  { %3756 = vmatpush3.bf16.msra.mxu0 %v4269_v23 }
0x10d3   :  { %2344 = vst.msk [vmem:[#allocation12 + $0xd] sm:$0x1] %vm488_vm9, %v2340_v26 }
0x10df   :  { %v2499_v46 = vpop.permute.xlu0 %2498 }
0x10e0   :  { %v4809_v14 = vsel %vm2492_vm14, %v2499_v46, %v4742_v5  ;;  %v2502_v21 = vsel %vm2492_vm14, %v2499_v46, 0.0 }
0x10e1   :  { %v2510_v39 = vrot.slane %v2502_v21, %v4397_v32  ;;  %3635 = vmatmul.mubr.msk.f32.vlgmr.msra.gmra.mrb[14].mxu1 %vm302_vm3, %v4809_v14  ;;  %v2844_v31 = vrot.slane %v4809_v14, 7 }
0x10e2   :  { %3759 = vmatpush3.bf16.msra.mxu1 %v4259_v17  ;;  %3656 = vmatprep.mubr.msk.f32.mxu1 %vm4124_vm2, %v4121_v0 }
0x10e3   :  { %v2511_v23 = vcombine.high %v2510_v39, %v2510_v39  ;;  %v2518_v35 = vrot.slane %v2510_v39, %v4397_v32  ;;  %3760 = vmatprep.subr.bf16.mxu1 %v4122_v15 }
0x10e5   :  { %v2525_v53 = vrot.slane %v2511_v23, %v4397_v32  ;;  %2528 = vst.msk [vmem:[#allocation13 + $0x2] sm:$0x1] %vm488_vm9, %v2518_v35 }
0x10e6   :  { %3762 = vmatpush3.bf16.msra.mxu1 %v4276_v25 }
0x10e7   :  { %2529 = vst.msk [vmem:[#allocation13 + $0xa] sm:$0x1] %vm488_vm9, %v2525_v53 }
0x11a0   :  { %v2602_v5 = vpop.f32.mrb[14].mxu0 }
0x11a1   :  { %v2625_v56 = vadd.f32 %v2602_v5, %v4308_v29  ;;  %v3625_v17 = vpop.f32.mrb[15].mxu0  ;;  %v2607_v25 = vrot.slane %v2602_v5, 2  ;;  %v2608_v1 = vrot.slane %v2602_v5, 3 }
0x11a3   :  { %v2627_v61 = vrot.slane %v2625_v56, 2  ;;  %v2628_v60 = vrot.slane %v2625_v56, 3  ;;  %v2611_v47 = vadd.f32 %v2607_v25, %v4333_v55  ;;  %v2612_v19 = vadd.f32 %v2608_v1, %v4321_v45 }
0x11a5   :  { %2631 = vrot.lane.b32.xlu0 %v2628_v60, %s4123_s11  ;;  %2629 = vrot.lane.b32.xlu1 %v2627_v61, %s4123_s11  ;;  %v3367_v2 = vmul.f32 -1.442695, %v2611_v47  ;;  %v3368_v10 = vmul.f32 -1.442695, %v2612_v19 }
0x11a7   :  { %3925 = vpow2.f32 %v3367_v2 }
0x11a8   :  { %3927 = vpow2.f32 %v3368_v10 }
0x11b1   :  { %v3926_v3 = vpop.eup %3925 }
0x11b2   :  { %v3928_v40 = vpop.eup %3927  ;;  %v2619_v8 = vadd.f32 1.0, %v3926_v3 }
0x11b3   :  { %v2620_v13 = vadd.f32 1.0, %v3928_v40 }
0x11b4   :  { %v2787_v0 = vpop.f32.mrb[14].mxu1  ;;  %3929 = vrcp.f32 %v2619_v8 }
0x11b5   :  { %v2809_v15 = vadd.f32 %v2787_v0, %v4310_v33  ;;  %v3636_v12 = vpop.f32.mrb[15].mxu1  ;;  %v2792_v28 = vrot.slane %v2787_v0, 7  ;;  %v2796_v7 = vadd.f32 %v2787_v0, %v4329_v51  ;;  %3931 = vrcp.f32 %v2620_v13 }
0x11b7   :  { %v2811_v58 = vrot.slane %v2809_v15, 7  ;;  %2814 = vrot.lane.b32.xlu0 %v2809_v15, %s4123_s11  ;;  %v2795_v11 = vadd.f32 %v2792_v28, %v4327_v50  ;;  %v3372_v20 = vmul.f32 -1.442695, %v2796_v7 }
0x11b9   :  { %2812 = vrot.lane.b32.xlu1 %v2811_v58, %s4123_s11  ;;  %v3371_v24 = vmul.f32 -1.442695, %v2795_v11  ;;  %3933 = vpow2.f32 %v3372_v20 }
0x11bb   :  { %3935 = vpow2.f32 %v3371_v24 }
0x11be   :  { %v3930_v48 = vpop.eup %3929 }
0x11bf   :  { %v3932_v59 = vpop.eup %3931  ;;  %v2649_v25 = vsub.f32 1.0, %v3930_v48 }
0x11c0   :  { %v2650_v12 = vsub.f32 1.0, %v3932_v59 }
0x11c3   :  { %v3934_v54 = vpop.eup %3933 }
0x11c4   :  { %v2804_v4 = vadd.f32 1.0, %v3934_v54 }
0x11c5   :  { %v3936_v36 = vpop.eup %3935 }
0x11c6   :  { %v2803_v57 = vadd.f32 1.0, %v3936_v36  ;;  %3937 = vrcp.f32 %v2804_v4 }
0x11c8   :  { %3939 = vrcp.f32 %v2803_v57 }
0x11d0   :  { %v4835_v49 = vpop.eup %3937 }
0x11d2   :  { %v3940_v37 = vpop.eup %3939 }
0x1217   :  { %v2632_v16 = vpop.permute.xlu0 %2631  ;;  %v2630_v22 = vpop.permute.xlu1 %2629 }
0x1218   :  { %v2636_v6 = vmul.f32 %v3932_v59, %v2632_v16  ;;  %v2635_v18 = vmul.f32 %v3930_v48, %v2630_v22 }
0x121a   :  { %2641 = vrot.lane.b32.xlu0 %v2636_v6, %s4123_s11  ;;  %2639 = vrot.lane.b32.xlu1 %v2635_v18, %s4123_s11 }
0x1229   :  { %v2815_v38 = vpop.permute.xlu0 %2814 }
0x122a   :  { %v2819_v9 = vmul.f32 %v4835_v49, %v2815_v38 }
0x122b   :  { %v2813_v41 = vpop.permute.xlu1 %2812 }
0x122c   :  { %v2818_v42 = vmul.f32 %v3940_v37, %v2813_v41  ;;  %2824 = vrot.lane.b32.xlu0 %v2819_v9, %s4123_s11 }
0x122e   :  { %2822 = vrot.lane.b32.xlu1 %v2818_v42, %s4123_s11 }
0x1230   :  { %2665 = vrot.lane.b32.xlu0 %v2662_v30, %s4125_s5 }
0x1232   :  { %2663 = vrot.lane.b32.xlu1 %v2661_v52, %s4125_s5 }
0x1234   :  { %2845 = vrot.lane.b32.xlu0 %v2844_v31, %s4125_s5 }
0x128c   :  { %v2642_v26 = vpop.permute.xlu0 %2641  ;;  %v2640_v34 = vpop.permute.xlu1 %2639 }
0x128d   :  { %v2646_v46 = vadd.f32 %v2642_v26, %v4321_v45  ;;  %v2645_v21 = vadd.f32 %v2640_v34, %v4333_v55 }
0x128f   :  { %3941 = vtanh.f32 %v2646_v46 }
0x1290   :  { %3943 = vtanh.f32 %v2645_v21 }
0x1299   :  { %v3942_v39 = vpop.eup %3941 }
0x129a   :  { %v3944_v23 = vpop.eup %3943  ;;  %2655 = vrot.lane.b32.xlu0 %v3942_v39, %s4127_s19 }
0x129b   :  { %2653 = vrot.lane.b32.xlu1 %v3944_v23, %s4127_s19 }
0x129e   :  { %2847 = vrot.lane.b32.xlu0 %v4809_v14, %s4125_s5  ;;  %v2825_v35 = vpop.permute.xlu0 %2824 }
0x129f   :  { %v2829_v56 = vadd.f32 %v2825_v35, %v4329_v51 }
0x12a0   :  { %v2823_v53 = vpop.permute.xlu1 %2822 }
0x12a1   :  { %v2828_v5 = vadd.f32 %v2823_v53, %v4327_v50 }
0x12a2   :  { %2857 = vperm.xlu0 %3779, %v4470_v62   ;;  %v2666_v60 = vpop.permute.xlu0 %2665 }
0x12a3   :  { %3945 = vtanh.f32 %v2828_v5  ;;  %v2670_v1 = vmul.f32 %v3932_v59, %v2666_v60  ;;  %v2833_v59 = vsub.f32 1.0, %v4835_v49 }
0x12a4   :  { %3947 = vtanh.f32 %v2829_v56  ;;  %v2664_v15 = vpop.permute.xlu1 %2663 }
0x12a5   :  { %v2669_v19 = vmul.f32 %v3930_v48, %v2664_v15 }
0x12a6   :  { %v2846_v0 = vpop.permute.xlu0 %2845 }
0x12a7   :  { %v2851_v11 = vmul.f32 %v3940_v37, %v2846_v0 }
0x12ad   :  { %v3946_v17 = vpop.eup %3945 }
0x12ae   :  { %2836 = vrot.lane.b32.xlu1 %v3946_v17, %s4127_s19  ;;  %v3948_v61 = vpop.eup %3947 }
0x12b2   :  { %2838 = vrot.lane.b32.xlu1 %v3948_v61, %s4127_s19 }
0x12b6   :  { %2675 = vperm.xlu1 %3780, %v4473_v63   ;;  %v2832_v63 = vsub.f32 1.0, %v3940_v37 }
0x130c   :  { %v2656_v58 = vpop.permute.xlu0 %2655 }
0x130d   :  { %v2660_v62 = vmul.f32 %v2656_v58, %v2650_v12  ;;  %v2654_v47 = vpop.permute.xlu1 %2653 }
0x130e   :  { %v2659_v2 = vmul.f32 %v2654_v47, %v2649_v25 }
0x130f   :  { %v2672_v10 = vadd.f32 %v2670_v1, %v2660_v62 }
0x1310   :  { %v2671_v28 = vadd.f32 %v2669_v19, %v2659_v2  ;;  %v2848_v20 = vpop.permute.xlu0 %2847 }
0x1311   :  { %v2681_v3 = vrot.slane %v2672_v10, 5  ;;  %v2852_v48 = vmul.f32 %v4835_v49, %v2848_v20 }
0x1312   :  { %v2680_v40 = vrot.slane %v2671_v28, 6 }
0x1314   :  { %v2682_v7 = vsel %vm456_vm6, %v2681_v3, %v2680_v40 }
0x1315   :  { %2683 = vrot.lane.b32.xlu1 %v2682_v7, %s4127_s19 }
0x1320   :  { %v2837_v8 = vpop.permute.xlu1 %2836 }
0x1321   :  { %v2842_v13 = vmul.f32 %v2837_v8, %v2832_v63  ;;  %v2858_v42 = vpop.permute.xlu0 %2857 }
0x1322   :  { %vm2859_vm15 = vcmp.eq.s32.totalorder %v2858_v42, 1 }
0x1323   :  { %v2853_v24 = vadd.f32 %v2851_v11, %v2842_v13 }
0x1324   :  { %v2839_v16 = vpop.permute.xlu1 %2838 }
0x1325   :  { %v2843_v22 = vmul.f32 %v2839_v16, %v2833_v59  ;;  %v2862_v54 = vrot.slane %v2853_v24, 1 }
0x1327   :  { %v2854_v6 = vadd.f32 %v2852_v48, %v2843_v22 }
0x1329   :  { %v2863_v18 = vsel %vm456_vm6, %v2854_v6, %v2862_v54 }
0x132a   :  { %2864 = vrot.lane.b32.xlu0 %v2863_v18, %s4127_s19 }
0x1335   :  { %v2676_v36 = vpop.permute.xlu1 %2675 }
0x1336   :  { %vm2677_vm2 = vcmp.eq.s32.totalorder %v2676_v36, 1 }
0x1387   :  { %v2684_v4 = vpop.permute.xlu1 %2683 }
0x1388   :  { %v4865_v57 = vsel %vm2677_vm2, %v2684_v4, %v4794_v27  ;;  %v2687_v38 = vsel %vm2677_vm2, %v2684_v4, 0.0 }
0x1389   :  { %v2695_v9 = vrot.slane %v2687_v38, %v4397_v32  ;;  %3646 = vmatmul.mubr.msk.f32.vlgmr.msra.gmra.mrb[16].mxu0 %vm302_vm3, %v4865_v57  ;;  %v3028_v18 = vrot.slane %v4865_v57, 2  ;;  %v3027_v36 = vrot.slane %v4865_v57, 1 }
0x138b   :  { %v2696_v49 = vcombine.high %v2695_v9, %v2695_v9  ;;  %v2703_v37 = vrot.slane %v2695_v9, %v4397_v32 }
0x138d   :  { %v2710_v41 = vrot.slane %v2696_v49, %v4397_v32  ;;  %2713 = vst.msk [vmem:[#allocation12 + $0x6] sm:$0x1] %vm488_vm9, %v2703_v37 }
0x138f   :  { %2714 = vst.msk [vmem:[#allocation12 + $0xe] sm:$0x1] %vm488_vm9, %v2710_v41 }
0x139c   :  { %v2865_v30 = vpop.permute.xlu0 %2864 }
0x139d   :  { %v4875_v27 = vsel %vm2859_vm15, %v2865_v30, %v4809_v14  ;;  %v2868_v52 = vsel %vm2859_vm15, %v2865_v30, 0.0 }
0x139e   :  { %v2876_v31 = vrot.slane %v2868_v52, %v4397_v32  ;;  %3657 = vmatmul.mubr.msk.f32.vlgmr.msra.gmra.mrb[16].mxu1 %vm302_vm3, %v4875_v27  ;;  %v3210_v4 = vrot.slane %v4875_v27, 1 }
0x13a0   :  { %v2877_v26 = vcombine.high %v2876_v31, %v2876_v31  ;;  %v2884_v34 = vrot.slane %v2876_v31, %v4397_v32 }
0x13a2   :  { %v2891_v46 = vrot.slane %v2877_v26, %v4397_v32  ;;  %2894 = vst.msk [vmem:[#allocation13 + $0x1] sm:$0x1] %vm488_vm9, %v2884_v34 }
0x13a4   :  { %2895 = vst.msk [vmem:[#allocation13 + $0x9] sm:$0x1] %vm488_vm9, %v2891_v46 }
0x145c   :  { %v2968_v21 = vpop.f32.mrb[16].mxu0 }
0x145d   :  { %v2991_v39 = vadd.f32 %v2968_v21, %v4308_v29  ;;  %v3647_v14 = vpop.f32.mrb[17].mxu0  ;;  %v2973_v61 = vrot.slane %v2968_v21, 1  ;;  %v2974_v60 = vrot.slane %v2968_v21, 2 }
0x145f   :  { %v2993_v23 = vrot.slane %v2991_v39, 1  ;;  %v2994_v35 = vrot.slane %v2991_v39, 2  ;;  %v2977_v29 = vadd.f32 %v2973_v61, %v4333_v55  ;;  %v2978_v0 = vadd.f32 %v2974_v60, %v4321_v45 }
0x1461   :  { %2997 = vrot.lane.b32.xlu0 %v2994_v35, %s4123_s11  ;;  %2995 = vrot.lane.b32.xlu1 %v2993_v23, %s4123_s11  ;;  %v3375_v15 = vmul.f32 -1.442695, %v2977_v29  ;;  %v3376_v12 = vmul.f32 -1.442695, %v2978_v0 }
0x1463   :  { %3949 = vpow2.f32 %v3375_v15 }
0x1464   :  { %3951 = vpow2.f32 %v3376_v12 }
0x146d   :  { %v3950_v58 = vpop.eup %3949 }
0x146e   :  { %v3952_v1 = vpop.eup %3951  ;;  %v2985_v62 = vadd.f32 1.0, %v3950_v58 }
0x146f   :  { %v2986_v47 = vadd.f32 1.0, %v3952_v1 }
0x1470   :  { %3953 = vrcp.f32 %v2985_v62 }
0x1471   :  { %v3153_v53 = vpop.f32.mrb[16].mxu1  ;;  %3955 = vrcp.f32 %v2986_v47 }
0x1472   :  { %v3175_v5 = vadd.f32 %v3153_v53, %v4310_v33  ;;  %v3658_v56 = vpop.f32.mrb[17].mxu1  ;;  %v3158_v25 = vrot.slane %v3153_v53, 1  ;;  %v3161_v33 = vadd.f32 %v3153_v53, %v4327_v50 }
0x1474   :  { %v3177_v17 = vrot.slane %v3175_v5, 1  ;;  %3178 = vrot.lane.b32.xlu0 %v3175_v5, %s4123_s11  ;;  %v3162_v19 = vadd.f32 %v3158_v25, %v4329_v51  ;;  %v3379_v2 = vmul.f32 -1.442695, %v3161_v33 }
0x1476   :  { %3180 = vrot.lane.b32.xlu1 %v3177_v17, %s4123_s11  ;;  %v3380_v10 = vmul.f32 -1.442695, %v3162_v19  ;;  %3957 = vpow2.f32 %v3379_v2 }
0x1478   :  { %3959 = vpow2.f32 %v3380_v10 }
0x147a   :  { %v3954_v28 = vpop.eup %3953 }
0x147b   :  { %v3956_v3 = vpop.eup %3955 }
0x147c   :  { %v3016_v39 = vsub.f32 1.0, %v3956_v3 }
0x1480   :  { %v3958_v11 = vpop.eup %3957 }
0x1481   :  { %v3169_v20 = vadd.f32 1.0, %v3958_v11 }
0x1482   :  { %v3960_v13 = vpop.eup %3959 }
0x1483   :  { %v3170_v24 = vadd.f32 1.0, %v3960_v13  ;;  %3961 = vrcp.f32 %v3169_v20 }
0x1485   :  { %3963 = vrcp.f32 %v3170_v24 }
0x148d   :  { %v4896_v59 = vpop.eup %3961 }
0x148e   :  { %v3198_v25 = vsub.f32 1.0, %v4896_v59 }
0x148f   :  { %v3964_v22 = vpop.eup %3963 }
0x14d3   :  { %v2998_v40 = vpop.permute.xlu0 %2997  ;;  %v2996_v7 = vpop.permute.xlu1 %2995 }
0x14d4   :  { %v3002_v63 = vmul.f32 %v3956_v3, %v2998_v40  ;;  %v3001_v8 = vmul.f32 %v3954_v28, %v2996_v7 }
0x14d6   :  { %3007 = vrot.lane.b32.xlu0 %v3002_v63, %s4123_s11  ;;  %3005 = vrot.lane.b32.xlu1 %v3001_v8, %s4123_s11 }
0x14e6   :  { %v3179_v16 = vpop.permute.xlu0 %3178 }
0x14e7   :  { %v3184_v48 = vmul.f32 %v4896_v59, %v3179_v16 }
0x14e8   :  { %v3181_v54 = vpop.permute.xlu1 %3180 }
0x14e9   :  { %v3185_v6 = vmul.f32 %v3964_v22, %v3181_v54  ;;  %3188 = vrot.lane.b32.xlu0 %v3184_v48, %s4123_s11 }
0x14eb   :  { %3190 = vrot.lane.b32.xlu1 %v3185_v6, %s4123_s11 }
0x14ed   :  { %3031 = vrot.lane.b32.xlu0 %v3028_v18, %s4125_s5 }
0x14ef   :  { %3029 = vrot.lane.b32.xlu1 %v3027_v36, %s4125_s5 }
0x14f1   :  { %3213 = vrot.lane.b32.xlu0 %v3210_v4, %s4125_s5 }
0x1548   :  { %v3008_v38 = vpop.permute.xlu0 %3007  ;;  %v3006_v9 = vpop.permute.xlu1 %3005 }
0x1549   :  { %v3012_v49 = vadd.f32 %v3008_v38, %v4321_v45  ;;  %v3011_v37 = vadd.f32 %v3006_v9, %v4333_v55 }
0x154b   :  { %3965 = vtanh.f32 %v3012_v49 }
0x154c   :  { %3967 = vtanh.f32 %v3011_v37 }
0x1555   :  { %v3966_v41 = vpop.eup %3965 }
0x1556   :  { %v3968_v42 = vpop.eup %3967  ;;  %3021 = vrot.lane.b32.xlu0 %v3966_v41, %s4127_s19 }
0x1557   :  { %3019 = vrot.lane.b32.xlu1 %v3968_v42, %s4127_s19 }
0x155a   :  { %3211 = vrot.lane.b32.xlu0 %v4875_v27, %s4125_s5 }
0x155b   :  { %v3189_v30 = vpop.permute.xlu0 %3188 }
0x155c   :  { %v3194_v45 = vadd.f32 %v3189_v30, %v4327_v50 }
0x155d   :  { %v3191_v52 = vpop.permute.xlu1 %3190 }
0x155e   :  { %3223 = vperm.xlu0 %3779, %v4378_v43   ;;  %v3195_v31 = vadd.f32 %v3191_v52, %v4329_v51  ;;  %v3015_v43 = vsub.f32 1.0, %v3954_v28 }
0x155f   :  { %v3032_v34 = vpop.permute.xlu0 %3031 }
0x1560   :  { %3969 = vtanh.f32 %v3195_v31  ;;  %v3036_v23 = vmul.f32 %v3956_v3, %v3032_v34 }
0x1561   :  { %3971 = vtanh.f32 %v3194_v45  ;;  %v3030_v21 = vpop.permute.xlu1 %3029 }
0x1562   :  { %v3035_v50 = vmul.f32 %v3954_v28, %v3030_v21 }
0x1563   :  { %v3214_v46 = vpop.permute.xlu0 %3213 }
0x1564   :  { %v3218_v0 = vmul.f32 %v3964_v22, %v3214_v46 }
0x156a   :  { %v3970_v55 = vpop.eup %3969 }
0x156b   :  { %3204 = vrot.lane.b32.xlu1 %v3970_v55, %s4127_s19  ;;  %v3972_v26 = vpop.eup %3971 }
0x156f   :  { %3202 = vrot.lane.b32.xlu1 %v3972_v26, %s4127_s19 }
0x1573   :  { %3041 = vperm.xlu1 %3780, %v4381_v44   ;;  %v3199_v44 = vsub.f32 1.0, %v3964_v22 }
0x15c8   :  { %v3022_v14 = vpop.permute.xlu0 %3021 }
0x15c9   :  { %v3026_v51 = vmul.f32 %v3022_v14, %v3016_v39  ;;  %v3020_v35 = vpop.permute.xlu1 %3019 }
0x15ca   :  { %v3025_v53 = vmul.f32 %v3020_v35, %v3015_v43 }
0x15cb   :  { %v3038_v5 = vadd.f32 %v3036_v23, %v3026_v51 }
0x15cc   :  { %v3037_v56 = vadd.f32 %v3035_v50, %v3025_v53  ;;  %v3212_v12 = vpop.permute.xlu0 %3211 }
0x15cd   :  { %v3047_v17 = vrot.slane %v3038_v5, 6  ;;  %v3217_v33 = vmul.f32 %v4896_v59, %v3212_v12 }
0x15ce   :  { %v3046_v61 = vrot.slane %v3037_v56, 7 }
0x15d0   :  { %v3048_v60 = vsel %vm456_vm6, %v3047_v17, %v3046_v61 }
0x15d1   :  { %3049 = vrot.lane.b32.xlu1 %v3048_v60, %s4127_s19 }
0x15dd   :  { %v3205_v29 = vpop.permute.xlu1 %3204 }
0x15de   :  { %v3209_v15 = vmul.f32 %v3205_v29, %v3199_v44 }
0x15e0   :  { %v3220_v58 = vadd.f32 %v3218_v0, %v3209_v15 }
0x15e1   :  { %v3203_v1 = vpop.permute.xlu1 %3202 }
0x15e2   :  { %v3208_v62 = vmul.f32 %v3203_v1, %v3198_v25  ;;  %v3228_v47 = vrot.slane %v3220_v58, 7 }
0x15e4   :  { %v3219_v19 = vadd.f32 %v3217_v33, %v3208_v62 }
0x15e6   :  { %v3229_v2 = vsel %vm456_vm6, %v3228_v47, %v3219_v19 }
0x15e7   :  { %3230 = vrot.lane.b32.xlu0 %v3229_v2, %s4127_s19 }
0x15f2   :  { %v3042_v10 = vpop.permute.xlu1 %3041 }
0x15f3   :  { %vm3043_vm3 = vcmp.eq.s32.totalorder %v3042_v10, 1 }
0x1643   :  { %v3050_v28 = vpop.permute.xlu1 %3049 }
0x1644   :  { %v3052_v3 = vsel %vm3043_vm3, %v3050_v28, %v4865_v57  ;;  %v3053_v40 = vsel %vm3043_vm3, %v3050_v28, 0.0 }
0x1645   :  { %v3061_v7 = vrot.slane %v3053_v40, %v4397_v32  ;;  %3263 = vst.msk [vmem:[#allocation2] sm:$0x3] %vm94_vm0, %v3052_v3 }
0x1647   :  { %v3062_v63 = vcombine.high %v3061_v7, %v3061_v7  ;;  %v3069_v8 = vrot.slane %v3061_v7, %v4397_v32 }
0x1649   :  { %v3076_v11 = vrot.slane %v3062_v63, %v4397_v32  ;;  %3079 = vst.msk [vmem:[#allocation12 + $0x7] sm:$0x1] %vm488_vm9, %v3069_v8 }
0x164b   :  { %3080 = vst.msk [vmem:[#allocation12 + $0xf] sm:$0x1] %vm488_vm9, %v3076_v11 }
0x164c   :  { %4072 = shalt.err (!%p4069_p8)
}
0x164d   :  { %s4073_s24 = scalar_lea.hbm %s4976_s7, 256 }
0x164e   :  { %p4074_p9 = scmp.ne.s32.totalorder %s4976_s7, %s4073_s24  ;;  %p4077_p10 = scmp.lt.u32.totalorder %s4073_s24, %s4976_s7 }
0x1650   :  { %p4079_p11 = pnand %p4077_p10, %p4074_p9 }
0x1652   :  { %4082 = shalt.err (!%p4079_p11)
}
0x1653   :  { %3276 = dma.vmem_to_hbm [thread:$0]  %s3271_s1, 256, %s4976_s7, [#allocation6], %s4117_s17, %s4117_s17, %s4118_s18   ;;  %v3224_v57 = vpop.permute.xlu0 %3223 }
0x1654   :  { %vm3225_vm6 = vcmp.eq.s32.totalorder %v3224_v57, 1  ;;  %s4130_s3 = smov [#allocation13]  }
0x1655   :  { %s3285_s9 = sshll.u32 %s4130_s3, 4  ;;  %s3286_s9 = int_to_ptr.vmem [resolvable:$true] %s3285_s9 }
0x1656   :  { %s4083_s7 = scalar_lea.vmem %s3286_s9, 256  ;;  %p4088_p13 = scmp.lt.s32.totalorder %s3286_s9, %s3286_s9 }
0x1657   :  { %p4084_p12 = scmp.ne.s32.totalorder %s3286_s9, %s4083_s7  ;;  %p4089_p0 = scmp.lt.s32.totalorder %s4083_s7, %s4083_s7 }
0x1659   :  { %v3231_v13 = vpop.permute.xlu0 %3230  ;;  %p4090_p1 = por %p4089_p0, %p4088_p13 }
0x165a   :  { %v3233_v20 = vsel %vm3225_vm6, %v3231_v13, %v4875_v27  ;;  %v3234_v24 = vsel %vm3225_vm6, %v3231_v13, 0.0 }
0x165b   :  { %v3242_v59 = vrot.slane %v3234_v24, %v4397_v32  ;;  %3264 = vst.msk [vmem:[#allocation3] sm:$0x3] %vm94_vm0, %v3233_v20  ;;  %p4091_p2 = pnand %p4090_p1, %p4084_p12 }
0x165d   :  { %v3243_v16 = vcombine.high %v3242_v59, %v3242_v59  ;;  %v3250_v48 = vrot.slane %v3242_v59, %v4397_v32 }
0x165f   :  { %v3257_v22 = vrot.slane %v3243_v16, %v4397_v32  ;;  %3260 = vst.msk [vmem:[#allocation13] sm:$0x1] %vm488_vm9, %v3250_v48 }
0x1661   :  { %3261 = vst.msk [vmem:[#allocation13 + $0x8] sm:$0x1] %vm488_vm9, %v3257_v22 }
0x1662   :  { %4094 = shalt.err (!%p4091_p2)
}
0x1663   :  { %s4095_s11 = scalar_lea.hbm %s4977_s8, 256 }
0x1664   :  { %p4096_p3 = scmp.ne.s32.totalorder %s4977_s8, %s4095_s11  ;;  %p4099_p4 = scmp.lt.u32.totalorder %s4095_s11, %s4977_s8 }
0x1666   :  { %p4101_p5 = pnand %p4099_p4, %p4096_p3 }
0x1668   :  { %4104 = shalt.err (!%p4101_p5)
}
0x1669   :  { %3291 = dma.vmem_to_hbm [thread:$0]  %s3286_s9, 256, %s4977_s8, [#allocation14], %s4117_s17, %s4117_s17, %s4118_s18  }
0x166a   :  { %4111 = dma.done.wait [#allocation6], 256  }
0x166b   :  { %4112 = vsyncadd [#allocation6], 4294967040 }
0x166c   :  { %4113 = dma.done.wait [#allocation14], 256  }
0x166d   :  { %4114 = vsyncadd [#allocation14], 4294967040 }
0x166e   :  { %3298 = vsyncpa [#allocation5], 1 }
0x166f   :  { %3299 = vsyncpa [#allocation8], 1 }
0x1670   :  { %3300 = vsyncpa [#allocation11], 1 }
0x1671   :  { %3301 = vsyncpa [#allocation6], 1 }
0x1672   :  { %3302 = vsyncpa [#allocation14], 1 }

</bundles_post_ra>
